<compile_context>
chip_gen: v7x
topology: tpu7x:2x2x1
jax: 0.10.0
libtpu: 0.0.40
codegen_flags: <defaults>
</compile_context>

<pallas_src>
import functools

import jax
import jax.numpy as jnp
from jax.experimental import pallas as pl
from jax.experimental.pallas import tpu as pltpu


def _pick_vmem_limit_bytes():
    """Scoped-VMEM budget per TPU generation (trace-time query)."""
    try:
        kind = jax.devices()[0].device_kind.lower()
    except Exception:
        return 32 * 1024 * 1024
    if ("v5 lite" in kind or "v5e" in kind or "v5litepod" in kind
            or "v6 lite" in kind or "v6e" in kind):
        return 96 * 1024 * 1024          # 128 MiB physical -> leave headroom
    if "v7" in kind:
        return 40 * 1024 * 1024          # 64 MiB physical on v7x
    return 32 * 1024 * 1024              # unknown / older: stay at the default


def _conv_rows(x_ref, w_ref, r0, *, TH, W, Cin):
    """Fused upsample+conv for TH original rows -> f32 (TH*W, C4p) accumulator.

    x_ref : (1, H+2, W+2, Cin) bf16 padded original-resolution slab (whole image)
    w_ref : (9*Cin, C4p) bf16 folded tap weights, rows ordered (u*3+v, ci),
            columns ordered channel-major co*4 + a*2 + b.
    """
    taps = [
        x_ref[0, pl.ds(r0 + u, TH), v:v + W, :].reshape(TH * W, Cin)
        for u in range(3) for v in range(3)
    ]
    if Cin < 256:
        # Small Cin: one matmul with K = 9*Cin -> much better MXU K-fill than
        # nine K=Cin matmuls (MXU K = 128 on v5e, 256 on v6e/v7x).
        patches = jnp.concatenate(taps, axis=1)               # (TH*W, 9*Cin)
        return jnp.dot(patches, w_ref[...], preferred_element_type=jnp.float32)
    # Large Cin: each tap already fills the MXU contraction dim; accumulate 9
    # matmuls and avoid materializing a (TH*W, 9*Cin) im2col buffer in VMEM.
    acc = None
    for t in range(9):
        part = jnp.dot(taps[t], w_ref[t * Cin:(t + 1) * Cin, :],
                       preferred_element_type=jnp.float32)
        acc = part if acc is None else acc + part
    return acc


def _stats_kernel(x_ref, w_ref, o_ref, *, TH, W, Cin):
    rb = pl.program_id(1)
    r0 = pl.multiple_of(rb * TH, TH)
    acc = _conv_rows(x_ref, w_ref, r0, TH=TH, W=W, Cin=Cin)
    # Bias-free accumulator (the conv bias cancels under training-mode BN) keeps
    # the mean near zero, limiting E[y^2]-E[y]^2 cancellation.  Per-block f32
    # partials are combined outside the kernel.
    o_ref[0, 0, 0:1, :] = jnp.sum(acc, axis=0, keepdims=True)
    o_ref[0, 0, 1:2, :] = jnp.sum(acc * acc, axis=0, keepdims=True)


def _apply_kernel(x_ref, w_ref, scale_ref, shift_ref, o_ref, *, TH, W, Cin):
    rb = pl.program_id(1)
    r0 = pl.multiple_of(rb * TH, TH)
    acc = _conv_rows(x_ref, w_ref, r0, TH=TH, W=W, Cin=Cin)
    y = jnp.maximum(acc * scale_ref[...] + shift_ref[...], 0.0)
    o_ref[0] = y.astype(o_ref.dtype)


@functools.partial(jax.jit, static_argnames=("eps", "block_rows"))
def up_conv_forward(x_nchw, w, b, gamma, beta, eps=1e-5, block_rows=None):
    """Forward pass of up_conv (Upsample x2 -> Conv3x3+bias -> BN(train) -> ReLU)."""
    N, Cin, H, W = x_nchw.shape
    Cout = w.shape[0]
    C4 = 4 * Cout                       # fused (co, a, b) output-column dim
    C4p = C4 if C4 >= 128 else 128      # lane-dense stores when Cout < 32

    vmem_limit = _pick_vmem_limit_bytes()

    # ---- row-block tiling (bounds VMEM for the acc / im2col / output tile) ----
    if block_rows is None:
        budget = max(vmem_limit // 4, 2 * 1024 * 1024)
        per_row = W * (9 * Cin * 2 + 4 * C4p + 4 * C4p)   # patches + f32 acc + 2x bf16 out
        TH = max(1, min(H, budget // max(per_row, 1)))
    else:
        TH = max(1, min(int(block_rows), H))

    def _ok(th):
        return H % th == 0 and (th == H or (th * W) % 8 == 0)
    while TH > 1 and not _ok(TH):
        TH -= 1
    if not _ok(TH):
        TH = H
    RB = H // TH
    TW = TH * W
    # TODO(synk): for very large Cin*H*W also halo-tile the *input* slab (manual
    # DMA or pl.Element blocks); currently the whole padded image stays resident.

    # ---- prologue: NHWC + zero-pad 1 + bf16 cast (one small XLA pass) ---------
    # Keeping this in XLA costs read(x,f32)+write(xp,bf16) once (~6 B/elem) vs.
    # 2x f32 reads + 2x in-VMEM transposes if folded into the two conv passes,
    # so the XLA prologue is the cheaper, simpler option.
    xp = jnp.pad(jnp.transpose(x_nchw, (0, 2, 3, 1)),
                 ((0, 0), (1, 1), (1, 1), (0, 0))).astype(jnp.bfloat16)

    # ---- fold nearest-x2 upsample + 3x3 conv into 9 tap weights --------------
    #   out[n, 2i+a, 2j+b, co] = sum_{u,v,ci} xp[n, i+u, j+v, ci] * wtap[u,v,ci,co,a,b]
    # S[a, u, kh] = 1 iff conv tap kh at output-row parity a reads original row (i-1)+u.
    S = jnp.array([[[1, 0, 0], [0, 1, 1], [0, 0, 0]],
                   [[0, 0, 0], [1, 1, 0], [0, 0, 1]]], jnp.float32)     # (a, u, kh)
    wtap = jnp.einsum('auh,bvw,oihw->uvioab', S, S, w.astype(jnp.float32))
    wmat = wtap.reshape(9 * Cin, C4)
    wmat = jnp.pad(wmat, ((0, 0), (0, C4p - C4))).astype(jnp.bfloat16)

    # Conv bias cancels exactly under training-mode BatchNorm -> unused.
    del b

    common_kw = dict(TH=TH, W=W, Cin=Cin)
    cparams = pltpu.CompilerParams(
        dimension_semantics=("parallel", "parallel"),
        vmem_limit_bytes=vmem_limit,
    )
    x_spec = pl.BlockSpec((1, H + 2, W + 2, Cin), lambda n, rb: (n, 0, 0, 0))
    w_spec = pl.BlockSpec((9 * Cin, C4p), lambda n, rb: (0, 0))

    # ---- pass A: per-(image, row-block) partial sums / sums-of-squares -------
    stats = pl.pallas_call(
        functools.partial(_stats_kernel, **common_kw),
        out_shape=jax.ShapeDtypeStruct((N, RB, 2, C4p), jnp.float32),
        grid_spec=pltpu.PrefetchScalarGridSpec(
            num_scalar_prefetch=0,
            grid=(N, RB),
            in_specs=[x_spec, w_spec],
            out_specs=pl.BlockSpec((1, 1, 2, C4p), lambda n, rb: (n, rb, 0, 0)),
        ),
        compiler_params=cparams,
    )(xp, wmat)

    # ---- BN finalize, computed once (tiny XLA) --------------------------------
    # TODO(synk): E[y^2]-E[y]^2 in f32; for very large N*H*W consider per-block
    # Welford/Chan combination of (mean, M2) partials instead.
    inv_count = 1.0 / float(N * H * W * 4)
    tot = jnp.sum(stats[:, :, 0, :C4], axis=(0, 1)).reshape(Cout, 4).sum(-1)
    tot2 = jnp.sum(stats[:, :, 1, :C4], axis=(0, 1)).reshape(Cout, 4).sum(-1)
    mean = tot * inv_count
    var = tot2 * inv_count - mean * mean            # biased variance (BN training)
    inv_std = jax.lax.rsqrt(var + eps)
    scale_c = gamma.astype(jnp.float32) * inv_std
    shift_c = beta.astype(jnp.float32) - mean * scale_c
    scale_cols = jnp.pad(jnp.repeat(scale_c, 4), (0, C4p - C4)).reshape(1, C4p)
    shift_cols = jnp.pad(jnp.repeat(shift_c, 4), (0, C4p - C4)).reshape(1, C4p)

    # ---- pass B: recompute conv, apply BN + ReLU, store bf16 ------------------
    # TODO(synk): on v5e with large Cin*Cout a one-compute-pass variant (write a
    # bf16 conv intermediate in pass A and only re-read it here) avoids the 2x
    # conv recompute; gate on shape.
    out4 = pl.pallas_call(
        functools.partial(_apply_kernel, **common_kw),
        out_shape=jax.ShapeDtypeStruct((N, H * W, C4p), jnp.bfloat16),
        grid_spec=pltpu.PrefetchScalarGridSpec(
            num_scalar_prefetch=0,
            grid=(N, RB),
            in_specs=[
                x_spec,
                w_spec,
                pl.BlockSpec((1, C4p), lambda n, rb: (0, 0)),
                pl.BlockSpec((1, C4p), lambda n, rb: (0, 0)),
            ],
            out_specs=pl.BlockSpec((1, TW, C4p), lambda n, rb: (n, rb, 0)),
        ),
        compiler_params=cparams,
    )(xp, wmat, scale_cols, shift_cols)

    # ---- epilogue: depth-to-space + NCHW on the bf16 tensor (fused with the
    # f32 upcast by XLA: 2 B/elem read, 4 B/elem write).
    # TODO(synk): fold this permutation into the kernel store (strided
    # pl.ds(a, H, stride=2) / pl.ds(b, W, stride=2) parity writes into an NHWC
    # block) once strided sublane stores are validated on all targets.
    y = out4[:, :, :C4].reshape(N, H, W, Cout, 2, 2)
    y = jnp.transpose(y, (0, 3, 1, 4, 2, 5)).astype(jnp.float32)
    return y.reshape(N, Cout, 2 * H, 2 * W)


if __name__ == "__main__":
    key = jax.random.PRNGKey(0)
    k1, k2, k3, k4, k5 = jax.random.split(key, 5)

    # small shapes consistent with the module: NCHW input
    N, Cin, Hs, Ws, Cout = 2, 4, 16, 16, 8
    x = jax.random.normal(k1, (N, Cin, Hs, Ws), jnp.float32)

    w = jax.random.normal(k2, (Cout, Cin, 3, 3), jnp.float32) * 0.1   # conv weight
    b = jax.random.normal(k3, (Cout,), jnp.float32) * 0.1             # conv bias
    gamma = 1.0 + 0.1 * jax.random.normal(k4, (Cout,), jnp.float32)   # BN weight
    beta = 0.1 * jax.random.normal(k5, (Cout,), jnp.float32)          # BN bias

    # block_rows=8 exercises the multi-row-block tiling path (RB=2).
    out = up_conv_forward(x, w, b, gamma, beta, block_rows=8)
    out = jax.block_until_ready(out)

    # pure-JAX f32 reference to validate semantics
    x_up = jnp.repeat(jnp.repeat(x, 2, axis=2), 2, axis=3)
    conv = jax.lax.conv_general_dilated(
        x_up, w, window_strides=(1, 1), padding=((1, 1), (1, 1)),
        dimension_numbers=("NCHW", "OIHW", "NCHW"),
    ) + b.reshape(1, Cout, 1, 1)
    mean = conv.mean(axis=(0, 2, 3), keepdims=True)
    var = conv.var(axis=(0, 2, 3), keepdims=True)
    ref = jnp.maximum(
        (conv - mean) / jnp.sqrt(var + 1e-5) * gamma.reshape(1, Cout, 1, 1)
        + beta.reshape(1, Cout, 1, 1),
        0.0,
    )

    assert out.shape == (N, Cout, 2 * Hs, 2 * Ws)
    # bf16-streamed operands and bf16 output store (f32 accumulation) -> relaxed tolerance.
    assert jnp.allclose(out, ref, atol=3e-2, rtol=3e-2), "mismatch vs reference"

    print("KERNEL_OK")
</pallas_src>

<mosaic_0001>
module attributes {stable_mosaic.version = 11 : i64} {
  func.func @_stats_kernel(%arg0: i32, %arg1: i32, %arg2: memref<1x18x18x4xbf16, #tpu.memory_space<vmem>>, %arg3: memref<36x128xbf16, #tpu.memory_space<vmem>>, %arg4: memref<1x1x2x128xf32, #tpu.memory_space<vmem>>) attributes {dimension_semantics = [#tpu.dimension_semantics<parallel>, #tpu.dimension_semantics<parallel>], iteration_bounds = array<i64: 2, 2>, scalar_prefetch = 0 : i64, scratch_operands = 0 : i64, tpu.core_type = #tpu.core_type<tc>, window_params = [{transform_indices = @transform_0, window_bounds = array<i64: 1, 18, 18, 4>}, {pipeline_mode = #tpu.pipeline_mode<synchronous>, transform_indices = @transform_1, window_bounds = array<i64: 36, 128>}, {transform_indices = @transform_2, window_bounds = array<i64: 1, 1, 2, 128>}]} {
    %c8_i32 = arith.constant 8 : i32
    %0 = arith.muli %arg1, %c8_i32 : i32
    %1 = tpu.assume_multiple %0, 8 : i32
    %c0_i32 = arith.constant 0 : i32
    %2 = arith.addi %1, %c0_i32 : i32
    %c0 = arith.constant 0 : index
    %3 = arith.index_cast %2 : i32 to index
    %c0_0 = arith.constant 0 : index
    %c0_1 = arith.constant 0 : index
    %4 = vector.load %arg2[%c0, %3, %c0_0, %c0_1] : memref<1x18x18x4xbf16, #tpu.memory_space<vmem>>, vector<1x8x16x4xbf16>
    %5 = vector.shape_cast %4 : vector<1x8x16x4xbf16> to vector<8x16x4xbf16>
    %6 = vector.shape_cast %5 : vector<8x16x4xbf16> to vector<128x4xbf16>
    %c0_i32_2 = arith.constant 0 : i32
    %7 = arith.addi %1, %c0_i32_2 : i32
    %c0_3 = arith.constant 0 : index
    %8 = arith.index_cast %7 : i32 to index
    %c1 = arith.constant 1 : index
    %c0_4 = arith.constant 0 : index
    %9 = vector.load %arg2[%c0_3, %8, %c1, %c0_4] : memref<1x18x18x4xbf16, #tpu.memory_space<vmem>>, vector<1x8x16x4xbf16>
    %10 = vector.shape_cast %9 : vector<1x8x16x4xbf16> to vector<8x16x4xbf16>
    %11 = vector.shape_cast %10 : vector<8x16x4xbf16> to vector<128x4xbf16>
    %c0_i32_5 = arith.constant 0 : i32
    %12 = arith.addi %1, %c0_i32_5 : i32
    %c0_6 = arith.constant 0 : index
    %13 = arith.index_cast %12 : i32 to index
    %c2 = arith.constant 2 : index
    %c0_7 = arith.constant 0 : index
    %14 = vector.load %arg2[%c0_6, %13, %c2, %c0_7] : memref<1x18x18x4xbf16, #tpu.memory_space<vmem>>, vector<1x8x16x4xbf16>
    %15 = vector.shape_cast %14 : vector<1x8x16x4xbf16> to vector<8x16x4xbf16>
    %16 = vector.shape_cast %15 : vector<8x16x4xbf16> to vector<128x4xbf16>
    %c1_i32 = arith.constant 1 : i32
    %17 = arith.addi %1, %c1_i32 : i32
    %c0_8 = arith.constant 0 : index
    %18 = arith.index_cast %17 : i32 to index
    %c0_9 = arith.constant 0 : index
    %c0_10 = arith.constant 0 : index
    %19 = vector.load %arg2[%c0_8, %18, %c0_9, %c0_10] : memref<1x18x18x4xbf16, #tpu.memory_space<vmem>>, vector<1x8x16x4xbf16>
    %20 = vector.shape_cast %19 : vector<1x8x16x4xbf16> to vector<8x16x4xbf16>
    %21 = vector.shape_cast %20 : vector<8x16x4xbf16> to vector<128x4xbf16>
    %c1_i32_11 = arith.constant 1 : i32
    %22 = arith.addi %1, %c1_i32_11 : i32
    %c0_12 = arith.constant 0 : index
    %23 = arith.index_cast %22 : i32 to index
    %c1_13 = arith.constant 1 : index
    %c0_14 = arith.constant 0 : index
    %24 = vector.load %arg2[%c0_12, %23, %c1_13, %c0_14] : memref<1x18x18x4xbf16, #tpu.memory_space<vmem>>, vector<1x8x16x4xbf16>
    %25 = vector.shape_cast %24 : vector<1x8x16x4xbf16> to vector<8x16x4xbf16>
    %26 = vector.shape_cast %25 : vector<8x16x4xbf16> to vector<128x4xbf16>
    %c1_i32_15 = arith.constant 1 : i32
    %27 = arith.addi %1, %c1_i32_15 : i32
    %c0_16 = arith.constant 0 : index
    %28 = arith.index_cast %27 : i32 to index
    %c2_17 = arith.constant 2 : index
    %c0_18 = arith.constant 0 : index
    %29 = vector.load %arg2[%c0_16, %28, %c2_17, %c0_18] : memref<1x18x18x4xbf16, #tpu.memory_space<vmem>>, vector<1x8x16x4xbf16>
    %30 = vector.shape_cast %29 : vector<1x8x16x4xbf16> to vector<8x16x4xbf16>
    %31 = vector.shape_cast %30 : vector<8x16x4xbf16> to vector<128x4xbf16>
    %c2_i32 = arith.constant 2 : i32
    %32 = arith.addi %1, %c2_i32 : i32
    %c0_19 = arith.constant 0 : index
    %33 = arith.index_cast %32 : i32 to index
    %c0_20 = arith.constant 0 : index
    %c0_21 = arith.constant 0 : index
    %34 = vector.load %arg2[%c0_19, %33, %c0_20, %c0_21] : memref<1x18x18x4xbf16, #tpu.memory_space<vmem>>, vector<1x8x16x4xbf16>
    %35 = vector.shape_cast %34 : vector<1x8x16x4xbf16> to vector<8x16x4xbf16>
    %36 = vector.shape_cast %35 : vector<8x16x4xbf16> to vector<128x4xbf16>
    %c2_i32_22 = arith.constant 2 : i32
    %37 = arith.addi %1, %c2_i32_22 : i32
    %c0_23 = arith.constant 0 : index
    %38 = arith.index_cast %37 : i32 to index
    %c1_24 = arith.constant 1 : index
    %c0_25 = arith.constant 0 : index
    %39 = vector.load %arg2[%c0_23, %38, %c1_24, %c0_25] : memref<1x18x18x4xbf16, #tpu.memory_space<vmem>>, vector<1x8x16x4xbf16>
    %40 = vector.shape_cast %39 : vector<1x8x16x4xbf16> to vector<8x16x4xbf16>
    %41 = vector.shape_cast %40 : vector<8x16x4xbf16> to vector<128x4xbf16>
    %c2_i32_26 = arith.constant 2 : i32
    %42 = arith.addi %1, %c2_i32_26 : i32
    %c0_27 = arith.constant 0 : index
    %43 = arith.index_cast %42 : i32 to index
    %c2_28 = arith.constant 2 : index
    %c0_29 = arith.constant 0 : index
    %44 = vector.load %arg2[%c0_27, %43, %c2_28, %c0_29] : memref<1x18x18x4xbf16, #tpu.memory_space<vmem>>, vector<1x8x16x4xbf16>
    %45 = vector.shape_cast %44 : vector<1x8x16x4xbf16> to vector<8x16x4xbf16>
    %46 = vector.shape_cast %45 : vector<8x16x4xbf16> to vector<128x4xbf16>
    %47 = tpu.concatenate %6, %11, %16, %21, %26, %31, %36, %41, %46 in 1 : vector<128x4xbf16>, vector<128x4xbf16>, vector<128x4xbf16>, vector<128x4xbf16>, vector<128x4xbf16>, vector<128x4xbf16>, vector<128x4xbf16>, vector<128x4xbf16>, vector<128x4xbf16> -> vector<128x36xbf16>
    %c0_30 = arith.constant 0 : index
    %c0_31 = arith.constant 0 : index
    %48 = vector.load %arg3[%c0_30, %c0_31] : memref<36x128xbf16, #tpu.memory_space<vmem>>, vector<36x128xbf16>
    %cst = arith.constant dense<0.000000e+00> : vector<128x128xf32>
    %49 = tpu.matmul %47, %48, %cst {dimension_numbers = #tpu.dot_dimension_numbers<[1], [0], [0], [1], [0, 0, 1, 1], [], []>} : vector<128x36xbf16>, vector<36x128xbf16>, vector<128x128xf32> -> vector<128x128xf32>
    %cst_32 = arith.constant dense<0.000000e+00> : vector<128xf32>
    %50 = vector.multi_reduction <add>, %49, %cst_32 [0] : vector<128x128xf32> to vector<128xf32>
    %51 = vector.shape_cast %50 : vector<128xf32> to vector<1x128xf32>
    %c0_33 = arith.constant 0 : index
    %c0_34 = arith.constant 0 : index
    %c0_35 = arith.constant 0 : index
    %c0_36 = arith.constant 0 : index
    %52 = vector.load %arg4[%c0_33, %c0_34, %c0_35, %c0_36] : memref<1x1x2x128xf32, #tpu.memory_space<vmem>>, vector<1x1x1x128xf32>
    %53 = vector.shape_cast %52 : vector<1x1x1x128xf32> to vector<1x128xf32>
    %54 = vector.shape_cast %51 : vector<1x128xf32> to vector<1x1x1x128xf32>
    tpu.vector_store %arg4[%c0_33, %c0_34, %c0_35, %c0_36], %54 {strides = array<i32>} : memref<1x1x2x128xf32, #tpu.memory_space<vmem>>, vector<1x1x1x128xf32>,
    %55 = arith.mulf %49, %49 : vector<128x128xf32>
    %cst_37 = arith.constant dense<0.000000e+00> : vector<128xf32>
    %56 = vector.multi_reduction <add>, %55, %cst_37 [0] : vector<128x128xf32> to vector<128xf32>
    %57 = vector.shape_cast %56 : vector<128xf32> to vector<1x128xf32>
    %c0_38 = arith.constant 0 : index
    %c0_39 = arith.constant 0 : index
    %c1_40 = arith.constant 1 : index
    %c0_41 = arith.constant 0 : index
    %58 = vector.load %arg4[%c0_38, %c0_39, %c1_40, %c0_41] : memref<1x1x2x128xf32, #tpu.memory_space<vmem>>, vector<1x1x1x128xf32>
    %59 = vector.shape_cast %58 : vector<1x1x1x128xf32> to vector<1x128xf32>
    %60 = vector.shape_cast %57 : vector<1x128xf32> to vector<1x1x1x128xf32>
    tpu.vector_store %arg4[%c0_38, %c0_39, %c1_40, %c0_41], %60 {strides = array<i32>} : memref<1x1x2x128xf32, #tpu.memory_space<vmem>>, vector<1x1x1x128xf32>,
    return
  }
  func.func @transform_0(%arg0: i32, %arg1: i32) -> (i32, i32, i32, i32) {
    %c0_i32 = arith.constant 0 : i32
    %c0_i32_0 = arith.constant 0 : i32
    %c0_i32_1 = arith.constant 0 : i32
    %c0_i32_2 = arith.constant 0 : i32
    return %arg0, %c0_i32, %c0_i32_0, %c0_i32_1 : i32, i32, i32, i32
  }
  func.func @transform_1(%arg0: i32, %arg1: i32) -> (i32, i32) {
    %c0_i32 = arith.constant 0 : i32
    %c0_i32_0 = arith.constant 0 : i32
    %c0_i32_1 = arith.constant 0 : i32
    return %c0_i32, %c0_i32_0 : i32, i32
  }
  func.func @transform_2(%arg0: i32, %arg1: i32) -> (i32, i32, i32, i32) {
    %c0_i32 = arith.constant 0 : i32
    %c0_i32_0 = arith.constant 0 : i32
    %c0_i32_1 = arith.constant 0 : i32
    return %arg0, %arg1, %c0_i32, %c0_i32_0 : i32, i32, i32, i32
  }
}

module attributes {stable_mosaic.version = 11 : i64} {
  func.func @_apply_kernel(%arg0: i32, %arg1: i32, %arg2: memref<1x18x18x4xbf16, #tpu.memory_space<vmem>>, %arg3: memref<36x128xbf16, #tpu.memory_space<vmem>>, %arg4: memref<1x128xf32, #tpu.memory_space<vmem>>, %arg5: memref<1x128xf32, #tpu.memory_space<vmem>>, %arg6: memref<1x128x128xbf16, #tpu.memory_space<vmem>>) attributes {dimension_semantics = [#tpu.dimension_semantics<parallel>, #tpu.dimension_semantics<parallel>], iteration_bounds = array<i64: 2, 2>, scalar_prefetch = 0 : i64, scratch_operands = 0 : i64, tpu.core_type = #tpu.core_type<tc>, window_params = [{transform_indices = @transform_0, window_bounds = array<i64: 1, 18, 18, 4>}, {pipeline_mode = #tpu.pipeline_mode<synchronous>, transform_indices = @transform_1, window_bounds = array<i64: 36, 128>}, {pipeline_mode = #tpu.pipeline_mode<synchronous>, transform_indices = @transform_2, window_bounds = array<i64: 1, 128>}, {pipeline_mode = #tpu.pipeline_mode<synchronous>, transform_indices = @transform_3, window_bounds = array<i64: 1, 128>}, {transform_indices = @transform_4, window_bounds = array<i64: 1, 128, 128>}]} {
    %c8_i32 = arith.constant 8 : i32
    %0 = arith.muli %arg1, %c8_i32 : i32
    %1 = tpu.assume_multiple %0, 8 : i32
    %c0_i32 = arith.constant 0 : i32
    %2 = arith.addi %1, %c0_i32 : i32
    %c0 = arith.constant 0 : index
    %3 = arith.index_cast %2 : i32 to index
    %c0_0 = arith.constant 0 : index
    %c0_1 = arith.constant 0 : index
    %4 = vector.load %arg2[%c0, %3, %c0_0, %c0_1] : memref<1x18x18x4xbf16, #tpu.memory_space<vmem>>, vector<1x8x16x4xbf16>
    %5 = vector.shape_cast %4 : vector<1x8x16x4xbf16> to vector<8x16x4xbf16>
    %6 = vector.shape_cast %5 : vector<8x16x4xbf16> to vector<128x4xbf16>
    %c0_i32_2 = arith.constant 0 : i32
    %7 = arith.addi %1, %c0_i32_2 : i32
    %c0_3 = arith.constant 0 : index
    %8 = arith.index_cast %7 : i32 to index
    %c1 = arith.constant 1 : index
    %c0_4 = arith.constant 0 : index
    %9 = vector.load %arg2[%c0_3, %8, %c1, %c0_4] : memref<1x18x18x4xbf16, #tpu.memory_space<vmem>>, vector<1x8x16x4xbf16>
    %10 = vector.shape_cast %9 : vector<1x8x16x4xbf16> to vector<8x16x4xbf16>
    %11 = vector.shape_cast %10 : vector<8x16x4xbf16> to vector<128x4xbf16>
    %c0_i32_5 = arith.constant 0 : i32
    %12 = arith.addi %1, %c0_i32_5 : i32
    %c0_6 = arith.constant 0 : index
    %13 = arith.index_cast %12 : i32 to index
    %c2 = arith.constant 2 : index
    %c0_7 = arith.constant 0 : index
    %14 = vector.load %arg2[%c0_6, %13, %c2, %c0_7] : memref<1x18x18x4xbf16, #tpu.memory_space<vmem>>, vector<1x8x16x4xbf16>
    %15 = vector.shape_cast %14 : vector<1x8x16x4xbf16> to vector<8x16x4xbf16>
    %16 = vector.shape_cast %15 : vector<8x16x4xbf16> to vector<128x4xbf16>
    %c1_i32 = arith.constant 1 : i32
    %17 = arith.addi %1, %c1_i32 : i32
    %c0_8 = arith.constant 0 : index
    %18 = arith.index_cast %17 : i32 to index
    %c0_9 = arith.constant 0 : index
    %c0_10 = arith.constant 0 : index
    %19 = vector.load %arg2[%c0_8, %18, %c0_9, %c0_10] : memref<1x18x18x4xbf16, #tpu.memory_space<vmem>>, vector<1x8x16x4xbf16>
    %20 = vector.shape_cast %19 : vector<1x8x16x4xbf16> to vector<8x16x4xbf16>
    %21 = vector.shape_cast %20 : vector<8x16x4xbf16> to vector<128x4xbf16>
    %c1_i32_11 = arith.constant 1 : i32
    %22 = arith.addi %1, %c1_i32_11 : i32
    %c0_12 = arith.constant 0 : index
    %23 = arith.index_cast %22 : i32 to index
    %c1_13 = arith.constant 1 : index
    %c0_14 = arith.constant 0 : index
    %24 = vector.load %arg2[%c0_12, %23, %c1_13, %c0_14] : memref<1x18x18x4xbf16, #tpu.memory_space<vmem>>, vector<1x8x16x4xbf16>
    %25 = vector.shape_cast %24 : vector<1x8x16x4xbf16> to vector<8x16x4xbf16>
    %26 = vector.shape_cast %25 : vector<8x16x4xbf16> to vector<128x4xbf16>
    %c1_i32_15 = arith.constant 1 : i32
    %27 = arith.addi %1, %c1_i32_15 : i32
    %c0_16 = arith.constant 0 : index
    %28 = arith.index_cast %27 : i32 to index
    %c2_17 = arith.constant 2 : index
    %c0_18 = arith.constant 0 : index
    %29 = vector.load %arg2[%c0_16, %28, %c2_17, %c0_18] : memref<1x18x18x4xbf16, #tpu.memory_space<vmem>>, vector<1x8x16x4xbf16>
    %30 = vector.shape_cast %29 : vector<1x8x16x4xbf16> to vector<8x16x4xbf16>
    %31 = vector.shape_cast %30 : vector<8x16x4xbf16> to vector<128x4xbf16>
    %c2_i32 = arith.constant 2 : i32
    %32 = arith.addi %1, %c2_i32 : i32
    %c0_19 = arith.constant 0 : index
    %33 = arith.index_cast %32 : i32 to index
    %c0_20 = arith.constant 0 : index
    %c0_21 = arith.constant 0 : index
    %34 = vector.load %arg2[%c0_19, %33, %c0_20, %c0_21] : memref<1x18x18x4xbf16, #tpu.memory_space<vmem>>, vector<1x8x16x4xbf16>
    %35 = vector.shape_cast %34 : vector<1x8x16x4xbf16> to vector<8x16x4xbf16>
    %36 = vector.shape_cast %35 : vector<8x16x4xbf16> to vector<128x4xbf16>
    %c2_i32_22 = arith.constant 2 : i32
    %37 = arith.addi %1, %c2_i32_22 : i32
    %c0_23 = arith.constant 0 : index
    %38 = arith.index_cast %37 : i32 to index
    %c1_24 = arith.constant 1 : index
    %c0_25 = arith.constant 0 : index
    %39 = vector.load %arg2[%c0_23, %38, %c1_24, %c0_25] : memref<1x18x18x4xbf16, #tpu.memory_space<vmem>>, vector<1x8x16x4xbf16>
    %40 = vector.shape_cast %39 : vector<1x8x16x4xbf16> to vector<8x16x4xbf16>
    %41 = vector.shape_cast %40 : vector<8x16x4xbf16> to vector<128x4xbf16>
    %c2_i32_26 = arith.constant 2 : i32
    %42 = arith.addi %1, %c2_i32_26 : i32
    %c0_27 = arith.constant 0 : index
    %43 = arith.index_cast %42 : i32 to index
    %c2_28 = arith.constant 2 : index
    %c0_29 = arith.constant 0 : index
    %44 = vector.load %arg2[%c0_27, %43, %c2_28, %c0_29] : memref<1x18x18x4xbf16, #tpu.memory_space<vmem>>, vector<1x8x16x4xbf16>
    %45 = vector.shape_cast %44 : vector<1x8x16x4xbf16> to vector<8x16x4xbf16>
    %46 = vector.shape_cast %45 : vector<8x16x4xbf16> to vector<128x4xbf16>
    %47 = tpu.concatenate %6, %11, %16, %21, %26, %31, %36, %41, %46 in 1 : vector<128x4xbf16>, vector<128x4xbf16>, vector<128x4xbf16>, vector<128x4xbf16>, vector<128x4xbf16>, vector<128x4xbf16>, vector<128x4xbf16>, vector<128x4xbf16>, vector<128x4xbf16> -> vector<128x36xbf16>
    %c0_30 = arith.constant 0 : index
    %c0_31 = arith.constant 0 : index
    %48 = vector.load %arg3[%c0_30, %c0_31] : memref<36x128xbf16, #tpu.memory_space<vmem>>, vector<36x128xbf16>
    %cst = arith.constant dense<0.000000e+00> : vector<128x128xf32>
    %49 = tpu.matmul %47, %48, %cst {dimension_numbers = #tpu.dot_dimension_numbers<[1], [0], [0], [1], [0, 0, 1, 1], [], []>} : vector<128x36xbf16>, vector<36x128xbf16>, vector<128x128xf32> -> vector<128x128xf32>
    %c0_32 = arith.constant 0 : index
    %c0_33 = arith.constant 0 : index
    %50 = vector.load %arg4[%c0_32, %c0_33] : memref<1x128xf32, #tpu.memory_space<vmem>>, vector<1x128xf32>
    %51 = vector.broadcast %50 : vector<1x128xf32> to vector<128x128xf32>
    %52 = arith.mulf %49, %51 : vector<128x128xf32>
    %c0_34 = arith.constant 0 : index
    %c0_35 = arith.constant 0 : index
    %53 = vector.load %arg5[%c0_34, %c0_35] : memref<1x128xf32, #tpu.memory_space<vmem>>, vector<1x128xf32>
    %54 = vector.broadcast %53 : vector<1x128xf32> to vector<128x128xf32>
    %55 = arith.addf %52, %54 : vector<128x128xf32>
    %cst_36 = arith.constant 0.000000e+00 : f32
    %56 = vector.broadcast %cst_36 : f32 to vector<128x128xf32>
    %57 = arith.maximumf %55, %56 : vector<128x128xf32>
    %58 = arith.truncf %57 : vector<128x128xf32> to vector<128x128xbf16>
    %c0_37 = arith.constant 0 : index
    %c0_38 = arith.constant 0 : index
    %c0_39 = arith.constant 0 : index
    %59 = vector.load %arg6[%c0_37, %c0_38, %c0_39] : memref<1x128x128xbf16, #tpu.memory_space<vmem>>, vector<1x128x128xbf16>
    %60 = vector.shape_cast %59 : vector<1x128x128xbf16> to vector<128x128xbf16>
    %61 = vector.shape_cast %58 : vector<128x128xbf16> to vector<1x128x128xbf16>
    tpu.vector_store %arg6[%c0_37, %c0_38, %c0_39], %61 {strides = array<i32>} : memref<1x128x128xbf16, #tpu.memory_space<vmem>>, vector<1x128x128xbf16>,
    return
  }
  func.func @transform_0(%arg0: i32, %arg1: i32) -> (i32, i32, i32, i32) {
    %c0_i32 = arith.constant 0 : i32
    %c0_i32_0 = arith.constant 0 : i32
    %c0_i32_1 = arith.constant 0 : i32
    %c0_i32_2 = arith.constant 0 : i32
    return %arg0, %c0_i32, %c0_i32_0, %c0_i32_1 : i32, i32, i32, i32
  }
  func.func @transform_1(%arg0: i32, %arg1: i32) -> (i32, i32) {
    %c0_i32 = arith.constant 0 : i32
    %c0_i32_0 = arith.constant 0 : i32
    %c0_i32_1 = arith.constant 0 : i32
    return %c0_i32, %c0_i32_0 : i32, i32
  }
  func.func @transform_2(%arg0: i32, %arg1: i32) -> (i32, i32) {
    %c0_i32 = arith.constant 0 : i32
    %c0_i32_0 = arith.constant 0 : i32
    %c0_i32_1 = arith.constant 0 : i32
    return %c0_i32, %c0_i32_0 : i32, i32
  }
  func.func @transform_3(%arg0: i32, %arg1: i32) -> (i32, i32) {
    %c0_i32 = arith.constant 0 : i32
    %c0_i32_0 = arith.constant 0 : i32
    %c0_i32_1 = arith.constant 0 : i32
    return %c0_i32, %c0_i32_0 : i32, i32
  }
  func.func @transform_4(%arg0: i32, %arg1: i32) -> (i32, i32, i32) {
    %c0_i32 = arith.constant 0 : i32
    %c0_i32_0 = arith.constant 0 : i32
    return %arg0, %arg1, %c0_i32 : i32, i32, i32
  }
}

</mosaic_0001>

<bundles_post_ra>
// kernel: up_conv_forward.3
= control target key start
LH: loop header
LB: loop body
LE: loop exit
PB: predicated region body
PF: predicated region fallthrough
CT: control target
= control target key end

     0   :  { %s2510_s15 = smov 0   ;;  %s2512_s16 = smov 0   ;;  %s3444_s0 = inlined_call_operand.vmem [shape: bf16[2,18,18,4], index: 0, kind: input, shape index: {}]   ;;  %s3445_s1 = inlined_call_operand.vmem [shape: bf16[36,128], index: 1, kind: input, shape index: {}]   ;;  %s3446_s2 = inlined_call_operand.vmem [shape: f32[1,128], index: 2, kind: input, shape index: {}]   ;;  %s3447_s3 = inlined_call_operand.vmem [shape: f32[1,128], index: 3, kind: input, shape index: {}]   ;;  %s3448_s4 = inlined_call_operand.vmem [shape: bf16[2,256,128], index: 4, kind: output, shape index: {}]  }
   0x1   :  { %s2514_s17 = smov 0   ;;  %s2516_s18 = smov 0  }
   0x2   :  { %s2518_s19 = smov 0  }
   0x3 LB: > { %s23_s20 = sadd.s32 1, %s2467_s17  ;;  %s26_s21 = sadd.s32 1, %s2471_s18  ;;  %s2475_s19 = sphi %s2518_s19, %s14_s19   ;;  %s2471_s18 = sphi %s2516_s18, %s3456_s18   ;;  %s2467_s17 = sphi %s2514_s17, %s3455_s17   ;;  %s2463_s16 = sphi %s2512_s16, %s3454_s16   ;;  %s2459_s15 = sphi %s2510_s15, %s3453_s15  }
   0x4   : > { %p24_p0 = scmp.ge.s32.totalorder %s23_s20, 2  ;;  %p2042_p1 = scmp.ge.s32.totalorder %s2475_s19, 1 }
   0x5   : > { %p176_p2 = scmp.lt.s32.totalorder %s2475_s19, 5 }
   0x6   : > { %s3458_s20 = smov (%p24_p0, %s23_s20), 0  ;;  %s3460_s21 = smov (!%p24_p0, %s26_s21), %s2471_s18 }
   0x7   : > { %p177_p3 = pnand %p2042_p1, %p176_p2  ;;  %p28_p4 = scmp.ge.s32.totalorder %s3460_s21, 2 }
   0x8   : > { %p206_p5 = scmp.lt.s32.totalorder (!%p177_p3), %s2463_s16, 1  ;;  %s2245_s22 = smul.u32 (!%p177_p3), 96, %s2459_s15  ;;  %vm477_vm0 = vcmask (!%p177_p3), 1042432   ;;  %vm478_vm1 = vcmask (!%p177_p3), 1046532   ;;  %vm250_vm3 = vsmask.f32 (!%p177_p3), 3328 }
   0x9   : > { %s3462_s21 = smov (%p28_p4, %s3460_s21), 0  ;;  %180 = sbr.rel (%p177_p3) target bundleno = 516 (0x204), region = 36 }
   0xa   : > { %s2477_s28 = smov (!%p177_p3), 12   ;;  %vm2597_vm2 = vmor (!%p177_p3), %vm477_vm0, %vm478_vm1  ;;  %vm251_vm4 = vsmask.f32 (!%p177_p3), 7440  ;;  %s2478_s29 = smov (!%p177_p3), 8   ;;  %vm1701_vm6 = vcmask (!%p177_p3), 1041408   ;;  %vm1520_vm7 = vcmask (!%p177_p3), 31744  }
   0xb   : > { %vm2663_vm5 = vmor (!%p177_p3), %vm250_vm3, %vm251_vm4  ;;  %s2479_s30 = smov (!%p177_p3), 4   ;;  %s2480_s5 = smov (!%p177_p3), 16   ;;  %vm1545_vm8 = vcmask (!%p177_p3), 64512   ;;  %vm1562_vm9 = vcmask (!%p177_p3), 97280   ;;  %vm1579_vm10 = vcmask (!%p177_p3), 130048   ;;  %vm1596_vm11 = vcmask (!%p177_p3), 162816  }
   0xc   : > { %s2481_s6 = smov (!%p177_p3), 20   ;;  %s2482_s7 = smov (!%p177_p3), 24   ;;  %vm1613_vm12 = vcmask (!%p177_p3), 195584   ;;  %vm1630_vm13 = vcmask (!%p177_p3), 228352   ;;  %vm1647_vm14 = vcmask (!%p177_p3), 261120   ;;  %vm1684_vm15 = vcmask (!%p177_p3), 293888  }
   0xd   : > { %s2483_s12 = smov (!%p177_p3), 28   ;;  %s2484_s13 = smov (!%p177_p3), 32  }
  0x10   : > { %s3464_s16 = smov (!%p206_p5, %s2463_s16), 1 }
  0x11   : > { %s2350_s23 = smul.u32 216, %s3464_s16 }
  0x13   : > { %s210_s26 = scalar_lea.vmem %s3444_s0, %s2350_s23  ;;  %s2044_s23 = sshll.u32 %s2459_s15, 4 }
  0x14   : > { %s2549_s27 = scalar_lea.vmem %s210_s26, %s2245_s22  ;;  %p214_p6 = scmp.lt.s32.totalorder %s2044_s23, 31 }
  0x15   : > { %v2068_v0 = vld [vmem:[%s2549_s27 + $0x3c] sm:$0xf]  ;;  %v2553_v1 = vld [vmem:[%s2549_s27 + $0x40] sm:$0xf]  ;;  %v2060_v2 = vld [vmem:[%s2549_s27 + $0xc] sm:$0xf] }
  0x16   : > { %v670_v3 = vshll.u32 %v2553_v1, 16  ;;  %v674_v4 = vshrl.u32 %v2553_v1, 16  ;;  %v2170_v5 = vcombine.low %v2068_v0, %v2553_v1  ;;  %v661_v6 = vshrl.u32 %v2068_v0, 16  ;;  %v2560_v7 = vld [vmem:[%s2549_s27 + $0x10] sm:$0xf]  ;;  %s3466_s23 = smov (!%p214_p6, %s2044_s23), 31 }
  0x17   : > { %v664_v8 = vshll.u32 %v2068_v0, 16  ;;  %v574_v9 = vshll.u32 %v2560_v7, 16  ;;  %v578_v10 = vshrl.u32 %v2560_v7, 16  ;;  %v2166_v11 = vcombine.low %v2060_v2, %v2560_v7  ;;  %v2070_v12 = vld [vmem:[%s2549_s27 + $0x48] sm:$0xf]  ;;  %s2045_s26 = sshll.u32 %s3464_s16, 5 }
  0x18   : > { %v2566_v13 = vrot.slane %v674_v4, 4  ;;  %1304 = vrot.lane.b32.xlu1 %v2170_v5, %s2477_s28  ;;  %v663_v14 = vrot.slane %v661_v6, 4  ;;  %v565_v15 = vshrl.u32 %v2060_v2, 16  ;;  %v568_v16 = vshll.u32 %v2060_v2, 16  ;;  %v2570_v17 = vld [vmem:[%s2549_s27 + $0x4c] sm:$0xf]  ;;  %s217_s15 = sadd.s32 %s2045_s26, %s3466_s23 }
  0x19   : > { %v666_v18 = vrot.slane %v664_v8, 5  ;;  %v2572_v19 = vrot.slane %v578_v10, 4  ;;  %1296 = vrot.lane.b32.xlu0 %v2166_v11, %s2477_s28  ;;  %v685_v20 = vshrl.u32 %v2070_v12, 16  ;;  %v688_v21 = vshll.u32 %v2070_v12, 16  ;;  %v2062_v22 = vld [vmem:[%s2549_s27 + $0x18] sm:$0xf] }
  0x1a   : > { %v567_v23 = vrot.slane %v565_v15, 4  ;;  %v570_v24 = vrot.slane %v568_v16, 5  ;;  %v698_v25 = vshrl.u32 %v2570_v17, 16  ;;  %v2171_v26 = vcombine.low %v2070_v12, %v2570_v17  ;;  %v2579_v27 = vld [vmem:[%s2549_s27 + $0x1c] sm:$0xf]  ;;  %s2046_s16 = sshll.u32 %s217_s15, 2 }
  0x1b   : > { %v667_v28 = vor.u32 %v666_v18, %v663_v14  ;;  %v2581_v29 = vrot.slane %v685_v20, 4  ;;  %v2583_v30 = vrot.slane %v688_v21, 5  ;;  %v589_v31 = vshrl.u32 %v2062_v22, 16  ;;  %v2586_v32 = vld [vmem:[%s2549_s27 + $0x34] sm:$0xf] }
  0x1c   : > { %v571_v33 = vor.u32 %v570_v24, %v567_v23  ;;  %1306 = vrot.lane.b32.xlu1 %v2171_v26, %s2477_s28  ;;  %v592_v34 = vshll.u32 %v2062_v22, 16  ;;  %v602_v35 = vshrl.u32 %v2579_v27, 16  ;;  %v2167_v36 = vcombine.low %v2062_v22, %v2579_v27  ;;  %v2592_v37 = vld [vmem:[%s2549_s27 + $0x38] sm:$0x1]  ;;  %v449_v38 = vld [vmem:[%s2549_s27 + $0x30] sm:$0xe] }
  0x1d   : > { %v2601_v40 = vrot.slane %v667_v28, 4  ;;  %v2603_v41 = vrot.slane %v589_v31, 4  ;;  %v2054_v42 = vrot.slane %v449_v38, 9  ;;  %v510_v43 = vrot.slane %v2586_v32, 5  ;;  %v2607_v44 = vld [vmem:[%s2549_s27 + $0x4] sm:$0xf] }
  0x1e   : > { %v2609_v45 = vrot.slane %v571_v33, 4  ;;  %v2611_v46 = vrot.slane %v592_v34, 5  ;;  %1298 = vrot.lane.b32.xlu0 %v2167_v36, %s2477_s28  ;;  %v513_v47 = vrot.slane %v2592_v37, 5  ;;  %v2616_v48 = vld [vmem:[%s2549_s27 + $0x8] sm:$0x1]  ;;  %v482_v49 = vrot.slane %v2607_v44, 5 }
  0x1f   : > { %v511_v50 = vsel %vm2597_vm2, %v2054_v42, %v510_v43  ;;  %v512_v51 = vrot.slane %v510_v43, 4  ;;  %v445_v52 = vld [vmem:[%s2549_s27] sm:$0xe]  ;;  %v485_v53 = vrot.slane %v2616_v48, 5  ;;  %v2627_v57 = vld [vmem:[%s2549_s27 + $0x44] sm:$0x1]  ;;  %v691_v59 = vor.u32 %v2583_v30, %v2581_v29 }
  0x20   : > { %v2624_v54 = vld [vmem:[%s2549_s27 + $0x40] sm:$0xf]  ;;  %v2050_v55 = vrot.slane %v445_v52, 9  ;;  %v484_v56 = vrot.slane %v482_v49, 4  ;;  %v450_v58 = vld [vmem:[%s2549_s27 + $0x3c] sm:$0xe]  ;;  %v595_v60 = vor.u32 %v2611_v46, %v2603_v41 }
  0x21   : > { %v514_v61 = vsel %vm2597_vm2, %v512_v51, %v513_v47  ;;  %v2055_v62 = vrot.slane %v450_v58, 9  ;;  %v517_v63 = vrot.slane %v2624_v54, 5  ;;  %v520_v0 = vrot.slane %v2627_v57, 5  ;;  %v229_v2 = vld [vmem:[%s2549_s27 + $0x10] sm:$0xf] }
  0x22   : > { %v2162_v4 = vcombine.low %v511_v50, %v514_v61  ;;  %v483_v5 = vsel %vm2597_vm2, %v2050_v55, %v482_v49  ;;  %v486_v6 = vsel %vm2597_vm2, %v484_v56, %v485_v53  ;;  %v243_v8 = vld [vmem:[%s2549_s27 + $0x14] sm:$0x1]  ;;  %v446_v10 = vld [vmem:[%s2549_s27 + $0xc] sm:$0xe]  ;;  %v489_v11 = vrot.slane %v229_v2, 5 }
  0x23   : > { %v2158_v12 = vcombine.low %v483_v5, %v486_v6  ;;  %v518_v14 = vsel %vm2597_vm2, %v2055_v62, %v517_v63  ;;  %v519_v15 = vrot.slane %v517_v63, 4  ;;  %v2051_v16 = vrot.slane %v446_v10, 9  ;;  %v228_v18 = vld [vmem:[%s2549_s27 + $0xc] sm:$0xf]  ;;  %v226_v33 = vld [vmem:[%s2549_s27] sm:$0xf] }
  0x24   : > { %1256 = vrot.lane.b32.xlu1 %v2162_v4, %s2478_s29  ;;  %v491_v20 = vrot.slane %v489_v11, 4  ;;  %v492_v21 = vrot.slane %v243_v8, 5  ;;  %v278_v22 = vshrl.u32 %v228_v18, 16  ;;  %v281_v23 = vshll.u32 %v228_v18, 16  ;;  %v236_v56 = vld [vmem:[%s2549_s27 + $0x3c] sm:$0xf] }
  0x25   : > { %1248 = vrot.lane.b32.xlu0 %v2158_v12, %s2478_s29  ;;  %v521_v24 = vsel %vm2597_vm2, %v519_v15, %v520_v0  ;;  %v490_v26 = vsel %vm2597_vm2, %v2051_v16, %v489_v11  ;;  %v287_v28 = vshll.u32 %v229_v2, 16  ;;  %v291_v31 = vshrl.u32 %v229_v2, 16 }
  0x26   : > { %v2163_v34 = vcombine.low %v518_v14, %v521_v24  ;;  %v493_v36 = vsel %vm2597_vm2, %v491_v20, %v492_v21  ;;  %v280_v38 = vrot.slane %v278_v22, 4  ;;  %v283_v42 = vrot.slane %v281_v23, 5  ;;  %v234_v20 = vld [vmem:[%s2549_s27 + $0x30] sm:$0xf] }
  0x27   : > { %v2159_v43 = vcombine.low %v490_v26, %v493_v36  ;;  %v289_v47 = vrot.slane %v287_v28, 5  ;;  %v293_v49 = vrot.slane %v291_v31, 4  ;;  %v297_v50 = vshll.u32 %v243_v8, 16 }
  0x28   : > { %1258 = vrot.lane.b32.xlu1 %v2163_v34, %s2478_s29  ;;  %v284_v51 = vor.u32 %v283_v42, %v280_v38  ;;  %v254_v52 = vshrl.u32 %v226_v33, 16  ;;  %v257_v53 = vshll.u32 %v226_v33, 16  ;;  %v263_v55 = vshll.u32 %v2607_v44, 16 }
  0x29   : > { %1250 = vrot.lane.b32.xlu0 %v2159_v43, %s2478_s29  ;;  %v294_v61 = vor.u32 %v293_v49, %v289_v47  ;;  %v299_v62 = vrot.slane %v297_v50, 5  ;;  %v267_v63 = vshrl.u32 %v2607_v44, 16  ;;  %v273_v0 = vshll.u32 %v2616_v48, 16 }
  0x2a   : > { %v285_v2 = vrot.slane %v284_v51, 4  ;;  %v256_v4 = vrot.slane %v254_v52, 4  ;;  %v259_v5 = vrot.slane %v257_v53, 5  ;;  %v265_v6 = vrot.slane %v263_v55, 5  ;;  %v2684_v52 = vld [vmem:[%s2549_s27 + $0x44] sm:$0x1] }
  0x2b   : > { %v295_v8 = vrot.slane %v294_v61, 4  ;;  %v269_v10 = vrot.slane %v267_v63, 4  ;;  %v275_v11 = vrot.slane %v273_v0, 5  ;;  %v374_v12 = vshrl.u32 %v236_v56, 16 }
  0x2c   : > { %v290_v14 = vsel %vm2663_vm5, %v285_v2, %v289_v47  ;;  %v260_v15 = vor.u32 %v259_v5, %v256_v4  ;;  %v377_v16 = vshll.u32 %v236_v56, 16  ;;  %v383_v18 = vshll.u32 %v2624_v54, 16 }
  0x2d   : > { %v300_v44 = vsel %vm2663_vm5, %v295_v8, %v299_v62  ;;  %v270_v48 = vor.u32 %v269_v10, %v265_v6  ;;  %v376_v21 = vrot.slane %v374_v12, 4  ;;  %v387_v22 = vshrl.u32 %v2624_v54, 16 }
  0x2e   : > { %v2151_v23 = vcombine.low %v290_v14, %v300_v44  ;;  %v261_v24 = vrot.slane %v260_v15, 4  ;;  %v379_v26 = vrot.slane %v377_v16, 5  ;;  %v385_v28 = vrot.slane %v383_v18, 5  ;;  %v2711_v44 = vld [vmem:[%s2549_s27 + $0x50] sm:$0x1] }
  0x2f   : > { %v271_v31 = vrot.slane %v270_v48, 4  ;;  %v389_v33 = vrot.slane %v387_v22, 4  ;;  %v393_v34 = vshll.u32 %v2627_v57, 16  ;;  %v350_v36 = vshrl.u32 %v234_v20, 16 }
  0x30   : > { %1210 = vrot.lane.b32.xlu1 %v2151_v23, %s2479_s30  ;;  %v266_v38 = vsel %vm2663_vm5, %v261_v24, %v265_v6  ;;  %v380_v42 = vor.u32 %v379_v26, %v376_v21  ;;  %v353_v43 = vshll.u32 %v234_v20, 16  ;;  %v359_v54 = vshll.u32 %v2586_v32, 16  ;;  %v2695_v6 = vld [vmem:[%s2549_s27 + $0x14] sm:$0x1] }
  0x31   : > { %v276_v47 = vsel %vm2663_vm5, %v271_v31, %v275_v11  ;;  %v390_v49 = vor.u32 %v389_v33, %v385_v28  ;;  %v395_v50 = vrot.slane %v393_v34, 5  ;;  %v352_v51 = vrot.slane %v350_v36, 4  ;;  %v2726_v31 = vld [vmem:[%s2549_s27 + $0x20] sm:$0x1]  ;;  %v2088_v34 = vld [vmem:[%s2549_s27 + $0x3c] sm:$0xe] }
  0x32   : > { %v2150_v57 = vcombine.low %v266_v38, %v276_v47  ;;  %v381_v53 = vrot.slane %v380_v42, 4  ;;  %v355_v55 = vrot.slane %v353_v43, 5  ;;  %v361_v56 = vrot.slane %v359_v54, 5  ;;  %v2084_v54 = vld [vmem:[%s2549_s27 + $0xc] sm:$0xe] }
  0x33   : > { %v391_v61 = vrot.slane %v390_v49, 4  ;;  %v363_v62 = vshrl.u32 %v2586_v32, 16  ;;  %v369_v63 = vshll.u32 %v2592_v37, 16  ;;  %v672_v0 = vrot.slane %v670_v3, 5 }
  0x34   : > { %1208 = vrot.lane.b32.xlu0 %v2150_v57, %s2479_s30  ;;  %v386_v2 = vsel %vm2663_vm5, %v381_v53, %v385_v28  ;;  %v356_v4 = vor.u32 %v355_v55, %v352_v51  ;;  %v680_v5 = vshll.u32 %v2684_v52, 16  ;;  %v576_v8 = vrot.slane %v574_v9, 5  ;;  %v2089_v53 = vld [vmem:[%s2549_s27 + $0x48] sm:$0xe] }
  0x35   : > { %v396_v32 = vsel %vm2663_vm5, %v391_v61, %v395_v50  ;;  %v365_v37 = vrot.slane %v363_v62, 4  ;;  %v371_v10 = vrot.slane %v369_v63, 5  ;;  %v673_v3 = vsel %vm2663_vm5, %v2601_v40, %v672_v0 }
  0x36   : > { %v2155_v11 = vcombine.low %v386_v2, %v396_v32  ;;  %v357_v12 = vrot.slane %v356_v4, 4  ;;  %v677_v14 = vor.u32 %v2566_v13, %v672_v0  ;;  %v682_v15 = vrot.slane %v680_v5, 5 }
  0x37   : > { %v366_v16 = vor.u32 %v365_v37, %v361_v56  ;;  %v577_v18 = vsel %vm2663_vm5, %v2609_v45, %v576_v8  ;;  %v581_v9 = vor.u32 %v2572_v19, %v576_v8  ;;  %v584_v20 = vshll.u32 %v2695_v6, 16 }
  0x38   : > { %1218 = vrot.lane.b32.xlu1 %v2155_v11, %s2479_s30  ;;  %v362_v40 = vsel %vm2663_vm5, %v357_v12, %v361_v56  ;;  %v678_v48 = vrot.slane %v677_v14, 4  ;;  %v692_v13 = vrot.slane %v691_v59, 4  ;;  %v694_v45 = vshll.u32 %v2570_v17, 16 }
  0x39   : > { %v367_v21 = vrot.slane %v366_v16, 4  ;;  %v582_v22 = vrot.slane %v581_v9, 4  ;;  %v586_v19 = vrot.slane %v584_v20, 5  ;;  %v700_v23 = vrot.slane %v698_v25, 4  ;;  %v2778_v20 = vld [vmem:[%s2549_s27 + $0x18] sm:$0xf] }
  0x3a   : > { %v683_v24 = vsel %vm2663_vm5, %v678_v48, %v682_v15  ;;  %v696_v26 = vrot.slane %v694_v45, 5  ;;  %v704_v28 = vshll.u32 %v2711_v44, 16  ;;  %v596_v29 = vrot.slane %v595_v60, 4  ;;  %v2771_v15 = vld [vmem:[%s2549_s27 + $0x4c] sm:$0xf] }
  0x3b   : > { %v372_v30 = vsel %vm2663_vm5, %v367_v21, %v371_v10  ;;  %v2178_v59 = vcombine.low %v673_v3, %v683_v24  ;;  %v587_v33 = vsel %vm2663_vm5, %v582_v22, %v586_v19  ;;  %v598_v25 = vshll.u32 %v2579_v27, 16  ;;  %v2784_v45 = vld [vmem:[%s2549_s27 + $0x1c] sm:$0xf] }
  0x3c   : > { %v2154_v36 = vcombine.low %v362_v40, %v372_v30  ;;  %v2174_v38 = vcombine.low %v577_v18, %v587_v33  ;;  %v697_v42 = vsel %vm2663_vm5, %v692_v13, %v696_v26  ;;  %v701_v43 = vor.u32 %v700_v23, %v696_v26  ;;  %v2794_v23 = vld [vmem:[%s2549_s27 + $0x54] sm:$0xf] }
  0x3d   : > { %1344 = vrot.lane.b32.xlu1 %v2178_v59, %s2480_s5  ;;  %v706_v41 = vrot.slane %v704_v28, 5  ;;  %v600_v46 = vrot.slane %v598_v25, 5  ;;  %v604_v60 = vrot.slane %v602_v35, 4  ;;  %v608_v47 = vshll.u32 %v2726_v31, 16 }
  0x3e   : > { %1216 = vrot.lane.b32.xlu0 %v2154_v36, %s2479_s30  ;;  %v702_v49 = vrot.slane %v701_v43, 4  ;;  %v2096_v50 = vrot.slane %v2088_v34, 9  ;;  %v818_v51 = vrot.slane %v2553_v1, 5  ;;  %v821_v57 = vrot.slane %v2684_v52, 5  ;;  %v2085_v1 = vld [vmem:[%s2549_s27 + $0x18] sm:$0xe] }
  0x3f   : > { %v601_v55 = vsel %vm2663_vm5, %v596_v29, %v600_v46  ;;  %v605_v56 = vor.u32 %v604_v60, %v600_v46  ;;  %v610_v61 = vrot.slane %v608_v47, 5  ;;  %v2092_v62 = vrot.slane %v2084_v54, 9  ;;  %v2800_v29 = vld [vmem:[%s2549_s27 + $0x58] sm:$0xf]  ;;  %v2806_v34 = vld [vmem:[%s2549_s27 + $0x24] sm:$0xf] }
  0x40   : > { %v707_v35 = vsel %vm2663_vm5, %v702_v49, %v706_v41  ;;  %v819_v63 = vsel %vm2597_vm2, %v2096_v50, %v818_v51  ;;  %v820_v0 = vrot.slane %v818_v51, 4  ;;  %v790_v2 = vrot.slane %v2560_v7, 5  ;;  %v2764_v7 = vld [vmem:[%s2549_s27 + $0x48] sm:$0xf]  ;;  %v2820_v49 = vld [vmem:[%s2549_s27 + $0x50] sm:$0x1] }
  0x41   : > { %v2179_v52 = vcombine.low %v697_v42, %v707_v35  ;;  %v606_v4 = vrot.slane %v605_v56, 4  ;;  %v793_v5 = vrot.slane %v2695_v6, 5  ;;  %v2097_v8 = vrot.slane %v2089_v53, 9  ;;  %v2815_v54 = vld [vmem:[%s2549_s27 + $0x28] sm:$0xf] }
  0x42   : > { %1336 = vrot.lane.b32.xlu0 %v2174_v38, %s2480_s5  ;;  %v822_v32 = vsel %vm2597_vm2, %v820_v0, %v821_v57  ;;  %v791_v37 = vsel %vm2597_vm2, %v2092_v62, %v790_v2  ;;  %v792_v10 = vrot.slane %v790_v2, 4  ;;  %v825_v3 = vrot.slane %v2570_v17, 5  ;;  %v2831_v35 = vld [vmem:[%s2549_s27 + $0x20] sm:$0x1] }
  0x43   : > { %1346 = vrot.lane.b32.xlu1 %v2179_v52, %s2480_s5  ;;  %v611_v6 = vsel %vm2663_vm5, %v606_v4, %v610_v61  ;;  %v2186_v11 = vcombine.low %v819_v63, %v822_v32  ;;  %v828_v12 = vrot.slane %v2711_v44, 5  ;;  %v2093_v14 = vrot.slane %v2085_v1, 9 }
  0x44   : > { %v2175_v16 = vcombine.low %v601_v55, %v611_v6  ;;  %v794_v18 = vsel %vm2597_vm2, %v792_v10, %v793_v5  ;;  %v826_v17 = vsel %vm2597_vm2, %v2097_v8, %v825_v3  ;;  %v827_v9 = vrot.slane %v825_v3, 4 }
  0x45   : > { %v2182_v40 = vcombine.low %v791_v37, %v794_v18  ;;  %v797_v48 = vrot.slane %v2579_v27, 5  ;;  %v800_v44 = vrot.slane %v2726_v31, 5  ;;  %v969_v13 = vshrl.u32 %v2764_v7, 16 }
  0x46   : > { %1338 = vrot.lane.b32.xlu0 %v2175_v16, %s2480_s5  ;;  %v829_v21 = vsel %vm2597_vm2, %v827_v9, %v828_v12  ;;  %v972_v22 = vshll.u32 %v2764_v7, 16  ;;  %v982_v19 = vshrl.u32 %v2771_v15, 16  ;;  %v2194_v27 = vcombine.low %v2764_v7, %v2771_v15 }
  0x47   : > { %1384 = vrot.lane.b32.xlu1 %v2186_v11, %s2481_s6  ;;  %v2187_v24 = vcombine.low %v826_v17, %v829_v21  ;;  %v798_v26 = vsel %vm2597_vm2, %v2093_v14, %v797_v48  ;;  %v799_v28 = vrot.slane %v797_v48, 4  ;;  %v971_v31 = vrot.slane %v969_v13, 4  ;;  %v2840_v11 = vld [vmem:[%s2549_s27 + $0x5c] sm:$0x1] }
  0x48   : > { %v974_v30 = vrot.slane %v972_v22, 5  ;;  %v873_v59 = vshrl.u32 %v2778_v20, 16  ;;  %v876_v33 = vshll.u32 %v2778_v20, 16  ;;  %v886_v25 = vshrl.u32 %v2784_v45, 16  ;;  %v2851_v22 = vld [vmem:[%s2549_s27 + $0x2c] sm:$0x1] }
  0x49   : > { %v801_v36 = vsel %vm2597_vm2, %v799_v28, %v800_v44  ;;  %v2190_v38 = vcombine.low %v2778_v20, %v2784_v45  ;;  %v993_v42 = vshrl.u32 %v2794_v23, 16  ;;  %v996_v43 = vshll.u32 %v2794_v23, 16 }
  0x4a   : > { %1376 = vrot.lane.b32.xlu0 %v2182_v40, %s2481_s6  ;;  %v2183_v41 = vcombine.low %v798_v26, %v801_v36  ;;  %v875_v46 = vrot.slane %v873_v59, 4  ;;  %v878_v60 = vrot.slane %v876_v33, 5  ;;  %v1006_v47 = vshrl.u32 %v2800_v29, 16  ;;  %v2420_v36 = vld [vmem:[%s3445_s1 + $0x8] sm:$0xff]  }
  0x4b   : > { %1386 = vrot.lane.b32.xlu1 %v2187_v24, %s2481_s6  ;;  %v995_v50 = vrot.slane %v993_v42, 4  ;;  %v998_v51 = vrot.slane %v996_v43, 5  ;;  %v2195_v57 = vcombine.low %v2794_v23, %v2800_v29  ;;  %v897_v53 = vshrl.u32 %v2806_v34, 16  ;;  %v2419_v23 = vld [vmem:[%s3445_s1] sm:$0xff]  }
  0x4c   : > { %v900_v55 = vshll.u32 %v2806_v34, 16  ;;  %v910_v56 = vshrl.u32 %v2815_v54, 16  ;;  %v2191_v61 = vcombine.low %v2806_v34, %v2815_v54  ;;  %v975_v62 = vor.u32 %v974_v30, %v971_v31  ;;  %v2130_v30 = vld [vmem:[%s2549_s27 + $0x48] sm:$0xe]  ;;  %2320 = vmatprep.subr.bf16.mxu0 %v2419_v23  ;;  %2342 = vmatprep.subr.bf16.mxu1 %v2419_v23 }
  0x4d   : > { %v899_v63 = vrot.slane %v897_v53, 4  ;;  %v978_v0 = vshll.u32 %v2771_v15, 16  ;;  %v984_v2 = vrot.slane %v982_v19, 4  ;;  %v988_v1 = vshll.u32 %v2820_v49, 16  ;;  %2321 = vmatpush3.bf16.msra.mxu0 %v2419_v23  ;;  %2345 = vmatpush3.bf16.msra.mxu1 %v2419_v23  ;;  %v2131_v23 = vld [vmem:[%s2549_s27 + $0x54] sm:$0xe] }
  0x4e   : > { %1378 = vrot.lane.b32.xlu0 %v2183_v41, %s2481_s6  ;;  %v902_v52 = vrot.slane %v900_v55, 5  ;;  %v976_v4 = vrot.slane %v975_v62, 4  ;;  %v879_v5 = vor.u32 %v878_v60, %v875_v46  ;;  %v882_v8 = vshll.u32 %v2784_v45, 16  ;;  %v2126_v46 = vld [vmem:[%s2549_s27 + $0x18] sm:$0xe]  ;;  %2322 = vmatprep.subr.bf16.mxu0 %v2420_v36 }
  0x4f   : > { %1432 = vrot.lane.b32.xlu1 %v2194_v27, %s2482_s7  ;;  %v980_v32 = vrot.slane %v978_v0, 5  ;;  %v990_v37 = vrot.slane %v988_v1, 5  ;;  %v888_v10 = vrot.slane %v886_v25, 4  ;;  %v892_v3 = vshll.u32 %v2831_v35, 16  ;;  %2343 = vmatprep.subr.bf16.mxu1 %v2420_v36  ;;  %v2880_v1 = vld [vmem:[%s2549_s27 + $0x4c] sm:$0xf] }
  0x50   : > { %v880_v7 = vrot.slane %v879_v5, 4  ;;  %v884_v6 = vrot.slane %v882_v8, 5  ;;  %v999_v12 = vor.u32 %v998_v51, %v995_v50  ;;  %v1002_v14 = vshll.u32 %v2800_v29, 16 }
  0x51   : > { %v981_v16 = vsel %vm2663_vm5, %v976_v4, %v980_v32  ;;  %v985_v18 = vor.u32 %v984_v2, %v980_v32  ;;  %v894_v17 = vrot.slane %v892_v3, 5  ;;  %v1008_v9 = vrot.slane %v1006_v47, 4  ;;  %2323 = vmatpush3.bf16.msra.mxu0 %v2420_v36  ;;  %v2891_v32 = vld [vmem:[%s2549_s27 + $0x50] sm:$0x1]  ;;  %2346 = vmatpush3.bf16.msra.mxu1 %v2420_v36 }
  0x52   : > { %1424 = vrot.lane.b32.xlu0 %v2190_v38, %s2482_s7  ;;  %v885_v20 = vsel %vm2663_vm5, %v880_v7, %v884_v6  ;;  %v889_v40 = vor.u32 %v888_v10, %v884_v6  ;;  %v1000_v48 = vrot.slane %v999_v12, 4  ;;  %v1004_v44 = vrot.slane %v1002_v14, 5  ;;  %v230_v10 = vld [vmem:[%s2549_s27 + $0x18] sm:$0xf]  ;;  %v2899_v12 = vld [vmem:[%s2549_s27 + $0x1c] sm:$0xf] }
  0x53   : > { %1434 = vrot.lane.b32.xlu1 %v2195_v57, %s2482_s7  ;;  %v986_v13 = vrot.slane %v985_v18, 4  ;;  %v1012_v21 = vshll.u32 %v2840_v11, 16  ;;  %v903_v19 = vor.u32 %v902_v52, %v899_v63  ;;  %v906_v27 = vshll.u32 %v2815_v54, 16  ;;  %v238_v57 = vld [vmem:[%s2549_s27 + $0x48] sm:$0xf] }
  0x54   : > { %v890_v24 = vrot.slane %v889_v40, 4  ;;  %v1005_v26 = vsel %vm2663_vm5, %v1000_v48, %v1004_v44  ;;  %v1009_v28 = vor.u32 %v1008_v9, %v1004_v44  ;;  %v912_v31 = vrot.slane %v910_v56, 4  ;;  %v2905_v9 = vld [vmem:[%s2549_s27 + $0x20] sm:$0x1] }
  0x55   : > { %v991_v59 = vsel %vm2663_vm5, %v986_v13, %v990_v37  ;;  %v1014_v33 = vrot.slane %v1012_v21, 5  ;;  %v904_v25 = vrot.slane %v903_v19, 4  ;;  %v908_v34 = vrot.slane %v906_v27, 5 }
  0x56   : > { %1426 = vrot.lane.b32.xlu0 %v2191_v61, %s2482_s7  ;;  %v2202_v38 = vcombine.low %v981_v16, %v991_v59  ;;  %v895_v42 = vsel %vm2663_vm5, %v890_v24, %v894_v17  ;;  %v1010_v43 = vrot.slane %v1009_v28, 4  ;;  %v916_v41 = vshll.u32 %v2851_v22, 16 }
  0x57   : > { %v2198_v60 = vcombine.low %v885_v20, %v895_v42  ;;  %v909_v47 = vsel %vm2663_vm5, %v904_v25, %v908_v34  ;;  %v913_v50 = vor.u32 %v912_v31, %v908_v34  ;;  %v2138_v51 = vrot.slane %v2130_v30, 9  ;;  %v2127_v34 = vld [vmem:[%s2549_s27 + $0x24] sm:$0xe] }
  0x58   : > { %1472 = vrot.lane.b32.xlu1 %v2202_v38, %s2483_s12  ;;  %v1015_v53 = vsel %vm2663_vm5, %v1010_v43, %v1014_v33  ;;  %v918_v55 = vrot.slane %v916_v41, 5  ;;  %v1126_v56 = vrot.slane %v2771_v15, 5  ;;  %v1129_v61 = vrot.slane %v2820_v49, 5 }
  0x59   : > { %v2203_v62 = vcombine.low %v1005_v26, %v1015_v53  ;;  %v914_v63 = vrot.slane %v913_v50, 4  ;;  %v2134_v0 = vrot.slane %v2126_v46, 9  ;;  %v1098_v2 = vrot.slane %v2784_v45, 5  ;;  %v2921_v50 = vld [vmem:[%s2549_s27 + $0x54] sm:$0xf] }
  0x5a   : > { %1464 = vrot.lane.b32.xlu0 %v2198_v60, %s2483_s12  ;;  %v1127_v52 = vsel %vm2597_vm2, %v2138_v51, %v1126_v56  ;;  %v1128_v4 = vrot.slane %v1126_v56, 4  ;;  %v1101_v15 = vrot.slane %v2831_v35, 5  ;;  %v398_v49 = vshrl.u32 %v238_v57, 16 }
  0x5b   : > { %v919_v5 = vsel %vm2663_vm5, %v914_v63, %v918_v55  ;;  %v1099_v8 = vsel %vm2597_vm2, %v2134_v0, %v1098_v2  ;;  %v1100_v45 = vrot.slane %v1098_v2, 4  ;;  %v401_v37 = vshll.u32 %v238_v57, 16  ;;  %v2930_v63 = vld [vmem:[%s2549_s27 + $0x58] sm:$0xf] }
  0x5c   : > { %1474 = vrot.lane.b32.xlu1 %v2203_v62, %s2483_s12  ;;  %v2199_v3 = vcombine.low %v909_v47, %v919_v5  ;;  %v1130_v35 = vsel %vm2597_vm2, %v1128_v4, %v1129_v61  ;;  %v400_v7 = vrot.slane %v398_v49, 4  ;;  %v407_v6 = vshll.u32 %v2880_v1, 16  ;;  %v2943_v5 = vld [vmem:[%s2549_s27 + $0x24] sm:$0xf] }
  0x5d   : > { %v2210_v14 = vcombine.low %v1127_v52, %v1130_v35  ;;  %v1102_v16 = vsel %vm2597_vm2, %v1100_v45, %v1101_v15  ;;  %v403_v18 = vrot.slane %v401_v37, 5  ;;  %v411_v17 = vshrl.u32 %v2880_v1, 16  ;;  %v2935_v52 = vld [vmem:[%s2549_s27 + $0x5c] sm:$0x1] }
  0x5e   : > { %1466 = vrot.lane.b32.xlu0 %v2199_v3, %s2483_s12  ;;  %v2206_v20 = vcombine.low %v1099_v8, %v1102_v16  ;;  %v409_v40 = vrot.slane %v407_v6, 5  ;;  %v417_v48 = vshll.u32 %v2891_v32, 16  ;;  %v302_v44 = vshrl.u32 %v230_v10, 16  ;;  %v2951_v3 = vld [vmem:[%s2549_s27 + $0x28] sm:$0xf] }
  0x5f   : > { %v404_v13 = vor.u32 %v403_v18, %v400_v7  ;;  %v413_v21 = vrot.slane %v411_v17, 4  ;;  %v305_v19 = vshll.u32 %v230_v10, 16  ;;  %v311_v27 = vshll.u32 %v2899_v12, 16  ;;  %v2958_v16 = vld [vmem:[%s2549_s27 + $0x2c] sm:$0x1] }
  0x60   : > { %1512 = vrot.lane.b32.xlu1 %v2210_v14, %s2484_s13  ;;  %v419_v24 = vrot.slane %v417_v48, 5  ;;  %v304_v26 = vrot.slane %v302_v44, 4  ;;  %v315_v28 = vshrl.u32 %v2899_v12, 16  ;;  %v321_v31 = vshll.u32 %v2905_v9, 16  ;;  %v451_v48 = vld [vmem:[%s2549_s27 + $0x48] sm:$0xe] }
  0x61   : > { %v405_v30 = vrot.slane %v404_v13, 4  ;;  %v414_v59 = vor.u32 %v413_v21, %v409_v40  ;;  %v307_v33 = vrot.slane %v305_v19, 5  ;;  %v313_v25 = vrot.slane %v311_v27, 5 }
  0x62   : > { %1504 = vrot.lane.b32.xlu0 %v2206_v20, %s2484_s13  ;;  %v317_v36 = vrot.slane %v315_v28, 4  ;;  %v323_v38 = vrot.slane %v321_v31, 5  ;;  %v2139_v42 = vrot.slane %v2131_v23, 9  ;;  %v1133_v43 = vrot.slane %v2800_v29, 5  ;;  %v447_v28 = vld [vmem:[%s2549_s27 + $0x18] sm:$0xe] }
  0x63   : > { %v410_v41 = vsel %vm2663_vm5, %v405_v30, %v409_v40  ;;  %v415_v46 = vrot.slane %v414_v59, 4  ;;  %v308_v60 = vor.u32 %v307_v33, %v304_v26  ;;  %v1136_v47 = vrot.slane %v2840_v11, 5 }
  0x64   : > { %v318_v51 = vor.u32 %v317_v36, %v313_v25  ;;  %v1134_v57 = vsel %vm2597_vm2, %v2139_v42, %v1133_v43  ;;  %v1135_v53 = vrot.slane %v1133_v43, 4  ;;  %v2135_v55 = vrot.slane %v2127_v34, 9 }
  0x65   : > { %v420_v29 = vsel %vm2663_vm5, %v415_v46, %v419_v24  ;;  %v309_v56 = vrot.slane %v308_v60, 4  ;;  %v1105_v61 = vrot.slane %v2815_v54, 5  ;;  %v1108_v62 = vrot.slane %v2851_v22, 5  ;;  %v452_v60 = vld [vmem:[%s2549_s27 + $0x54] sm:$0xe] }
  0x66   : > { %v2156_v11 = vcombine.low %v410_v41, %v420_v29  ;;  %v319_v0 = vrot.slane %v318_v51, 4  ;;  %v1137_v2 = vsel %vm2597_vm2, %v1135_v53, %v1136_v47  ;;  %v422_v4 = vshrl.u32 %v2921_v50, 16 }
  0x67   : > { %v314_v15 = vsel %vm2663_vm5, %v309_v56, %v313_v25  ;;  %v2211_v49 = vcombine.low %v1134_v57, %v1137_v2  ;;  %v1106_v54 = vsel %vm2597_vm2, %v2135_v55, %v1105_v61  ;;  %v1107_v22 = vrot.slane %v1105_v61, 4 }
  0x68   : > { %1220 = vrot.lane.b32.xlu1 %v2156_v11, %s2479_s30  ;;  %v324_v8 = vsel %vm2663_vm5, %v319_v0, %v323_v38  ;;  %v424_v45 = vrot.slane %v422_v4, 4  ;;  %v425_v37 = vshll.u32 %v2921_v50, 16  ;;  %v431_v10 = vshll.u32 %v2930_v63, 16 }
  0x69   : > { %v2152_v35 = vcombine.low %v314_v15, %v324_v8  ;;  %v1109_v7 = vsel %vm2597_vm2, %v1107_v22, %v1108_v62  ;;  %v435_v6 = vshrl.u32 %v2930_v63, 16  ;;  %v441_v14 = vshll.u32 %v2935_v52, 16 }
  0x6a   : > { %v2207_v18 = vcombine.low %v1106_v54, %v1109_v7  ;;  %v427_v17 = vrot.slane %v425_v37, 5  ;;  %v433_v20 = vrot.slane %v431_v10, 5  ;;  %v326_v40 = vshrl.u32 %v2943_v5, 16  ;;  %v2989_v54 = vld [vmem:[%s2549_s27 + $0x54] sm:$0xf] }
  0x6b   : > { %1212 = vrot.lane.b32.xlu0 %v2152_v35, %s2479_s30  ;;  %v437_v44 = vrot.slane %v435_v6, 4  ;;  %v443_v13 = vrot.slane %v441_v14, 5  ;;  %v329_v21 = vshll.u32 %v2943_v5, 16  ;;  %v335_v19 = vshll.u32 %v2951_v3, 16  ;;  %v2997_v37 = vld [vmem:[%s2549_s27 + $0x58] sm:$0xf] }
  0x6c   : > { %1514 = vrot.lane.b32.xlu1 %v2211_v49, %s2484_s13  ;;  %v428_v27 = vor.u32 %v427_v17, %v424_v45  ;;  %v328_v23 = vrot.slane %v326_v40, 4  ;;  %v339_v24 = vshrl.u32 %v2951_v3, 16  ;;  %v345_v26 = vshll.u32 %v2958_v16, 16  ;;  %v3004_v14 = vld [vmem:[%s2549_s27 + $0x24] sm:$0xf] }
  0x6d   : > { %v438_v31 = vor.u32 %v437_v44, %v433_v20  ;;  %v331_v30 = vrot.slane %v329_v21, 5  ;;  %v337_v59 = vrot.slane %v335_v19, 5  ;;  %v2056_v33 = vrot.slane %v451_v48, 9 }
  0x6e   : > { %v429_v25 = vrot.slane %v428_v27, 4  ;;  %v341_v34 = vrot.slane %v339_v24, 4  ;;  %v347_v36 = vrot.slane %v345_v26, 5  ;;  %v524_v38 = vrot.slane %v2880_v1, 5  ;;  %v2074_v24 = vld [vmem:[%s2549_s27 + $0x60] sm:$0xf] }
  0x6f   : > { %1506 = vrot.lane.b32.xlu0 %v2207_v18, %s2484_s13  ;;  %v439_v42 = vrot.slane %v438_v31, 4  ;;  %v332_v43 = vor.u32 %v331_v30, %v328_v23  ;;  %v527_v41 = vrot.slane %v2891_v32, 5  ;;  %v2052_v46 = vrot.slane %v447_v28, 9  ;;  %v448_v32 = vld [vmem:[%s2549_s27 + $0x24] sm:$0xe] }
  0x70   : > { %v434_v47 = vsel %vm2663_vm5, %v429_v25, %v433_v20  ;;  %v342_v51 = vor.u32 %v341_v34, %v337_v59  ;;  %v525_v57 = vsel %vm2597_vm2, %v2056_v33, %v524_v38  ;;  %v526_v53 = vrot.slane %v524_v38, 4  ;;  %v3025_v26 = vld [vmem:[%s2549_s27 + $0x64] sm:$0xf]  ;;  %v3031_v33 = vld [vmem:[%s2549_s27 + $0x30] sm:$0xf] }
  0x71   : > { %v444_v1 = vsel %vm2663_vm5, %v439_v42, %v443_v13  ;;  %v333_v55 = vrot.slane %v332_v43, 4  ;;  %v496_v29 = vrot.slane %v2899_v12, 5  ;;  %v499_v56 = vrot.slane %v2905_v9, 5  ;;  %v3015_v13 = vld [vmem:[%s2549_s27 + $0x28] sm:$0xf] }
  0x72   : > { %v2157_v61 = vcombine.low %v434_v47, %v444_v1  ;;  %v343_v62 = vrot.slane %v342_v51, 4  ;;  %v528_v11 = vsel %vm2597_vm2, %v526_v53, %v527_v41  ;;  %v2057_v0 = vrot.slane %v452_v60, 9  ;;  %v3034_v25 = vld [vmem:[%s2549_s27 + $0x34] sm:$0xf]  ;;  %v3047_v1 = vld [vmem:[%s2549_s27 + $0x5c] sm:$0x1] }
  0x73   : > { %v338_v2 = vsel %vm2663_vm5, %v333_v55, %v337_v59  ;;  %v2164_v4 = vcombine.low %v525_v57, %v528_v11  ;;  %v497_v15 = vsel %vm2597_vm2, %v2052_v46, %v496_v29  ;;  %v498_v49 = vrot.slane %v496_v29, 4 }
  0x74   : > { %1222 = vrot.lane.b32.xlu1 %v2157_v61, %s2479_s30  ;;  %v348_v9 = vsel %vm2663_vm5, %v343_v62, %v347_v36  ;;  %v531_v22 = vrot.slane %v2930_v63, 5  ;;  %v534_v8 = vrot.slane %v2935_v52, 5  ;;  %v2053_v45 = vrot.slane %v448_v32, 9  ;;  %v3052_v61 = vld [vmem:[%s2549_s27 + $0x2c] sm:$0x1] }
  0x75   : > { %v2153_v10 = vcombine.low %v338_v2, %v348_v9  ;;  %v500_v35 = vsel %vm2597_vm2, %v498_v49, %v499_v56  ;;  %v503_v7 = vrot.slane %v2951_v3, 5  ;;  %v506_v6 = vrot.slane %v2958_v16, 5 }
  0x76   : > { %v2160_v18 = vcombine.low %v497_v15, %v500_v35  ;;  %v532_v52 = vsel %vm2597_vm2, %v2057_v0, %v531_v22  ;;  %v533_v17 = vrot.slane %v531_v22, 4  ;;  %v709_v20 = vshrl.u32 %v2989_v54, 16 }
  0x77   : > { %1214 = vrot.lane.b32.xlu0 %v2153_v10, %s2479_s30  ;;  %v504_v40 = vsel %vm2597_vm2, %v2053_v45, %v503_v7  ;;  %v505_v48 = vrot.slane %v503_v7, 4  ;;  %v712_v16 = vshll.u32 %v2989_v54, 16  ;;  %v722_v44 = vshrl.u32 %v2997_v37, 16 }
  0x78   : > { %1260 = vrot.lane.b32.xlu1 %v2164_v4, %s2478_s29  ;;  %v535_v21 = vsel %vm2597_vm2, %v533_v17, %v534_v8  ;;  %v711_v19 = vrot.slane %v709_v20, 4  ;;  %v2172_v27 = vcombine.low %v2989_v54, %v2997_v37  ;;  %v613_v23 = vshrl.u32 %v3004_v14, 16 }
  0x79   : > { %v2165_v28 = vcombine.low %v532_v52, %v535_v21  ;;  %v507_v31 = vsel %vm2597_vm2, %v505_v48, %v506_v6  ;;  %v714_v30 = vrot.slane %v712_v16, 5  ;;  %v616_v59 = vshll.u32 %v3004_v14, 16  ;;  %v3061_v6 = vld [vmem:[%s2549_s27 + $0x68] sm:$0x1] }
  0x7a   : > { %v2161_v34 = vcombine.low %v504_v40, %v507_v31  ;;  %v615_v36 = vrot.slane %v613_v23, 4  ;;  %v626_v38 = vshrl.u32 %v3015_v13, 16  ;;  %v2168_v42 = vcombine.low %v3004_v14, %v3015_v13 }
  0x7b   : > { %1252 = vrot.lane.b32.xlu0 %v2160_v18, %s2478_s29  ;;  %v618_v43 = vrot.slane %v616_v59, 5  ;;  %v733_v41 = vshrl.u32 %v2074_v24, 16  ;;  %v736_v46 = vshll.u32 %v2074_v24, 16  ;;  %v746_v60 = vshrl.u32 %v3025_v26, 16 }
  0x7c   : > { %1262 = vrot.lane.b32.xlu1 %v2165_v28, %s2478_s29  ;;  %v2173_v47 = vcombine.low %v2074_v24, %v3025_v26  ;;  %v637_v51 = vshrl.u32 %v3031_v33, 16  ;;  %v640_v57 = vshll.u32 %v3031_v33, 16  ;;  %v650_v53 = vshrl.u32 %v3034_v25, 16 }
  0x7d   : > { %v735_v55 = vrot.slane %v733_v41, 4  ;;  %v738_v29 = vrot.slane %v736_v46, 5  ;;  %v2169_v56 = vcombine.low %v3031_v33, %v3034_v25  ;;  %v715_v32 = vor.u32 %v714_v30, %v711_v19  ;;  %v2090_v33 = vld [vmem:[%s2549_s27 + $0x54] sm:$0xe] }
  0x7e   : > { %v639_v62 = vrot.slane %v637_v51, 4  ;;  %v642_v11 = vrot.slane %v640_v57, 5  ;;  %v718_v0 = vshll.u32 %v2997_v37, 16  ;;  %v724_v2 = vrot.slane %v722_v44, 4 }
  0x7f   : > { %1254 = vrot.lane.b32.xlu0 %v2161_v34, %s2478_s29  ;;  %v716_v4 = vrot.slane %v715_v32, 4  ;;  %v728_v15 = vshll.u32 %v3047_v1, 16  ;;  %v619_v49 = vor.u32 %v618_v43, %v615_v36  ;;  %v622_v54 = vshll.u32 %v3015_v13, 16 }
  0x80   : > { %1308 = vrot.lane.b32.xlu1 %v2172_v27, %s2477_s28  ;;  %v720_v9 = vrot.slane %v718_v0, 5  ;;  %v628_v22 = vrot.slane %v626_v38, 4  ;;  %v632_v8 = vshll.u32 %v3052_v61, 16  ;;  %v739_v45 = vor.u32 %v738_v29, %v735_v55  ;;  %v3072_v27 = vld [vmem:[%s2549_s27 + $0x38] sm:$0x1] }
  0x81   : > { %v730_v10 = vrot.slane %v728_v15, 5  ;;  %v620_v35 = vrot.slane %v619_v49, 4  ;;  %v624_v7 = vrot.slane %v622_v54, 5  ;;  %v742_v14 = vshll.u32 %v3025_v26, 16  ;;  %v2091_v29 = vld [vmem:[%s2549_s27 + $0x60] sm:$0xe] }
  0x82   : > { %v721_v18 = vsel %vm2663_vm5, %v716_v4, %v720_v9  ;;  %v725_v52 = vor.u32 %v724_v2, %v720_v9  ;;  %v634_v17 = vrot.slane %v632_v8, 5  ;;  %v740_v20 = vrot.slane %v739_v45, 4  ;;  %v2087_v49 = vld [vmem:[%s2549_s27 + $0x30] sm:$0xe] }
  0x83   : > { %1300 = vrot.lane.b32.xlu0 %v2168_v42, %s2477_s28  ;;  %v625_v40 = vsel %vm2663_vm5, %v620_v35, %v624_v7  ;;  %v629_v48 = vor.u32 %v628_v22, %v624_v7  ;;  %v744_v16 = vrot.slane %v742_v14, 5  ;;  %v748_v44 = vrot.slane %v746_v60, 4 }
  0x84   : > { %1310 = vrot.lane.b32.xlu1 %v2173_v47, %s2477_s28  ;;  %v726_v21 = vrot.slane %v725_v52, 4  ;;  %v752_v19 = vshll.u32 %v3061_v6, 16  ;;  %v643_v23 = vor.u32 %v642_v11, %v639_v62  ;;  %v646_v24 = vshll.u32 %v3034_v25, 16  ;;  %v2086_v47 = vld [vmem:[%s2549_s27 + $0x24] sm:$0xe] }
  0x85   : > { %v630_v28 = vrot.slane %v629_v48, 4  ;;  %v745_v31 = vsel %vm2663_vm5, %v740_v20, %v744_v16  ;;  %v749_v30 = vor.u32 %v748_v44, %v744_v16  ;;  %v652_v59 = vrot.slane %v650_v53, 4  ;;  %v3114_v52 = vld [vmem:[%s2549_s27 + $0x64] sm:$0xf]  ;;  %v3121_v48 = vld [vmem:[%s2549_s27 + $0x30] sm:$0xf] }
  0x86   : > { %v731_v34 = vsel %vm2663_vm5, %v726_v21, %v730_v10  ;;  %v754_v36 = vrot.slane %v752_v19, 5  ;;  %v644_v38 = vrot.slane %v643_v23, 4  ;;  %v648_v42 = vrot.slane %v646_v24, 5  ;;  %v3105_v10 = vld [vmem:[%s2549_s27 + $0x60] sm:$0xf] }
  0x87   : > { %1302 = vrot.lane.b32.xlu0 %v2169_v56, %s2477_s28  ;;  %v2180_v43 = vcombine.low %v721_v18, %v731_v34  ;;  %v635_v41 = vsel %vm2663_vm5, %v630_v28, %v634_v17  ;;  %v750_v46 = vrot.slane %v749_v30, 4  ;;  %v656_v60 = vshll.u32 %v3072_v27, 16  ;;  %v3128_v19 = vld [vmem:[%s2549_s27 + $0x34] sm:$0xf]  ;;  %v3137_v30 = vld [vmem:[%s2549_s27 + $0x6c] sm:$0xf] }
  0x88   : > { %v2176_v51 = vcombine.low %v625_v40, %v635_v41  ;;  %v649_v57 = vsel %vm2663_vm5, %v644_v38, %v648_v42  ;;  %v653_v53 = vor.u32 %v652_v59, %v648_v42  ;;  %v2098_v55 = vrot.slane %v2090_v33, 9  ;;  %v3143_v34 = vld [vmem:[%s2549_s27 + $0x70] sm:$0xf]  ;;  %v3149_v41 = vld [vmem:[%s2549_s27 + $0x3c] sm:$0xf] }
  0x89   : > { %1348 = vrot.lane.b32.xlu1 %v2180_v43, %s2480_s5  ;;  %v755_v56 = vsel %vm2663_vm5, %v750_v46, %v754_v36  ;;  %v658_v32 = vrot.slane %v656_v60, 5  ;;  %v832_v62 = vrot.slane %v2997_v37, 5  ;;  %v835_v11 = vrot.slane %v3047_v1, 5 }
  0x8a   : > { %v2181_v0 = vcombine.low %v745_v31, %v755_v56  ;;  %v654_v2 = vrot.slane %v653_v53, 4  ;;  %v2094_v4 = vrot.slane %v2086_v47, 9  ;;  %v804_v15 = vrot.slane %v3015_v13, 5  ;;  %v3107_v35 = vpop.permute.xlu1 %1304 }
  0x8b   : > { %1340 = vrot.lane.b32.xlu0 %v2176_v51, %s2480_s5  ;;  %v833_v54 = vsel %vm2597_vm2, %v2098_v55, %v832_v62  ;;  %v834_v9 = vrot.slane %v832_v62, 4  ;;  %v807_v22 = vrot.slane %v3052_v61, 5  ;;  %v2099_v8 = vrot.slane %v2091_v29, 9  ;;  %v3151_v46 = vpop.permute.xlu0 %1296  ;;  %v3163_v55 = vld [vmem:[%s2549_s27 + $0x40] sm:$0xf] }
  0x8c   : > { %v659_v37 = vsel %vm2663_vm5, %v654_v2, %v658_v32  ;;  %v805_v1 = vsel %vm2597_vm2, %v2094_v4, %v804_v15  ;;  %v806_v45 = vrot.slane %v804_v15, 4  ;;  %v839_v13 = vrot.slane %v3025_v26, 5 }
  0x8d   : > { %1350 = vrot.lane.b32.xlu1 %v2181_v0, %s2480_s5  ;;  %v2177_v7 = vcombine.low %v649_v57, %v659_v37  ;;  %v836_v61 = vsel %vm2597_vm2, %v834_v9, %v835_v11  ;;  %v842_v14 = vrot.slane %v3061_v6, 5  ;;  %v2095_v18 = vrot.slane %v2087_v49, 9  ;;  %v3167_v11 = vld [vmem:[%s2549_s27 + $0x68] sm:$0x1] }
  0x8e   : > { %v2188_v17 = vcombine.low %v833_v54, %v836_v61  ;;  %v808_v26 = vsel %vm2597_vm2, %v806_v45, %v807_v22  ;;  %v840_v20 = vsel %vm2597_vm2, %v2099_v8, %v839_v13  ;;  %v841_v40 = vrot.slane %v839_v13, 4  ;;  %v3153_v60 = vpop.permute.xlu1 %1306  ;;  %v3178_v8 = vld [vmem:[%s2549_s27 + $0x38] sm:$0x1] }
  0x8f   : > { %1342 = vrot.lane.b32.xlu0 %v2177_v7, %s2480_s5  ;;  %v2184_v16 = vcombine.low %v805_v1, %v808_v26  ;;  %v811_v6 = vrot.slane %v3034_v25, 5  ;;  %v814_v44 = vrot.slane %v3072_v27, 5  ;;  %v1017_v21 = vshrl.u32 %v3105_v10, 16  ;;  %s3401_s5 = scalar_lea.vmem %s3448_s4, %s2046_s16 }
  0x90   : > { %v843_v23 = vsel %vm2597_vm2, %v841_v40, %v842_v14  ;;  %v1020_v24 = vshll.u32 %v3105_v10, 16  ;;  %v1030_v28 = vshrl.u32 %v3114_v52, 16  ;;  %v2196_v31 = vcombine.low %v3105_v10, %v3114_v52 }
  0x91   : > { %1388 = vrot.lane.b32.xlu1 %v2188_v17, %s2481_s6  ;;  %v2189_v25 = vcombine.low %v840_v20, %v843_v23  ;;  %v812_v27 = vsel %vm2597_vm2, %v2095_v18, %v811_v6  ;;  %v813_v59 = vrot.slane %v811_v6, 4  ;;  %v1019_v33 = vrot.slane %v1017_v21, 4  ;;  %v3184_v18 = vpop.permute.xlu0 %1298 }
  0x92   : > { %v1022_v36 = vrot.slane %v1020_v24, 5  ;;  %v921_v38 = vshrl.u32 %v3121_v48, 16  ;;  %v924_v42 = vshll.u32 %v3121_v48, 16  ;;  %v934_v43 = vshrl.u32 %v3128_v19, 16 }
  0x93   : > { %1380 = vrot.lane.b32.xlu0 %v2184_v16, %s2481_s6  ;;  %v815_v47 = vsel %vm2597_vm2, %v813_v59, %v814_v44  ;;  %v2192_v51 = vcombine.low %v3121_v48, %v3128_v19  ;;  %v1041_v57 = vshrl.u32 %v3137_v30, 16  ;;  %v1044_v53 = vshll.u32 %v3137_v30, 16  ;;  %v3191_v44 = vld [vmem:[%s2549_s27 + $0x74] sm:$0x1] }
  0x94   : > { %v2185_v29 = vcombine.low %v812_v27, %v815_v47  ;;  %v923_v56 = vrot.slane %v921_v38, 4  ;;  %v926_v32 = vrot.slane %v924_v42, 5  ;;  %v1054_v62 = vshrl.u32 %v3143_v34, 16  ;;  %v3202_v42 = vld [vmem:[%s2549_s27 + $0x44] sm:$0x1] }
  0x95   : > { %1390 = vrot.lane.b32.xlu1 %v2189_v25, %s2481_s6  ;;  %v1043_v0 = vrot.slane %v1041_v57, 4  ;;  %v1046_v2 = vrot.slane %v1044_v53, 5  ;;  %v2197_v4 = vcombine.low %v3137_v30, %v3143_v34  ;;  %v945_v15 = vshrl.u32 %v3149_v41, 16 }
  0x96   : > { %v948_v49 = vshll.u32 %v3149_v41, 16  ;;  %v958_v54 = vshrl.u32 %v3163_v55, 16  ;;  %v2193_v9 = vcombine.low %v3149_v41, %v3163_v55  ;;  %v1023_v22 = vor.u32 %v1022_v36, %v1019_v33  ;;  %v3186_v17 = vpop.permute.xlu1 %1256 }
  0x97   : > { %1382 = vrot.lane.b32.xlu0 %v2185_v29, %s2481_s6  ;;  %v947_v37 = vrot.slane %v945_v15, 4  ;;  %v1026_v1 = vshll.u32 %v3114_v52, 16  ;;  %v1032_v45 = vrot.slane %v1030_v28, 4  ;;  %v1036_v13 = vshll.u32 %v3167_v11, 16  ;;  %v2132_v29 = vld [vmem:[%s2549_s27 + $0x60] sm:$0xe] }
  0x98   : > { %v950_v10 = vrot.slane %v948_v49, 5  ;;  %v1024_v7 = vrot.slane %v1023_v22, 4  ;;  %v927_v61 = vor.u32 %v926_v32, %v923_v56  ;;  %v930_v14 = vshll.u32 %v3128_v19, 16  ;;  %v3208_v56 = vpop.permute.xlu0 %1248 }
  0x99   : > { %1436 = vrot.lane.b32.xlu1 %v2196_v31, %s2482_s7  ;;  %v1028_v26 = vrot.slane %v1026_v1, 5  ;;  %v1038_v20 = vrot.slane %v1036_v13, 5  ;;  %v936_v40 = vrot.slane %v934_v43, 4  ;;  %v940_v48 = vshll.u32 %v3178_v8, 16 }
  0x9a   : > { %v928_v16 = vrot.slane %v927_v61, 4  ;;  %v932_v6 = vrot.slane %v930_v14, 5  ;;  %v1047_v21 = vor.u32 %v1046_v2, %v1043_v0  ;;  %v1050_v23 = vshll.u32 %v3143_v34, 16  ;;  %v3210_v32 = vpop.permute.xlu1 %1258 }
  0x9b   : > { %1428 = vrot.lane.b32.xlu0 %v2192_v51, %s2482_s7  ;;  %v1029_v24 = vsel %vm2663_vm5, %v1024_v7, %v1028_v26  ;;  %v1033_v28 = vor.u32 %v1032_v45, %v1028_v26  ;;  %v942_v31 = vrot.slane %v940_v48, 5  ;;  %v1056_v30 = vrot.slane %v1054_v62, 4 }
  0x9c   : > { %v933_v25 = vsel %vm2663_vm5, %v928_v16, %v932_v6  ;;  %v937_v27 = vor.u32 %v936_v40, %v932_v6  ;;  %v1048_v59 = vrot.slane %v1047_v21, 4  ;;  %v1052_v33 = vrot.slane %v1050_v23, 5  ;;  %v2129_v6 = vld [vmem:[%s2549_s27 + $0x3c] sm:$0xe] }
  0x9d   : > { %1438 = vrot.lane.b32.xlu1 %v2197_v4, %s2482_s7  ;;  %v1034_v36 = vrot.slane %v1033_v28, 4  ;;  %v1060_v38 = vshll.u32 %v3191_v44, 16  ;;  %v951_v43 = vor.u32 %v950_v10, %v947_v37  ;;  %v954_v41 = vshll.u32 %v3163_v55, 16  ;;  %v2128_v37 = vld [vmem:[%s2549_s27 + $0x30] sm:$0xe] }
  0x9e   : > { %v938_v47 = vrot.slane %v937_v27, 4  ;;  %v1053_v51 = vsel %vm2663_vm5, %v1048_v59, %v1052_v33  ;;  %v1057_v57 = vor.u32 %v1056_v30, %v1052_v33  ;;  %v960_v53 = vrot.slane %v958_v54, 4  ;;  %v2133_v10 = vld [vmem:[%s2549_s27 + $0x6c] sm:$0xe] }
  0x9f   : > { %1430 = vrot.lane.b32.xlu0 %v2193_v9, %s2482_s7  ;;  %v1039_v62 = vsel %vm2663_vm5, %v1034_v36, %v1038_v20  ;;  %v1062_v0 = vrot.slane %v1060_v38, 5  ;;  %v952_v2 = vrot.slane %v951_v43, 4  ;;  %v956_v4 = vrot.slane %v954_v41, 5 }
  0xa0   : > { %v2204_v15 = vcombine.low %v1029_v24, %v1039_v62  ;;  %v943_v49 = vsel %vm2663_vm5, %v938_v47, %v942_v31  ;;  %v1058_v22 = vrot.slane %v1057_v57, 4  ;;  %v964_v54 = vshll.u32 %v3202_v42, 16  ;;  %v3233_v31 = vpop.permute.xlu0 %1250 }
  0xa1   : > { %v2200_v1 = vcombine.low %v933_v25, %v943_v49  ;;  %v957_v45 = vsel %vm2663_vm5, %v952_v2, %v956_v4  ;;  %v961_v9 = vor.u32 %v960_v53, %v956_v4  ;;  %v2140_v13 = vrot.slane %v2132_v29, 9 }
  0xa2   : > { %1476 = vrot.lane.b32.xlu1 %v2204_v15, %s2483_s12  ;;  %v1063_v7 = vsel %vm2663_vm5, %v1058_v22, %v1062_v0  ;;  %v966_v61 = vrot.slane %v964_v54, 5  ;;  %v1140_v14 = vrot.slane %v3114_v52, 5  ;;  %v1143_v26 = vrot.slane %v3167_v11, 5  ;;  %v3235_v52 = vpop.permute.xlu1 %1210 }
  0xa3   : > { %1468 = vrot.lane.b32.xlu0 %v2200_v1, %s2483_s12  ;;  %v2205_v20 = vcombine.low %v1053_v51, %v1063_v7  ;;  %v962_v40 = vrot.slane %v961_v9, 4  ;;  %v2136_v48 = vrot.slane %v2128_v37, 9  ;;  %v1112_v16 = vrot.slane %v3128_v19, 5 }
  0xa4   : > { %v1141_v21 = vsel %vm2597_vm2, %v2140_v13, %v1140_v14  ;;  %v1142_v23 = vrot.slane %v1140_v14, 4  ;;  %v1115_v24 = vrot.slane %v3178_v8, 5  ;;  %v2141_v28 = vrot.slane %v2133_v10, 9  ;;  %v2426_v13 = vld [vmem:[%s2549_s27 + $0x34] sm:$0xf] }
  0xa5   : > { %v967_v11 = vsel %vm2663_vm5, %v962_v40, %v966_v61  ;;  %v1113_v30 = vsel %vm2597_vm2, %v2136_v48, %v1112_v16  ;;  %v1114_v25 = vrot.slane %v1112_v16, 4  ;;  %v1147_v19 = vrot.slane %v3143_v34, 5  ;;  %v2427_v10 = vld [vmem:[%s2549_s27 + $0x30] sm:$0xf] }
  0xa6   : > { %1478 = vrot.lane.b32.xlu1 %v2205_v20, %s2483_s12  ;;  %v2201_v27 = vcombine.low %v957_v45, %v967_v11  ;;  %v1144_v8 = vsel %vm2597_vm2, %v1142_v23, %v1143_v26  ;;  %v1150_v59 = vrot.slane %v3191_v44, 5  ;;  %v2137_v33 = vrot.slane %v2129_v6, 9  ;;  %v1209_v29 = vpop.permute.xlu0 %1208  ;;  %v2428_v26 = vld [vmem:[%s2549_s27 + $0x4] sm:$0xf]  ;;  %v2429_v20 = vld [vmem:[%s2549_s27] sm:$0xf] }
  0xa7   : > { %v2212_v36 = vcombine.low %v1141_v21, %v1144_v8  ;;  %v1116_v58 = vsel %vm2597_vm2, %v1114_v25, %v1115_v24  ;;  %v1148_v38 = vsel %vm2597_vm2, %v2141_v28, %v1147_v19  ;;  %v1149_v43 = vrot.slane %v1147_v19, 4  ;;  %v2431_v19 = vld [vmem:[%s2549_s27 + $0x3c] sm:$0xf] }
  0xa8   : > { %1470 = vrot.lane.b32.xlu0 %v2201_v27, %s2483_s12  ;;  %v2208_v34 = vcombine.low %v1113_v30, %v1116_v58  ;;  %v1119_v41 = vrot.slane %v3163_v55, 5  ;;  %v1122_v47 = vrot.slane %v3202_v42, 5  ;;  %v2423_v42 = vld [vmem:[%s3445_s1 + $0x10] ss:$0 sps:$4 sm:$0x33]   ;;  %v2146_v7 = vcombine.low %v2427_v10, %v2426_v13 }
  0xa9   : > { %v1151_v51 = vsel %vm2597_vm2, %v1149_v43, %v1150_v59  ;;  %2348 = vmatprep.subr.msk.bf16.mxu0 %vm1701_vm6, %v2423_v42  ;;  %2349 = vmatprep.subr.msk.bf16.mxu1 %vm1701_vm6, %v2423_v42  ;;  %v1703_v15 = vsel %vm1701_vm6, %v2423_v42, 0  ;;  %v2142_v40 = vcombine.low %v2429_v20, %v2428_v26  ;;  %v2432_v43 = vld [vmem:[%s2549_s27 + $0x10] sm:$0xf] }
  0xaa   : > { %1516 = vrot.lane.b32.xlu1 %v2212_v36, %s2484_s13  ;;  %v2213_v44 = vcombine.low %v1148_v38, %v1151_v51  ;;  %v1120_v57 = vsel %vm2597_vm2, %v2137_v33, %v1119_v41  ;;  %v1121_v53 = vrot.slane %v1119_v41, 4  ;;  %v3258_v62 = vpop.permute.xlu1 %1218  ;;  %2325 = vmatpush3.bf16.msra.mxu0 %v1703_v15 }
  0xab   : > { %2347 = vmatpush3.bf16.msra.mxu1 %v1703_v15  ;;  %v1523_v21 = vsel %vm1520_vm7, %v2142_v40, %v1209_v29 }
  0xac   : > { %1508 = vrot.lane.b32.xlu0 %v2208_v34, %s2484_s13  ;;  %v1123_v55 = vsel %vm2597_vm2, %v1121_v53, %v1122_v47  ;;  %v1547_v11 = vsel %vm1545_vm8, %v1523_v21, %v3208_v56  ;;  %v2433_v34 = vld [vmem:[%s2549_s27 + $0xc] sm:$0xf] }
  0xad   : > { %v2209_v0 = vcombine.low %v1120_v57, %v1123_v55  ;;  %v1564_v8 = vsel %vm1562_vm9, %v1547_v11, %v3151_v46  ;;  %v2143_v41 = vcombine.low %v2433_v34, %v2432_v43 }
  0xae   : > { %1518 = vrot.lane.b32.xlu1 %v2213_v44, %s2484_s13 }
  0xaf   : > { %v1345_v2 = vpop.permute.xlu1 %1344  ;;  %v1526_v29 = vsel %vm1520_vm7, %v2143_v41, %v3235_v52  ;;  %v2145_v41 = vcombine.low %v2943_v5, %v2951_v3 }
  0xb0   : > { %1510 = vrot.lane.b32.xlu0 %v2209_v0, %s2484_s13  ;;  %v1217_v4 = vpop.permute.xlu0 %1216  ;;  %v1549_v0 = vsel %vm1545_vm8, %v1526_v29, %v3233_v31 }
  0xb1   : > { %v1535_v48 = vsel %vm1520_vm7, %v2146_v7, %v1217_v4  ;;  %v1566_v15 = vsel %vm1562_vm9, %v1549_v0, %v3184_v18 }
  0xb2   : > { %v1555_v6 = vsel %vm1545_vm8, %v1535_v48, %v3186_v17  ;;  %v2430_v17 = vld [vmem:[%s2549_s27 + $0x40] sm:$0xf] }
  0xb3   : > { %v1572_v24 = vsel %vm1562_vm9, %v1555_v6, %v3107_v35  ;;  %v2147_v27 = vcombine.low %v2431_v19, %v2430_v17 }
  0xb4   : > { %v1337_v39 = vpop.permute.xlu0 %1336  ;;  %v1589_v25 = vsel %vm1579_vm10, %v1572_v24, %v1345_v2 }
  0xb5   : > { %v1347_v49 = vpop.permute.xlu1 %1346  ;;  %v1581_v56 = vsel %vm1579_vm10, %v1564_v8, %v1337_v39  ;;  %v1538_v51 = vsel %vm1520_vm7, %v2147_v27, %v3258_v62  ;;  %v2434_v27 = vld [vmem:[%s2549_s27 + $0x48] sm:$0xf]  ;;  %v2435_v8 = vld [vmem:[%s2549_s27 + $0x4c] sm:$0xf] }
  0xb6   : > { %v1557_v55 = vsel %vm1545_vm8, %v1538_v51, %v3210_v32 }
  0xb7   : > { %v1574_v62 = vsel %vm1562_vm9, %v1557_v55, %v3153_v60 }
  0xb8   : > { %v3268_v22 = vpop.permute.xlu0 %1338  ;;  %v1591_v2 = vsel %vm1579_vm10, %v1574_v62, %v1347_v49 }
  0xb9   : > { %v1385_v54 = vpop.permute.xlu1 %1384  ;;  %v1583_v32 = vsel %vm1579_vm10, %v1566_v15, %v3268_v22 }
  0xba   : > { %v1606_v35 = vsel %vm1596_vm11, %v1589_v25, %v1385_v54 }
  0xbc   : > { %v1377_v37 = vpop.permute.xlu0 %1376 }
  0xbd   : > { %v1387_v1 = vpop.permute.xlu1 %1386  ;;  %v1598_v36 = vsel %vm1596_vm11, %v1581_v56, %v1377_v37 }
  0xbe   : > { %v1608_v4 = vsel %vm1596_vm11, %v1591_v2, %v1387_v1 }
  0xc0   : > { %v3270_v45 = vpop.permute.xlu0 %1378 }
  0xc1   : > { %v1433_v9 = vpop.permute.xlu1 %1432  ;;  %v1600_v60 = vsel %vm1596_vm11, %v1583_v32, %v3270_v45 }
  0xc2   : > { %v1623_v33 = vsel %vm1613_vm12, %v1606_v35, %v1433_v9  ;;  %v2148_v35 = vcombine.low %v2434_v27, %v2435_v8 }
  0xc4   : > { %v1425_v61 = vpop.permute.xlu0 %1424 }
  0xc5   : > { %v1435_v14 = vpop.permute.xlu1 %1434  ;;  %v1615_v47 = vsel %vm1613_vm12, %v1598_v36, %v1425_v61 }
  0xc6   : > { %v1625_v39 = vsel %vm1613_vm12, %v1608_v4, %v1435_v14 }
  0xc8   : > { %v1427_v16 = vpop.permute.xlu0 %1426 }
  0xc9   : > { %v1617_v49 = vsel %vm1613_vm12, %v1600_v60, %v1427_v16 }
  0xca   : > { %v1473_v23 = vpop.permute.xlu1 %1472 }
  0xcb   : > { %v1640_v58 = vsel %vm1630_vm13, %v1623_v33, %v1473_v23 }
  0xcc   : > { %v1465_v28 = vpop.permute.xlu0 %1464 }
  0xcd   : > { %v1632_v44 = vsel %vm1630_vm13, %v1615_v47, %v1465_v28 }
  0xce   : > { %v1475_v30 = vpop.permute.xlu1 %1474 }
  0xcf   : > { %v1642_v54 = vsel %vm1630_vm13, %v1625_v39, %v1475_v30 }
  0xd0   : > { %v1467_v59 = vpop.permute.xlu0 %1466 }
  0xd1   : > { %v1634_v18 = vsel %vm1630_vm13, %v1617_v49, %v1467_v59  ;;  %v2436_v59 = vld [vmem:[%s2549_s27 + $0x18] sm:$0xf] }
  0xd2   : > { %v1513_v38 = vpop.permute.xlu1 %1512  ;;  %v2144_v56 = vcombine.low %v2436_v59, %v2899_v12 }
  0xd3   : > { %v1657_v46 = vsel %vm1647_vm14, %v1640_v58, %v1513_v38  ;;  %v2149_v38 = vcombine.low %v2921_v50, %v2930_v63 }
  0xd4   : > { %v1505_v57 = vpop.permute.xlu0 %1504  ;;  %2334 = vmatprep.mubr.msk.bf16.mxu1 %vm1684_vm15, %v1657_v46 }
  0xd5   : > { %v1649_v53 = vsel %vm1647_vm14, %v1632_v44, %v1505_v57 }
  0xd6   : > { %2326 = vmatprep.mubr.msk.bf16.mxu0 %vm1684_vm15, %v1649_v53 }
  0xda   : > { %v1221_v42 = vpop.permute.xlu1 %1220 }
  0xdb   : > { %v1541_v58 = vsel %vm1520_vm7, %v2148_v35, %v1221_v42 }
  0xdd   : > { %v1213_v52 = vpop.permute.xlu0 %1212 }
  0xde   : > { %v1515_v31 = vpop.permute.xlu1 %1514  ;;  %v1529_v34 = vsel %vm1520_vm7, %v2144_v56, %v1213_v52 }
  0xdf   : > { %v1659_v37 = vsel %vm1647_vm14, %v1642_v54, %v1515_v31 }
  0xe0   : > { %2335 = vmatmul.mubr.msk.bf16.vlgmr.msra.gmra.mrb[0].mxu1 %vm1684_vm15, %v1659_v37 }
  0xe1   : > { %v1507_v1 = vpop.permute.xlu0 %1506 }
  0xe2   : > { %v1651_v9 = vsel %vm1647_vm14, %v1634_v18, %v1507_v1 }
  0xe3   : > { %2327 = vmatmul.mubr.msk.bf16.vlgmr.msra.gmra.mrb[0].mxu0 %vm1684_vm15, %v1651_v9 }
  0xe6   : > { %v1223_v22 = vpop.permute.xlu1 %1222 }
  0xe7   : > { %v1544_v44 = vsel %vm1520_vm7, %v2149_v38, %v1223_v22 }
  0xe9   : > { %v1215_v13 = vpop.permute.xlu0 %1214 }
  0xea   : > { %v1261_v10 = vpop.permute.xlu1 %1260  ;;  %v1532_v3 = vsel %vm1520_vm7, %v2145_v41, %v1215_v13 }
  0xeb   : > { %v1559_v43 = vsel %vm1545_vm8, %v1541_v58, %v1261_v10 }
  0xed   : > { %v1253_v7 = vpop.permute.xlu0 %1252 }
  0xee   : > { %v1263_v61 = vpop.permute.xlu1 %1262  ;;  %v1551_v51 = vsel %vm1545_vm8, %v1529_v34, %v1253_v7 }
  0xef   : > { %v1561_v53 = vsel %vm1545_vm8, %v1544_v44, %v1263_v61 }
  0xf1   : > { %v1255_v14 = vpop.permute.xlu0 %1254 }
  0xf2   : > { %v1309_v45 = vpop.permute.xlu1 %1308  ;;  %v1553_v2 = vsel %vm1545_vm8, %v1532_v3, %v1255_v14  ;;  %v3376_v14 = vld [vmem:[%s3446_s2] ss:$0 sm:$0xff] }
  0xf3   : > { %v1576_v47 = vsel %vm1562_vm9, %v1559_v43, %v1309_v45  ;;  %v3382_v45 = vld [vmem:[%s3447_s3] ss:$0 sm:$0xff] }
  0xf5   : > { %v1301_v26 = vpop.permute.xlu0 %1300 }
  0xf6   : > { %v1311_v20 = vpop.permute.xlu1 %1310  ;;  %v1568_v57 = vsel %vm1562_vm9, %v1551_v51, %v1301_v26 }
  0xf7   : > { %v1578_v55 = vsel %vm1562_vm9, %v1561_v53, %v1311_v20 }
  0xf9   : > { %v1303_v40 = vpop.permute.xlu0 %1302 }
  0xfa   : > { %v1570_v52 = vsel %vm1562_vm9, %v1553_v2, %v1303_v40 }
  0xfb   : > { %v1349_v48 = vpop.permute.xlu1 %1348 }
  0xfc   : > { %v1593_v12 = vsel %vm1579_vm10, %v1576_v47, %v1349_v48 }
  0xfd   : > { %v1341_v16 = vpop.permute.xlu0 %1340 }
  0xfe   : > { %v1585_v29 = vsel %vm1579_vm10, %v1568_v57, %v1341_v16 }
  0xff   : > { %v1351_v6 = vpop.permute.xlu1 %1350 }
 0x100   : > { %v1595_v4 = vsel %vm1579_vm10, %v1578_v55, %v1351_v6 }
 0x101   : > { %v1343_v21 = vpop.permute.xlu0 %1342 }
 0x102   : > { %v1587_v60 = vsel %vm1579_vm10, %v1570_v52, %v1343_v21 }
 0x103   : > { %v1389_v23 = vpop.permute.xlu1 %1388 }
 0x104   : > { %v1610_v50 = vsel %vm1596_vm11, %v1593_v12, %v1389_v23 }
 0x105   : > { %v1381_v24 = vpop.permute.xlu0 %1380 }
 0x106   : > { %v1602_v0 = vsel %vm1596_vm11, %v1585_v29, %v1381_v24 }
 0x107   : > { %v1391_v28 = vpop.permute.xlu1 %1390 }
 0x108   : > { %v1612_v32 = vsel %vm1596_vm11, %v1595_v4, %v1391_v28 }
 0x109   : > { %v1383_v11 = vpop.permute.xlu0 %1382 }
 0x10a   : > { %v1604_v18 = vsel %vm1596_vm11, %v1587_v60, %v1383_v11 }
 0x10b   : > { %v1437_v30 = vpop.permute.xlu1 %1436 }
 0x10c   : > { %v1627_v5 = vsel %vm1613_vm12, %v1610_v50, %v1437_v30 }
 0x10d   : > { %v1429_v25 = vpop.permute.xlu0 %1428 }
 0x10e   : > { %v1619_v15 = vsel %vm1613_vm12, %v1602_v0, %v1429_v25 }
 0x10f   : > { %v1439_v17 = vpop.permute.xlu1 %1438 }
 0x110   : > { %v1629_v37 = vsel %vm1613_vm12, %v1612_v32, %v1439_v17 }
 0x111   : > { %v1431_v19 = vpop.permute.xlu0 %1430 }
 0x112   : > { %v1621_v22 = vsel %vm1613_vm12, %v1604_v18, %v1431_v19 }
 0x114   : > { %v1477_v33 = vpop.permute.xlu1 %1476 }
 0x115   : > { %v1469_v36 = vpop.permute.xlu0 %1468  ;;  %v1644_v62 = vsel %vm1630_vm13, %v1627_v5, %v1477_v33 }
 0x116   : > { %v1636_v54 = vsel %vm1630_vm13, %v1619_v15, %v1469_v36 }
 0x118   : > { %v1479_v46 = vpop.permute.xlu1 %1478 }
 0x119   : > { %v1646_v1 = vsel %vm1630_vm13, %v1629_v37, %v1479_v46 }
 0x11a   : > { %v1471_v63 = vpop.permute.xlu0 %1470 }
 0x11b   : > { %v1638_v10 = vsel %vm1630_vm13, %v1621_v22, %v1471_v63 }
 0x11c   : > { %v1517_v42 = vpop.permute.xlu1 %1516 }
 0x11d   : > { %v1661_v39 = vsel %vm1647_vm14, %v1644_v62, %v1517_v42 }
 0x11e   : > { %v1509_v31 = vpop.permute.xlu0 %1508  ;;  %2338 = vmatprep.mubr.msk.bf16.mxu1 %vm1684_vm15, %v1661_v39 }
 0x11f   : > { %v1653_v49 = vsel %vm1647_vm14, %v1636_v54, %v1509_v31 }
 0x120   : > { %2330 = vmatprep.mubr.msk.bf16.mxu0 %vm1684_vm15, %v1653_v49  ;;  %v1519_v9 = vpop.permute.xlu1 %1518 }
 0x121   : > { %v1663_v13 = vsel %vm1647_vm14, %v1646_v1, %v1519_v9 }
 0x122   : > { %v1511_v7 = vpop.permute.xlu0 %1510  ;;  %2339 = vmatmul.mubr.msk.bf16.gmra.mrb[4].mxu1 %vm1684_vm15, %v1663_v13 }
 0x123   : > { %v1655_v61 = vsel %vm1647_vm14, %v1638_v10, %v1511_v7 }
 0x124   : > { %2331 = vmatmul.mubr.msk.bf16.gmra.mrb[4].mxu0 %vm1684_vm15, %v1655_v61 }
 0x1b3   : > { %v2336_v26 = vpop.f32.mrb[0].mxu1 }
 0x1b4   : > { %v1819_v20 = vmul.f32 %v2336_v26, %v3376_v14  ;;  %v1771_v40 = vpop.f32.mrb[1].mxu1 }
 0x1b5   : > { %v1817_v48 = vmul.f32 %v3376_v14, %v1771_v40  ;;  %v2337_v16 = vpop.f32.mrb[2].mxu1 }
 0x1b6   : > { %v2328_v6 = vpop.f32.mrb[0].mxu0  ;;  %v1842_v21 = vadd.f32 %v3382_v45, %v1819_v20  ;;  %v1820_v23 = vmul.f32 %v2337_v16, %v3376_v14  ;;  %v1774_v24 = vpop.f32.mrb[3].mxu1 }
 0x1b7   : > { %v1811_v28 = vmul.f32 %v2328_v6, %v3376_v14  ;;  %v1739_v11 = vpop.f32.mrb[1].mxu0  ;;  %v1840_v30 = vadd.f32 %v3382_v45, %v1817_v48  ;;  %v1818_v25 = vmul.f32 %v3376_v14, %v1774_v24 }
 0x1b8   : > { %v1809_v17 = vmul.f32 %v3376_v14, %v1739_v11  ;;  %v2329_v19 = vpop.f32.mrb[2].mxu0  ;;  %v1843_v27 = vadd.f32 %v3382_v45, %v1820_v23  ;;  %v1858_v33 = vmax.f32 %v1842_v21, 0.0 }
 0x1b9   : > { %v1834_v8 = vadd.f32 %v3382_v45, %v1811_v28  ;;  %v1812_v35 = vmul.f32 %v2329_v19, %v3376_v14  ;;  %v1742_v59 = vpop.f32.mrb[3].mxu0  ;;  %v1841_v56 = vadd.f32 %v3382_v45, %v1818_v25  ;;  %v1856_v43 = vmax.f32 %v1840_v30, 0.0 }
 0x1ba   : > { %v1832_v36 = vadd.f32 %v3382_v45, %v1809_v17  ;;  %v1859_v58 = vmax.f32 %v1843_v27, 0.0  ;;  %v1810_v38 = vmul.f32 %v3376_v14, %v1742_v59 }
 0x1bb   : > { %v1835_v34 = vadd.f32 %v3382_v45, %v1812_v35  ;;  %v1857_v41 = vmax.f32 %v1841_v56, 0.0  ;;  %v1850_v51 = vmax.f32 %v1834_v8, 0.0 }
 0x1bc   : > { %v2290_v47 = vpack.c.bf16 %v1859_v58, %v1858_v33  ;;  %v1833_v46 = vadd.f32 %v3382_v45, %v1810_v38  ;;  %v1848_v57 = vmax.f32 %v1832_v36, 0.0 }
 0x1bd   : > { %v1851_v12 = vmax.f32 %v1835_v34, 0.0  ;;  %v2285_v44 = vpack.c.bf16 %v1857_v41, %v1856_v43 }
 0x1be   : > { %2306 = vst [vmem:[%s3401_s5 + $0x28] sm:$0xff] %v2290_v47   ;;  %v1849_v50 = vmax.f32 %v1833_v46, 0.0 }
 0x1bf   : > { %v2270_v63 = vpack.c.bf16 %v1851_v12, %v1850_v51  ;;  %2305 = vst [vmem:[%s3401_s5 + $0x20] sm:$0xff] %v2285_v44  }
 0x1c0   : > { %v2265_v53 = vpack.c.bf16 %v1849_v50, %v1848_v57 }
 0x1c1   : > { %2302 = vst [vmem:[%s3401_s5 + $0x8] sm:$0xff] %v2270_v63  }
 0x1c2   : > { %2266 = vst [vmem:[%s3401_s5] sm:$0xff] %v2265_v53  }
 0x1f5   : > { %v2340_v29 = vpop.f32.mrb[4].mxu1 }
 0x1f6   : > { %v1823_v5 = vmul.f32 %v2340_v29, %v3376_v14  ;;  %v1787_v3 = vpop.f32.mrb[5].mxu1 }
 0x1f7   : > { %v2332_v55 = vpop.f32.mrb[4].mxu0  ;;  %v1821_v0 = vmul.f32 %v3376_v14, %v1787_v3  ;;  %v2341_v62 = vpop.f32.mrb[6].mxu1 }
 0x1f8   : > { %v1815_v42 = vmul.f32 %v2332_v55, %v3376_v14  ;;  %v1846_v2 = vadd.f32 %v3382_v45, %v1823_v5  ;;  %v1755_v4 = vpop.f32.mrb[5].mxu0  ;;  %v1824_v15 = vmul.f32 %v2341_v62, %v3376_v14  ;;  %v1790_v39 = vpop.f32.mrb[7].mxu1 }
 0x1f9   : > { %v1813_v52 = vmul.f32 %v3376_v14, %v1755_v4  ;;  %v1844_v32 = vadd.f32 %v3382_v45, %v1821_v0  ;;  %v2333_v54 = vpop.f32.mrb[6].mxu0  ;;  %v1822_v31 = vmul.f32 %v3376_v14, %v1790_v39 }
 0x1fa   : > { %v1838_v60 = vadd.f32 %v3382_v45, %v1815_v42  ;;  %v1816_v37 = vmul.f32 %v2333_v54, %v3376_v14  ;;  %v1847_v49 = vadd.f32 %v3382_v45, %v1824_v15  ;;  %v1758_v18 = vpop.f32.mrb[7].mxu0  ;;  %v1862_v13 = vmax.f32 %v1846_v2, 0.0 }
 0x1fb   : > { %v1836_v1 = vadd.f32 %v3382_v45, %v1813_v52  ;;  %v1814_v9 = vmul.f32 %v3376_v14, %v1758_v18  ;;  %v1845_v22 = vadd.f32 %v3382_v45, %v1822_v31  ;;  %v1860_v61 = vmax.f32 %v1844_v32, 0.0 }
 0x1fc   : > { %v1839_v10 = vadd.f32 %v3382_v45, %v1816_v37  ;;  %v1863_v7 = vmax.f32 %v1847_v49, 0.0  ;;  %v1854_v40 = vmax.f32 %v1838_v60, 0.0 }
 0x1fd   : > { %v1837_v26 = vadd.f32 %v3382_v45, %v1814_v9  ;;  %v1861_v20 = vmax.f32 %v1845_v22, 0.0  ;;  %v1852_v6 = vmax.f32 %v1836_v1, 0.0 }
 0x1fe   : > { %v1855_v48 = vmax.f32 %v1839_v10, 0.0  ;;  %v2300_v16 = vpack.c.bf16 %v1863_v7, %v1862_v13 }
 0x1ff   : > { %v1853_v21 = vmax.f32 %v1837_v26, 0.0  ;;  %v2295_v23 = vpack.c.bf16 %v1861_v20, %v1860_v61 }
 0x200   : > { %v2280_v14 = vpack.c.bf16 %v1855_v48, %v1854_v40  ;;  %2308 = vst [vmem:[%s3401_s5 + $0x38] sm:$0xff] %v2300_v16  }
 0x201   : > { %v2275_v24 = vpack.c.bf16 %v1853_v21, %v1852_v6  ;;  %2307 = vst [vmem:[%s3401_s5 + $0x30] sm:$0xff] %v2295_v23  }
 0x202   : > { %2304 = vst [vmem:[%s3401_s5 + $0x18] sm:$0xff] %v2280_v14  }
 0x203   : > { %2303 = vst [vmem:[%s3401_s5 + $0x10] sm:$0xff] %v2275_v24  }
 0x204 PF: > { %s14_s19 = sadd.s32 1, %s2475_s19   ;;  %s3453_s15 = smov %s2467_s17 }
 0x205   : > { %p11_p7 = scmp.ge.s32.totalorder %s14_s19, 6   ;;  %s3454_s16 = smov %s2471_s18 }
 0x206   : > { %s3455_s17 = smov %s3458_s20  ;;  %s3456_s18 = smov %s3462_s21 }
 0x207   :  { %13 = sbr.rel (!%p11_p7) target bundleno = 3 (0x3), region = 69 }

// kernel: up_conv_forward.2
= control target key start
LH: loop header
LB: loop body
LE: loop exit
PB: predicated region body
PF: predicated region fallthrough
CT: control target
= control target key end

     0   :  { %s2274_s9 = smov 0   ;;  %s2276_s10 = smov 0   ;;  %s3056_s0 = inlined_call_operand.vmem [shape: bf16[2,18,18,4], index: 0, kind: input, shape index: {}]   ;;  %s3057_s1 = inlined_call_operand.vmem [shape: bf16[36,128], index: 1, kind: input, shape index: {}]   ;;  %s3058_s2 = inlined_call_operand.vmem [shape: f32[2,2,2,128], index: 2, kind: output, shape index: {}]  }
   0x1   :  { %s2278_s11 = smov 0   ;;  %s2280_s12 = smov 0  }
   0x2   :  { %s2282_s13 = smov 0  }
   0x3 LB: > { %s21_s14 = sadd.s32 1, %s2241_s11  ;;  %s24_s15 = sadd.s32 1, %s2245_s12  ;;  %s2249_s13 = sphi %s2282_s13, %s12_s13   ;;  %s2245_s12 = sphi %s2280_s12, %s3066_s12   ;;  %s2241_s11 = sphi %s2278_s11, %s3065_s11   ;;  %s2237_s10 = sphi %s2276_s10, %s3064_s10   ;;  %s2233_s9 = sphi %s2274_s9, %s3063_s9  }
   0x4   : > { %p22_p0 = scmp.ge.s32.totalorder %s21_s14, 2  ;;  %p1899_p1 = scmp.ge.s32.totalorder %s2249_s13, 1 }
   0x5   : > { %p126_p2 = scmp.lt.s32.totalorder %s2249_s13, 5 }
   0x6   : > { %s3068_s14 = smov (%p22_p0, %s21_s14), 0  ;;  %s3070_s15 = smov (!%p22_p0, %s24_s15), %s2245_s12 }
   0x7   : > { %p127_p3 = pnand %p1899_p1, %p126_p2  ;;  %p26_p4 = scmp.ge.s32.totalorder %s3070_s15, 2 }
   0x8   : > { %p151_p5 = scmp.lt.s32.totalorder (!%p127_p3), %s2237_s10, 1  ;;  %s2083_s16 = smul.u32 (!%p127_p3), 96, %s2233_s9  ;;  %vm420_vm0 = vcmask (!%p127_p3), 1042432   ;;  %vm421_vm1 = vcmask (!%p127_p3), 1046532   ;;  %vm193_vm3 = vsmask.f32 (!%p127_p3), 3328 }
   0x9   : > { %s3072_s15 = smov (%p26_p4, %s3070_s15), 0  ;;  %130 = sbr.rel (%p127_p3) target bundleno = 529 (0x211), region = 28 }
   0xa   : > { %s2251_s22 = smov (!%p127_p3), 12   ;;  %s2252_s23 = smov (!%p127_p3), 24   ;;  %vm2357_vm2 = vmor (!%p127_p3), %vm420_vm0, %vm421_vm1  ;;  %vm194_vm4 = vsmask.f32 (!%p127_p3), 7440  ;;  %vm1463_vm6 = vcmask (!%p127_p3), 31744   ;;  %vm1488_vm7 = vcmask (!%p127_p3), 64512  }
   0xb   : > { %s2253_s24 = smov (!%p127_p3), 20   ;;  %s2254_s25 = smov (!%p127_p3), 8   ;;  %vm2404_vm5 = vmor (!%p127_p3), %vm193_vm3, %vm194_vm4  ;;  %vm1505_vm8 = vcmask (!%p127_p3), 97280   ;;  %vm1522_vm9 = vcmask (!%p127_p3), 130048   ;;  %vm1539_vm10 = vcmask (!%p127_p3), 162816   ;;  %vm1556_vm11 = vcmask (!%p127_p3), 195584  }
   0xc   : > { %s2255_s26 = smov (!%p127_p3), 4   ;;  %s2256_s3 = smov (!%p127_p3), 16   ;;  %vm1644_vm12 = vcmask (!%p127_p3), 1041408   ;;  %vm1573_vm13 = vcmask (!%p127_p3), 228352   ;;  %vm1590_vm14 = vcmask (!%p127_p3), 261120   ;;  %vm1627_vm15 = vcmask (!%p127_p3), 293888  }
   0xd   : > { %s2257_s4 = smov (!%p127_p3), 28   ;;  %s2258_s5 = smov (!%p127_p3), 32  }
   0xe   : > { %p158_p6 = scmp.lt.s32.totalorder (!%p127_p3), %s2233_s9, 1 }
  0x10   : > { %s3074_s10 = smov (!%p151_p5, %s2237_s10), 1  ;;  %s3076_s9 = smov (!%p158_p6, %s2233_s9), 1 }
  0x11   : > { %s2125_s17 = smul.u32 216, %s3074_s10  ;;  %s1901_s8 = sshll.u32 %s3074_s10, 1 }
  0x13   : > { %s155_s20 = scalar_lea.vmem %s3056_s0, %s2125_s17 }
  0x14   : > { %s2313_s21 = scalar_lea.vmem %s155_s20, %s2083_s16  ;;  %s161_s16 = sadd.s32 %s1901_s8, %s3076_s9 }
  0x15   : > { %v1918_v0 = vld [vmem:[%s2313_s21 + $0x18] sm:$0xf]  ;;  %v2317_v1 = vld [vmem:[%s2313_s21 + $0x1c] sm:$0xf]  ;;  %v1916_v2 = vld [vmem:[%s2313_s21 + $0xc] sm:$0xf] }
  0x16   : > { %v541_v3 = vshll.u32 %v2317_v1, 16  ;;  %v545_v4 = vshrl.u32 %v2317_v1, 16  ;;  %v2023_v5 = vcombine.low %v1918_v0, %v2317_v1  ;;  %v532_v6 = vshrl.u32 %v1918_v0, 16  ;;  %v2324_v7 = vld [vmem:[%s2313_s21 + $0x10] sm:$0xf]  ;;  %s1902_s17 = sshll.u32 %s161_s16, 1 }
  0x17   : > { %v535_v8 = vshll.u32 %v1918_v0, 16  ;;  %v517_v9 = vshll.u32 %v2324_v7, 16  ;;  %v521_v10 = vshrl.u32 %v2324_v7, 16  ;;  %v2022_v11 = vcombine.low %v1916_v2, %v2324_v7  ;;  %v1960_v12 = vld [vmem:[%s2313_s21 + $0x24] sm:$0xf]  ;;  %s163_s20 = scalar_lea.vmem %s3058_s2, %s1902_s17 }
  0x18   : > { %v2330_v13 = vrot.slane %v545_v4, 4  ;;  %1241 = vrot.lane.b32.xlu1 %v2023_v5, %s2251_s22  ;;  %v534_v14 = vrot.slane %v532_v6, 4  ;;  %v508_v15 = vshrl.u32 %v1916_v2, 16  ;;  %v511_v16 = vshll.u32 %v1916_v2, 16  ;;  %v2334_v17 = vld [vmem:[%s2313_s21 + $0x28] sm:$0xf] }
  0x19   : > { %v537_v18 = vrot.slane %v535_v8, 5  ;;  %v2336_v19 = vrot.slane %v521_v10, 4  ;;  %1239 = vrot.lane.b32.xlu0 %v2022_v11, %s2251_s22  ;;  %v840_v20 = vshrl.u32 %v1960_v12, 16  ;;  %v843_v21 = vshll.u32 %v1960_v12, 16  ;;  %v1958_v22 = vld [vmem:[%s2313_s21 + $0x18] sm:$0xf] }
  0x1a   : > { %v510_v23 = vrot.slane %v508_v15, 4  ;;  %v513_v24 = vrot.slane %v511_v16, 5  ;;  %v853_v25 = vshrl.u32 %v2334_v17, 16  ;;  %v2047_v26 = vcombine.low %v1960_v12, %v2334_v17  ;;  %v2343_v27 = vld [vmem:[%s2313_s21 + $0x1c] sm:$0xf] }
  0x1b   : > { %v538_v28 = vor.u32 %v537_v18, %v534_v14  ;;  %v2345_v29 = vrot.slane %v840_v20, 4  ;;  %v2347_v30 = vrot.slane %v843_v21, 5  ;;  %v816_v31 = vshrl.u32 %v1958_v22, 16  ;;  %v2350_v32 = vld [vmem:[%s2313_s21 + $0x14] sm:$0x1] }
  0x1c   : > { %v514_v33 = vor.u32 %v513_v24, %v510_v23  ;;  %1369 = vrot.lane.b32.xlu1 %v2047_v26, %s2252_s23  ;;  %v819_v34 = vshll.u32 %v1958_v22, 16  ;;  %v829_v35 = vshrl.u32 %v2343_v27, 16  ;;  %v2046_v36 = vcombine.low %v1958_v22, %v2343_v27  ;;  %v1940_v38 = vld [vmem:[%s2313_s21 + $0xc] sm:$0xe]  ;;  %v170_v39 = vld [vmem:[%s2313_s21 + $0x4] sm:$0xf] }
  0x1d   : > { %v2363_v40 = vrot.slane %v538_v28, 4  ;;  %v2365_v41 = vrot.slane %v816_v31, 4  ;;  %v1948_v42 = vrot.slane %v1940_v38, 9  ;;  %v733_v43 = vrot.slane %v2324_v7, 5  ;;  %v185_v44 = vld [vmem:[%s2313_s21 + $0x8] sm:$0x1] }
  0x1e   : > { %v2369_v45 = vrot.slane %v514_v33, 4  ;;  %v2371_v46 = vrot.slane %v819_v34, 5  ;;  %1367 = vrot.lane.b32.xlu0 %v2046_v36, %s2252_s23  ;;  %v736_v47 = vrot.slane %v2350_v32, 5  ;;  %v388_v48 = vld [vmem:[%s2313_s21] sm:$0xe]  ;;  %v425_v49 = vrot.slane %v170_v39, 5 }
  0x1f   : > { %v734_v50 = vsel %vm2357_vm2, %v1948_v42, %v733_v43  ;;  %v735_v51 = vrot.slane %v733_v43, 4  ;;  %v1906_v52 = vrot.slane %v388_v48, 9  ;;  %v428_v53 = vrot.slane %v185_v44, 5  ;;  %v172_v54 = vld [vmem:[%s2313_s21 + $0x10] sm:$0xf] }
  0x20   : > { %v427_v55 = vrot.slane %v425_v49, 4  ;;  %v186_v56 = vld [vmem:[%s2313_s21 + $0x14] sm:$0x1]  ;;  %v389_v57 = vld [vmem:[%s2313_s21 + $0xc] sm:$0xe]  ;;  %v432_v58 = vrot.slane %v172_v54, 5  ;;  %v846_v59 = vor.u32 %v2347_v30, %v2345_v29  ;;  %v822_v60 = vor.u32 %v2371_v46, %v2365_v41 }
  0x21   : > { %v737_v61 = vsel %vm2357_vm2, %v735_v51, %v736_v47  ;;  %v426_v62 = vsel %vm2357_vm2, %v1906_v52, %v425_v49  ;;  %v1907_v63 = vrot.slane %v389_v57, 9  ;;  %v435_v0 = vrot.slane %v186_v56, 5  ;;  %v169_v2 = vld [vmem:[%s2313_s21] sm:$0xf]  ;;  %v1941_v10 = vld [vmem:[%s2313_s21 + $0x18] sm:$0xe] }
  0x22   : > { %v2038_v4 = vcombine.low %v734_v50, %v737_v61  ;;  %v429_v5 = vsel %vm2357_vm2, %v427_v55, %v428_v53  ;;  %v434_v6 = vrot.slane %v432_v58, 4  ;;  %v197_v8 = vshrl.u32 %v169_v2, 16  ;;  %v1933_v16 = vld [vmem:[%s2313_s21 + $0x20] sm:$0x1]  ;;  %v171_v23 = vld [vmem:[%s2313_s21 + $0xc] sm:$0xf] }
  0x23   : > { %v2014_v11 = vcombine.low %v426_v62, %v429_v5  ;;  %v433_v12 = vsel %vm2357_vm2, %v1907_v63, %v432_v58  ;;  %v200_v14 = vshll.u32 %v169_v2, 16  ;;  %v206_v15 = vshll.u32 %v170_v39, 16  ;;  %v2468_v41 = vld [vmem:[%s2313_s21 + $0x1c] sm:$0xf] }
  0x24   : > { %1319 = vrot.lane.b32.xlu0 %v2038_v4, %s2253_s24  ;;  %v436_v18 = vsel %vm2357_vm2, %v434_v6, %v435_v0  ;;  %v199_v20 = vrot.slane %v197_v8, 4  ;;  %v210_v21 = vshrl.u32 %v170_v39, 16  ;;  %v216_v22 = vshll.u32 %v185_v44, 16  ;;  %v2195_v39 = vld [vmem:[%s3057_s1 + $0x10] ss:$0 sps:$4 sm:$0x33]  }
  0x25   : > { %1191 = vrot.lane.b32.xlu1 %v2014_v11, %s2254_s25  ;;  %v2015_v24 = vcombine.low %v433_v12, %v436_v18  ;;  %v202_v26 = vrot.slane %v200_v14, 5  ;;  %v208_v28 = vrot.slane %v206_v15, 5  ;;  %v1949_v31 = vrot.slane %v1941_v10, 9 }
  0x26   : > { %v212_v33 = vrot.slane %v210_v21, 4  ;;  %v218_v34 = vrot.slane %v216_v22, 5  ;;  %v740_v36 = vrot.slane %v2317_v1, 5  ;;  %v743_v38 = vrot.slane %v1933_v16, 5  ;;  %v2431_v21 = vld [vmem:[%s2313_s21 + $0x2c] sm:$0x1] }
  0x27   : > { %v203_v42 = vor.u32 %v202_v26, %v199_v20  ;;  %v221_v43 = vshrl.u32 %v171_v23, 16  ;;  %v224_v47 = vshll.u32 %v171_v23, 16  ;;  %v230_v48 = vshll.u32 %v172_v54, 16  ;;  %v2192_v23 = vld [vmem:[%s3057_s1] sm:$0xff]  }
  0x28   : > { %v213_v44 = vor.u32 %v212_v33, %v208_v28  ;;  %v741_v49 = vsel %vm2357_vm2, %v1949_v31, %v740_v36  ;;  %v742_v50 = vrot.slane %v740_v36, 4  ;;  %v234_v51 = vshrl.u32 %v172_v54, 16  ;;  %v2451_v26 = vld [vmem:[%s2313_s21 + $0x20] sm:$0x1]  ;;  %2095 = vmatprep.subr.bf16.mxu0 %v2192_v23  ;;  %2117 = vmatprep.subr.bf16.mxu1 %v2192_v23 }
  0x29   : > { %1193 = vrot.lane.b32.xlu1 %v2015_v24, %s2254_s25  ;;  %v204_v52 = vrot.slane %v203_v42, 4  ;;  %v223_v53 = vrot.slane %v221_v43, 4  ;;  %v226_v55 = vrot.slane %v224_v47, 5  ;;  %v232_v57 = vrot.slane %v230_v48, 5  ;;  %2096 = vmatpush3.bf16.msra.mxu0 %v2192_v23 }
  0x2a   : > { %v214_v58 = vrot.slane %v213_v44, 4  ;;  %v744_v61 = vsel %vm2357_vm2, %v742_v50, %v743_v38  ;;  %v236_v62 = vrot.slane %v234_v51, 4  ;;  %v240_v63 = vshll.u32 %v186_v56, 16  ;;  %2120 = vmatpush3.bf16.msra.mxu1 %v2192_v23 }
  0x2b   : > { %v209_v0 = vsel %vm2404_vm5, %v204_v52, %v208_v28  ;;  %v2039_v2 = vcombine.low %v741_v49, %v744_v61  ;;  %v227_v4 = vor.u32 %v226_v55, %v223_v53  ;;  %v543_v54 = vrot.slane %v541_v3, 5  ;;  %v173_v28 = vld [vmem:[%s2313_s21 + $0x18] sm:$0xf] }
  0x2c   : > { %v219_v5 = vsel %vm2404_vm5, %v214_v58, %v218_v34  ;;  %v237_v6 = vor.u32 %v236_v62, %v232_v57  ;;  %v242_v8 = vrot.slane %v240_v63, 5  ;;  %v551_v10 = vshll.u32 %v1933_v16, 16  ;;  %v2193_v34 = vld [vmem:[%s3057_s1 + $0x8] sm:$0xff]  }
  0x2d   : > { %v2006_v11 = vcombine.low %v209_v0, %v219_v5  ;;  %1321 = vrot.lane.b32.xlu1 %v2039_v2, %s2253_s24  ;;  %v228_v12 = vrot.slane %v227_v4, 4  ;;  %v544_v56 = vsel %vm2404_vm5, %v2363_v40, %v543_v54  ;;  %v548_v14 = vor.u32 %v2330_v13, %v543_v54  ;;  %2097 = vmatprep.subr.bf16.mxu0 %v2193_v34  ;;  %v175_v0 = vld [vmem:[%s2313_s21 + $0x24] sm:$0xf] }
  0x2e   : > { %v238_v15 = vrot.slane %v237_v6, 4  ;;  %v553_v1 = vrot.slane %v551_v10, 5  ;;  %v519_v3 = vrot.slane %v517_v9, 5  ;;  %v527_v18 = vshll.u32 %v2350_v32, 16  ;;  %2118 = vmatprep.subr.bf16.mxu1 %v2193_v34  ;;  %2098 = vmatpush3.bf16.msra.mxu0 %v2193_v34 }
  0x2f   : > { %1151 = vrot.lane.b32.xlu0 %v2006_v11, %s2255_s26  ;;  %v233_v16 = vsel %vm2404_vm5, %v228_v12, %v232_v57  ;;  %v549_v20 = vrot.slane %v548_v14, 4  ;;  %v847_v13 = vrot.slane %v846_v59, 4  ;;  %v849_v7 = vshll.u32 %v2334_v17, 16  ;;  %v1982_v57 = vld [vmem:[%s2313_s21 + $0x18] sm:$0xe]  ;;  %2121 = vmatpush3.bf16.msra.mxu1 %v2193_v34 }
  0x30   : > { %v243_v9 = vsel %vm2404_vm5, %v238_v15, %v242_v8  ;;  %v520_v32 = vsel %vm2404_vm5, %v2369_v45, %v519_v3  ;;  %v524_v40 = vor.u32 %v2336_v19, %v519_v3  ;;  %v529_v22 = vrot.slane %v527_v18, 5  ;;  %v176_v15 = vld [vmem:[%s2313_s21 + $0x28] sm:$0xf]  ;;  %2123 = vmatprep.subr.msk.bf16.mxu0 %vm1644_vm12, %v2195_v39  ;;  %2124 = vmatprep.subr.msk.bf16.mxu1 %vm1644_vm12, %v2195_v39 }
  0x31   : > { %v2007_v24 = vcombine.low %v233_v16, %v243_v9  ;;  %v554_v29 = vsel %vm2404_vm5, %v549_v20, %v553_v1  ;;  %v851_v30 = vrot.slane %v849_v7, 5  ;;  %v855_v59 = vrot.slane %v853_v25, 4 }
  0x32   : > { %v2031_v45 = vcombine.low %v544_v56, %v554_v29  ;;  %v525_v31 = vrot.slane %v524_v40, 4  ;;  %v859_v19 = vshll.u32 %v2431_v21, 16  ;;  %v823_v33 = vrot.slane %v822_v60, 4  ;;  %v1983_v40 = vld [vmem:[%s2313_s21 + $0x24] sm:$0xe] }
  0x33   : > { %1153 = vrot.lane.b32.xlu0 %v2007_v24, %s2255_s26  ;;  %v852_v25 = vsel %vm2404_vm5, %v847_v13, %v851_v30  ;;  %v856_v36 = vor.u32 %v855_v59, %v851_v30  ;;  %v825_v38 = vshll.u32 %v2343_v27, 16  ;;  %v831_v42 = vrot.slane %v829_v35, 4  ;;  %v2475_v35 = vld [vmem:[%s2313_s21 + $0x20] sm:$0x1] }
  0x34   : > { %1281 = vrot.lane.b32.xlu1 %v2031_v45, %s2256_s3  ;;  %v530_v46 = vsel %vm2404_vm5, %v525_v31, %v529_v22  ;;  %v861_v60 = vrot.slane %v859_v19, 5  ;;  %v835_v43 = vshll.u32 %v2451_v26, 16  ;;  %v245_v47 = vshrl.u32 %v173_v28, 16  ;;  %v391_v45 = vld [vmem:[%s2313_s21 + $0x24] sm:$0xe] }
  0x35   : > { %v2030_v48 = vcombine.low %v520_v32, %v530_v46  ;;  %v857_v44 = vrot.slane %v856_v36, 4  ;;  %v827_v49 = vrot.slane %v825_v38, 5  ;;  %v248_v50 = vshll.u32 %v173_v28, 16 }
  0x36   : > { %v837_v51 = vrot.slane %v835_v43, 5  ;;  %v247_v52 = vrot.slane %v245_v47, 4  ;;  %v254_v53 = vshll.u32 %v2468_v41, 16  ;;  %v258_v55 = vshrl.u32 %v2468_v41, 16 }
  0x37   : > { %1279 = vrot.lane.b32.xlu0 %v2030_v48, %s2256_s3  ;;  %v862_v58 = vsel %vm2404_vm5, %v857_v44, %v861_v60  ;;  %v828_v61 = vsel %vm2404_vm5, %v823_v33, %v827_v49  ;;  %v832_v62 = vor.u32 %v831_v42, %v827_v49  ;;  %v250_v63 = vrot.slane %v248_v50, 5  ;;  %v2510_v44 = vld [vmem:[%s2313_s21 + $0x30] sm:$0xf] }
  0x38   : > { %v2055_v2 = vcombine.low %v852_v25, %v862_v58  ;;  %v256_v4 = vrot.slane %v254_v53, 5  ;;  %v260_v54 = vrot.slane %v258_v55, 4  ;;  %v264_v5 = vshll.u32 %v2475_v35, 16  ;;  %v390_v25 = vld [vmem:[%s2313_s21 + $0x18] sm:$0xe] }
  0x39   : > { %v833_v6 = vrot.slane %v832_v62, 4  ;;  %v251_v8 = vor.u32 %v250_v63, %v247_v52  ;;  %v1990_v10 = vrot.slane %v1982_v57, 9  ;;  %v1041_v11 = vrot.slane %v2343_v27, 5  ;;  %v188_v27 = vld [vmem:[%s2313_s21 + $0x2c] sm:$0x1] }
  0x3a   : > { %1409 = vrot.lane.b32.xlu1 %v2055_v2, %s2257_s4  ;;  %v261_v12 = vor.u32 %v260_v54, %v256_v4  ;;  %v266_v56 = vrot.slane %v264_v5, 5  ;;  %v1044_v14 = vrot.slane %v2451_v26, 5  ;;  %v269_v1 = vshrl.u32 %v175_v0, 16  ;;  %v1923_v62 = vld [vmem:[%s2313_s21 + $0x34] sm:$0xf] }
  0x3b   : > { %v838_v3 = vsel %vm2404_vm5, %v833_v6, %v837_v51  ;;  %v252_v18 = vrot.slane %v251_v8, 4  ;;  %v1042_v16 = vsel %vm2357_vm2, %v1990_v10, %v1041_v11  ;;  %v1043_v20 = vrot.slane %v1041_v11, 4  ;;  %v2533_v5 = vld [vmem:[%s2313_s21 + $0x28] sm:$0xf] }
  0x3c   : > { %v2054_v13 = vcombine.low %v828_v61, %v838_v3  ;;  %v262_v7 = vrot.slane %v261_v12, 4  ;;  %v271_v9 = vrot.slane %v269_v1, 4  ;;  %v272_v32 = vshll.u32 %v175_v0, 16  ;;  %v1920_v0 = vld [vmem:[%s2313_s21 + $0x24] sm:$0xf] }
  0x3d   : > { %v257_v22 = vsel %vm2404_vm5, %v252_v18, %v256_v4  ;;  %v1045_v23 = vsel %vm2357_vm2, %v1043_v20, %v1044_v14  ;;  %v278_v24 = vshll.u32 %v176_v15, 16  ;;  %v282_v29 = vshrl.u32 %v176_v15, 16  ;;  %v2545_v20 = vld [vmem:[%s2313_s21 + $0x2c] sm:$0x1] }
  0x3e   : > { %1407 = vrot.lane.b32.xlu0 %v2054_v13, %s2257_s4  ;;  %v267_v30 = vsel %vm2404_vm5, %v262_v7, %v266_v56  ;;  %v2062_v59 = vcombine.low %v1042_v16, %v1045_v23  ;;  %v274_v26 = vrot.slane %v272_v32, 5  ;;  %v288_v28 = vshll.u32 %v188_v27, 16  ;;  %v1943_v32 = vld [vmem:[%s2313_s21 + $0x30] sm:$0xe] }
  0x3f   : > { %v2008_v31 = vcombine.low %v257_v22, %v267_v30  ;;  %v280_v19 = vrot.slane %v278_v24, 5  ;;  %v284_v33 = vrot.slane %v282_v29, 4  ;;  %v1991_v34 = vrot.slane %v1983_v40, 9 }
  0x40   : > { %v275_v36 = vor.u32 %v274_v26, %v271_v9  ;;  %v290_v38 = vrot.slane %v288_v28, 5  ;;  %v1048_v42 = vrot.slane %v2334_v17, 5  ;;  %v1051_v46 = vrot.slane %v2431_v21, 5  ;;  %v1942_v28 = vld [vmem:[%s2313_s21 + $0x24] sm:$0xe] }
  0x41   : > { %1155 = vrot.lane.b32.xlu1 %v2008_v31, %s2255_s26  ;;  %v285_v60 = vor.u32 %v284_v33, %v280_v19  ;;  %v1909_v43 = vrot.slane %v391_v45, 9  ;;  %v446_v47 = vrot.slane %v176_v15, 5  ;;  %v449_v48 = vrot.slane %v188_v27, 5  ;;  %v1935_v15 = vld [vmem:[%s2313_s21 + $0x38] sm:$0x1] }
  0x42   : > { %1447 = vrot.lane.b32.xlu0 %v2062_v59, %s2258_s5  ;;  %v276_v49 = vrot.slane %v275_v36, 4  ;;  %v1049_v50 = vsel %vm2357_vm2, %v1991_v34, %v1048_v42  ;;  %v1050_v17 = vrot.slane %v1048_v42, 4  ;;  %v1908_v21 = vrot.slane %v390_v25, 9 }
  0x43   : > { %v286_v51 = vrot.slane %v285_v60, 4  ;;  %v447_v52 = vsel %vm2357_vm2, %v1909_v43, %v446_v47  ;;  %v448_v53 = vrot.slane %v446_v47, 4  ;;  %v439_v55 = vrot.slane %v2468_v41, 5  ;;  %v2554_v47 = vld [vmem:[%s2313_s21 + $0x3c] sm:$0xf] }
  0x44   : > { %v281_v57 = vsel %vm2404_vm5, %v276_v49, %v280_v19  ;;  %v1052_v58 = vsel %vm2357_vm2, %v1050_v17, %v1051_v46  ;;  %v442_v61 = vrot.slane %v2475_v35, 5  ;;  %v580_v63 = vshrl.u32 %v2510_v44, 16 }
  0x45   : > { %v291_v2 = vsel %vm2404_vm5, %v286_v51, %v290_v38  ;;  %v2063_v4 = vcombine.low %v1049_v50, %v1052_v58  ;;  %v450_v41 = vsel %vm2357_vm2, %v448_v53, %v449_v48  ;;  %v440_v54 = vsel %vm2357_vm2, %v1908_v21, %v439_v55 }
  0x46   : > { %v2009_v6 = vcombine.low %v281_v57, %v291_v2  ;;  %v2017_v35 = vcombine.low %v447_v52, %v450_v41  ;;  %v441_v8 = vrot.slane %v439_v55, 4  ;;  %v582_v10 = vrot.slane %v580_v63, 4  ;;  %v2571_v57 = vld [vmem:[%s2313_s21 + $0x40] sm:$0xf]  ;;  %v2581_v41 = vld [vmem:[%s2313_s21 + $0x34] sm:$0xf] }
  0x47   : > { %1449 = vrot.lane.b32.xlu0 %v2063_v4, %s2258_s5  ;;  %v583_v11 = vshll.u32 %v2510_v44, 16  ;;  %v593_v12 = vshrl.u32 %v1923_v62, 16  ;;  %v2025_v56 = vcombine.low %v2510_v44, %v1923_v62  ;;  %v556_v14 = vshrl.u32 %v1920_v0, 16 }
  0x48   : > { %1157 = vrot.lane.b32.xlu1 %v2009_v6, %s2255_s26  ;;  %v443_v1 = vsel %vm2357_vm2, %v441_v8, %v442_v61  ;;  %v559_v3 = vshll.u32 %v1920_v0, 16  ;;  %v569_v18 = vshrl.u32 %v2533_v5, 16  ;;  %v2024_v16 = vcombine.low %v1920_v0, %v2533_v5 }
  0x49   : > { %v2016_v27 = vcombine.low %v440_v54, %v443_v1  ;;  %v585_v13 = vrot.slane %v583_v11, 5  ;;  %v558_v7 = vrot.slane %v556_v14, 4  ;;  %v589_v9 = vshll.u32 %v1923_v62, 16 }
  0x4a   : > { %v561_v40 = vrot.slane %v559_v3, 5  ;;  %v595_v22 = vrot.slane %v593_v12, 4  ;;  %v599_v23 = vshll.u32 %v1935_v15, 16  ;;  %v565_v24 = vshll.u32 %v2533_v5, 16 }
  0x4b   : > { %1195 = vrot.lane.b32.xlu0 %v2016_v27, %s2254_s25  ;;  %v586_v29 = vor.u32 %v585_v13, %v582_v10  ;;  %v591_v30 = vrot.slane %v589_v9, 5  ;;  %v571_v59 = vrot.slane %v569_v18, 4  ;;  %v575_v26 = vshll.u32 %v2545_v20, 16  ;;  %v2596_v18 = vld [vmem:[%s2313_s21 + $0x38] sm:$0x1] }
  0x4c   : > { %1197 = vrot.lane.b32.xlu1 %v2017_v35, %s2254_s25  ;;  %v601_v45 = vrot.slane %v599_v23, 5  ;;  %v562_v31 = vor.u32 %v561_v40, %v558_v7  ;;  %v567_v19 = vrot.slane %v565_v24, 5  ;;  %v1951_v33 = vrot.slane %v1943_v32, 9  ;;  %v177_v7 = vld [vmem:[%s2313_s21 + $0x30] sm:$0xf] }
  0x4d   : > { %v587_v34 = vrot.slane %v586_v29, 4  ;;  %v596_v25 = vor.u32 %v595_v22, %v591_v30  ;;  %v577_v36 = vrot.slane %v575_v26, 5  ;;  %v754_v38 = vrot.slane %v1923_v62, 5  ;;  %v1962_v62 = vld [vmem:[%s2313_s21 + $0x30] sm:$0xf] }
  0x4e   : > { %v563_v42 = vrot.slane %v562_v31, 4  ;;  %v572_v46 = vor.u32 %v571_v59, %v567_v19  ;;  %v757_v60 = vrot.slane %v1935_v15, 5  ;;  %v1950_v43 = vrot.slane %v1942_v28, 9  ;;  %v2605_v59 = vld [vmem:[%s2313_s21 + $0x34] sm:$0xf] }
  0x4f   : > { %1243 = vrot.lane.b32.xlu0 %v2024_v16, %s2251_s22  ;;  %v592_v48 = vsel %vm2404_vm5, %v587_v34, %v591_v30  ;;  %v597_v44 = vrot.slane %v596_v25, 4  ;;  %v755_v49 = vsel %vm2357_vm2, %v1951_v33, %v754_v38  ;;  %v756_v50 = vrot.slane %v754_v38, 4  ;;  %v1984_v38 = vld [vmem:[%s2313_s21 + $0x30] sm:$0xe] }
  0x50   : > { %1245 = vrot.lane.b32.xlu1 %v2025_v56, %s2251_s22  ;;  %v568_v17 = vsel %vm2404_vm5, %v563_v42, %v567_v19  ;;  %v573_v21 = vrot.slane %v572_v46, 4  ;;  %v747_v51 = vrot.slane %v2533_v5, 5  ;;  %v750_v52 = vrot.slane %v2545_v20, 5  ;;  %v2588_v56 = vld [vmem:[%s2313_s21 + $0x44] sm:$0x1] }
  0x51   : > { %v602_v53 = vsel %vm2404_vm5, %v597_v44, %v601_v45  ;;  %v758_v55 = vsel %vm2357_vm2, %v756_v50, %v757_v60  ;;  %v888_v58 = vshrl.u32 %v2554_v47, 16  ;;  %v891_v61 = vshll.u32 %v2554_v47, 16  ;;  %v2609_v45 = vld [vmem:[%s2313_s21 + $0x38] sm:$0x1] }
  0x52   : > { %v2033_v63 = vcombine.low %v592_v48, %v602_v53  ;;  %v578_v0 = vsel %vm2404_vm5, %v573_v21, %v577_v36  ;;  %v2041_v2 = vcombine.low %v755_v49, %v758_v55  ;;  %v748_v4 = vsel %vm2357_vm2, %v1950_v43, %v747_v51 }
  0x53   : > { %v2032_v54 = vcombine.low %v568_v17, %v578_v0  ;;  %v749_v5 = vrot.slane %v747_v51, 4  ;;  %v890_v6 = vrot.slane %v888_v58, 4  ;;  %v893_v35 = vrot.slane %v891_v61, 5 }
  0x54   : > { %1285 = vrot.lane.b32.xlu1 %v2033_v63, %s2256_s3  ;;  %v901_v8 = vshrl.u32 %v2571_v57, 16  ;;  %v2049_v10 = vcombine.low %v2554_v47, %v2571_v57  ;;  %v864_v11 = vshrl.u32 %v1962_v62, 16  ;;  %v867_v12 = vshll.u32 %v1962_v62, 16 }
  0x55   : > { %1283 = vrot.lane.b32.xlu0 %v2032_v54, %s2256_s3  ;;  %v751_v14 = vsel %vm2357_vm2, %v749_v5, %v750_v52  ;;  %v877_v15 = vshrl.u32 %v2581_v41, 16  ;;  %v2048_v1 = vcombine.low %v1962_v62, %v2581_v41  ;;  %v894_v3 = vor.u32 %v893_v35, %v890_v6  ;;  %v2622_v52 = vld [vmem:[%s2313_s21 + $0x3c] sm:$0xf]  ;;  %v2628_v62 = vld [vmem:[%s2313_s21 + $0x40] sm:$0xf] }
  0x56   : > { %v2040_v16 = vcombine.low %v748_v4, %v751_v14  ;;  %v866_v20 = vrot.slane %v864_v11, 4  ;;  %v869_v27 = vrot.slane %v867_v12, 5  ;;  %v897_v13 = vshll.u32 %v2571_v57, 16  ;;  %v190_v54 = vld [vmem:[%s2313_s21 + $0x44] sm:$0x1] }
  0x57   : > { %v895_v9 = vrot.slane %v894_v3, 4  ;;  %v903_v32 = vrot.slane %v901_v8, 4  ;;  %v907_v40 = vshll.u32 %v2588_v56, 16  ;;  %v873_v22 = vshll.u32 %v2581_v41, 16  ;;  %v1985_v14 = vld [vmem:[%s2313_s21 + $0x3c] sm:$0xe] }
  0x58   : > { %1325 = vrot.lane.b32.xlu1 %v2041_v2, %s2253_s24  ;;  %v899_v23 = vrot.slane %v897_v13, 5  ;;  %v870_v24 = vor.u32 %v869_v27, %v866_v20  ;;  %v879_v29 = vrot.slane %v877_v15, 4  ;;  %v883_v30 = vshll.u32 %v2596_v18, 16 }
  0x59   : > { %1323 = vrot.lane.b32.xlu0 %v2040_v16, %s2253_s24  ;;  %v909_v26 = vrot.slane %v907_v40, 5  ;;  %v875_v28 = vrot.slane %v873_v22, 5  ;;  %v293_v31 = vshrl.u32 %v177_v7, 16  ;;  %v296_v19 = vshll.u32 %v177_v7, 16  ;;  %v393_v7 = vld [vmem:[%s2313_s21 + $0x3c] sm:$0xe] }
  0x5a   : > { %v900_v33 = vsel %vm2404_vm5, %v895_v9, %v899_v23  ;;  %v904_v34 = vor.u32 %v903_v32, %v899_v23  ;;  %v871_v25 = vrot.slane %v870_v24, 4  ;;  %v885_v36 = vrot.slane %v883_v30, 5  ;;  %v392_v23 = vld [vmem:[%s2313_s21 + $0x30] sm:$0xe] }
  0x5b   : > { %v880_v42 = vor.u32 %v879_v29, %v875_v28  ;;  %v295_v46 = vrot.slane %v293_v31, 4  ;;  %v298_v60 = vrot.slane %v296_v19, 5  ;;  %v302_v43 = vshll.u32 %v2605_v59, 16 }
  0x5c   : > { %1373 = vrot.lane.b32.xlu1 %v2049_v10, %s2252_s23  ;;  %v905_v47 = vrot.slane %v904_v34, 4  ;;  %v876_v48 = vsel %vm2404_vm5, %v871_v25, %v875_v28  ;;  %v306_v44 = vshrl.u32 %v2605_v59, 16  ;;  %v312_v49 = vshll.u32 %v2609_v45, 16  ;;  %v2656_v34 = vld [vmem:[%s2313_s21 + $0x48] sm:$0xf] }
  0x5d   : > { %1371 = vrot.lane.b32.xlu0 %v2048_v1, %s2252_s23  ;;  %v881_v50 = vrot.slane %v880_v42, 4  ;;  %v299_v17 = vor.u32 %v298_v60, %v295_v46  ;;  %v304_v21 = vrot.slane %v302_v43, 5  ;;  %v1992_v51 = vrot.slane %v1984_v38, 9 }
  0x5e   : > { %v910_v53 = vsel %vm2404_vm5, %v905_v47, %v909_v26  ;;  %v308_v55 = vrot.slane %v306_v44, 4  ;;  %v314_v58 = vrot.slane %v312_v49, 5  ;;  %v1055_v61 = vrot.slane %v2581_v41, 5  ;;  %v1927_v44 = vld [vmem:[%s2313_s21 + $0x4c] sm:$0xf] }
  0x5f   : > { %v2057_v63 = vcombine.low %v900_v33, %v910_v53  ;;  %v886_v0 = vsel %vm2404_vm5, %v881_v50, %v885_v36  ;;  %v300_v2 = vrot.slane %v299_v17, 4  ;;  %v1058_v4 = vrot.slane %v2596_v18, 5  ;;  %v1924_v50 = vld [vmem:[%s2313_s21 + $0x3c] sm:$0xf]  ;;  %v2679_v53 = vld [vmem:[%s2313_s21 + $0x40] sm:$0xf] }
  0x60   : > { %v2056_v5 = vcombine.low %v876_v48, %v886_v0  ;;  %v309_v6 = vor.u32 %v308_v55, %v304_v21  ;;  %v1056_v35 = vsel %vm2357_vm2, %v1992_v51, %v1055_v61  ;;  %v1057_v8 = vrot.slane %v1055_v61, 4 }
  0x61   : > { %1413 = vrot.lane.b32.xlu1 %v2057_v63, %s2257_s4  ;;  %v305_v41 = vsel %vm2404_vm5, %v300_v2, %v304_v21  ;;  %v317_v10 = vshrl.u32 %v2622_v52, 16  ;;  %v320_v11 = vshll.u32 %v2622_v52, 16  ;;  %v326_v12 = vshll.u32 %v2628_v62, 16 }
  0x62   : > { %1411 = vrot.lane.b32.xlu0 %v2056_v5, %s2257_s4  ;;  %v310_v15 = vrot.slane %v309_v6, 4  ;;  %v1059_v1 = vsel %vm2357_vm2, %v1057_v8, %v1058_v4  ;;  %v330_v3 = vshrl.u32 %v2628_v62, 16  ;;  %v336_v18 = vshll.u32 %v190_v54, 16 }
  0x63   : > { %v2064_v16 = vcombine.low %v1056_v35, %v1059_v1  ;;  %v319_v20 = vrot.slane %v317_v10, 4  ;;  %v322_v27 = vrot.slane %v320_v11, 5  ;;  %v328_v13 = vrot.slane %v326_v12, 5 }
  0x64   : > { %v315_v9 = vsel %vm2404_vm5, %v310_v15, %v314_v58  ;;  %v332_v32 = vrot.slane %v330_v3, 4  ;;  %v338_v40 = vrot.slane %v336_v18, 5  ;;  %v1993_v22 = vrot.slane %v1985_v14, 9  ;;  %v1945_v15 = vld [vmem:[%s2313_s21 + $0x48] sm:$0xe] }
  0x65   : > { %v2010_v24 = vcombine.low %v305_v41, %v315_v9  ;;  %v323_v29 = vor.u32 %v322_v27, %v319_v20  ;;  %v1062_v30 = vrot.slane %v2571_v57, 5  ;;  %v1065_v26 = vrot.slane %v2588_v56, 5  ;;  %v2691_v41 = vld [vmem:[%s2313_s21 + $0x44] sm:$0x1]  ;;  %v1944_v9 = vld [vmem:[%s2313_s21 + $0x3c] sm:$0xe] }
  0x66   : > { %1451 = vrot.lane.b32.xlu0 %v2064_v16, %s2258_s5  ;;  %v333_v28 = vor.u32 %v332_v32, %v328_v13  ;;  %v1911_v31 = vrot.slane %v393_v7, 9  ;;  %v460_v19 = vrot.slane %v2628_v62, 5  ;;  %v463_v33 = vrot.slane %v190_v54, 5  ;;  %v1937_v54 = vld [vmem:[%s2313_s21 + $0x50] sm:$0x1] }
  0x67   : > { %1159 = vrot.lane.b32.xlu1 %v2010_v24, %s2255_s26  ;;  %v324_v25 = vrot.slane %v323_v29, 4  ;;  %v1063_v36 = vsel %vm2357_vm2, %v1993_v22, %v1062_v30  ;;  %v1064_v57 = vrot.slane %v1062_v30, 4  ;;  %v1910_v56 = vrot.slane %v392_v23, 9 }
  0x68   : > { %v334_v38 = vrot.slane %v333_v28, 4  ;;  %v461_v42 = vsel %vm2357_vm2, %v1911_v31, %v460_v19  ;;  %v462_v46 = vrot.slane %v460_v19, 4  ;;  %v453_v60 = vrot.slane %v2605_v59, 5 }
  0x69   : > { %v329_v43 = vsel %vm2404_vm5, %v324_v25, %v328_v13  ;;  %v1066_v47 = vsel %vm2357_vm2, %v1064_v57, %v1065_v26  ;;  %v456_v48 = vrot.slane %v2609_v45, 5  ;;  %v628_v49 = vshrl.u32 %v2656_v34, 16 }
  0x6a   : > { %v339_v17 = vsel %vm2404_vm5, %v334_v38, %v338_v40  ;;  %v2065_v21 = vcombine.low %v1063_v36, %v1066_v47  ;;  %v464_v59 = vsel %vm2357_vm2, %v462_v46, %v463_v33  ;;  %v454_v51 = vsel %vm2357_vm2, %v1910_v56, %v453_v60 }
  0x6b   : > { %v2011_v55 = vcombine.low %v329_v43, %v339_v17  ;;  %v2019_v45 = vcombine.low %v461_v42, %v464_v59  ;;  %v455_v58 = vrot.slane %v453_v60, 4  ;;  %v630_v61 = vrot.slane %v628_v49, 4 }
  0x6c   : > { %1453 = vrot.lane.b32.xlu0 %v2065_v21, %s2258_s5  ;;  %v631_v63 = vshll.u32 %v2656_v34, 16  ;;  %v641_v0 = vshrl.u32 %v1927_v44, 16  ;;  %v2027_v2 = vcombine.low %v2656_v34, %v1927_v44  ;;  %v604_v4 = vshrl.u32 %v1924_v50, 16  ;;  %v2700_v34 = vld [vmem:[%s2313_s21 + $0x54] sm:$0xf] }
  0x6d   : > { %1161 = vrot.lane.b32.xlu1 %v2011_v55, %s2255_s26  ;;  %v457_v5 = vsel %vm2357_vm2, %v455_v58, %v456_v48  ;;  %v607_v6 = vshll.u32 %v1924_v50, 16  ;;  %v617_v35 = vshrl.u32 %v2679_v53, 16  ;;  %v2026_v8 = vcombine.low %v1924_v50, %v2679_v53  ;;  %v2717_v48 = vld [vmem:[%s2313_s21 + $0x58] sm:$0xf]  ;;  %v1966_v50 = vld [vmem:[%s2313_s21 + $0x48] sm:$0xf] }
  0x6e   : > { %v2018_v10 = vcombine.low %v454_v51, %v457_v5  ;;  %v633_v11 = vrot.slane %v631_v63, 5  ;;  %v606_v12 = vrot.slane %v604_v4, 4  ;;  %v637_v14 = vshll.u32 %v1927_v44, 16 }
  0x6f   : > { %v609_v1 = vrot.slane %v607_v6, 5  ;;  %v643_v3 = vrot.slane %v641_v0, 4  ;;  %v647_v18 = vshll.u32 %v1937_v54, 16  ;;  %v613_v16 = vshll.u32 %v2679_v53, 16 }
  0x70   : > { %1199 = vrot.lane.b32.xlu0 %v2018_v10, %s2254_s25  ;;  %v634_v20 = vor.u32 %v633_v11, %v630_v61  ;;  %v639_v27 = vrot.slane %v637_v14, 5  ;;  %v619_v13 = vrot.slane %v617_v35, 4  ;;  %v623_v7 = vshll.u32 %v2691_v41, 16 }
  0x71   : > { %1201 = vrot.lane.b32.xlu1 %v2019_v45, %s2254_s25  ;;  %v649_v32 = vrot.slane %v647_v18, 5  ;;  %v610_v40 = vor.u32 %v609_v1, %v606_v12  ;;  %v615_v22 = vrot.slane %v613_v16, 5  ;;  %v1953_v23 = vrot.slane %v1945_v15, 9  ;;  %v2746_v15 = vld [vmem:[%s2313_s21 + $0x48] sm:$0xf] }
  0x72   : > { %v635_v24 = vrot.slane %v634_v20, 4  ;;  %v644_v29 = vor.u32 %v643_v3, %v639_v27  ;;  %v625_v30 = vrot.slane %v623_v7, 5  ;;  %v768_v26 = vrot.slane %v1927_v44, 5 }
  0x73   : > { %v611_v28 = vrot.slane %v610_v40, 4  ;;  %v620_v31 = vor.u32 %v619_v13, %v615_v22  ;;  %v771_v19 = vrot.slane %v1937_v54, 5  ;;  %v1952_v33 = vrot.slane %v1944_v9, 9  ;;  %v2734_v54 = vld [vmem:[%s2313_s21 + $0x5c] sm:$0x1] }
  0x74   : > { %1247 = vrot.lane.b32.xlu0 %v2026_v8, %s2251_s22  ;;  %v640_v25 = vsel %vm2404_vm5, %v635_v24, %v639_v27  ;;  %v645_v36 = vrot.slane %v644_v29, 4  ;;  %v769_v57 = vsel %vm2357_vm2, %v1953_v23, %v768_v26  ;;  %v770_v56 = vrot.slane %v768_v26, 4  ;;  %v2753_v9 = vld [vmem:[%s2313_s21 + $0x4c] sm:$0xf] }
  0x75   : > { %1249 = vrot.lane.b32.xlu1 %v2027_v2, %s2251_s22  ;;  %v616_v38 = vsel %vm2404_vm5, %v611_v28, %v615_v22  ;;  %v621_v42 = vrot.slane %v620_v31, 4  ;;  %v761_v46 = vrot.slane %v2679_v53, 5  ;;  %v764_v60 = vrot.slane %v2691_v41, 5  ;;  %v2727_v53 = vld [vmem:[%s2313_s21 + $0x4c] sm:$0xf] }
  0x76   : > { %v650_v43 = vsel %vm2404_vm5, %v645_v36, %v649_v32  ;;  %v772_v47 = vsel %vm2357_vm2, %v770_v56, %v771_v19  ;;  %v936_v44 = vshrl.u32 %v2700_v34, 16  ;;  %v939_v49 = vshll.u32 %v2700_v34, 16  ;;  %v2742_v41 = vld [vmem:[%s2313_s21 + $0x50] sm:$0x1]  ;;  %v1986_v31 = vld [vmem:[%s2313_s21 + $0x48] sm:$0xe] }
  0x77   : > { %v2035_v17 = vcombine.low %v640_v25, %v650_v43  ;;  %v626_v21 = vsel %vm2404_vm5, %v621_v42, %v625_v30  ;;  %v2043_v59 = vcombine.low %v769_v57, %v772_v47  ;;  %v762_v51 = vsel %vm2357_vm2, %v1952_v33, %v761_v46  ;;  %v2757_v22 = vld [vmem:[%s2313_s21 + $0x50] sm:$0x1]  ;;  %v2772_v47 = vld [vmem:[%s2313_s21 + $0x54] sm:$0xf] }
  0x78   : > { %v2034_v55 = vcombine.low %v616_v38, %v626_v21  ;;  %v763_v45 = vrot.slane %v761_v46, 4  ;;  %v938_v58 = vrot.slane %v936_v44, 4  ;;  %v941_v61 = vrot.slane %v939_v49, 5  ;;  %v2778_v21 = vld [vmem:[%s2313_s21 + $0x58] sm:$0xf] }
  0x79   : > { %1289 = vrot.lane.b32.xlu1 %v2035_v17, %s2256_s3  ;;  %v949_v63 = vshrl.u32 %v2717_v48, 16  ;;  %v2051_v0 = vcombine.low %v2700_v34, %v2717_v48  ;;  %v912_v2 = vshrl.u32 %v1966_v50, 16  ;;  %v915_v4 = vshll.u32 %v1966_v50, 16 }
  0x7a   : > { %1287 = vrot.lane.b32.xlu0 %v2034_v55, %s2256_s3  ;;  %v765_v5 = vsel %vm2357_vm2, %v763_v45, %v764_v60  ;;  %v925_v6 = vshrl.u32 %v2727_v53, 16  ;;  %v2050_v35 = vcombine.low %v1966_v50, %v2727_v53  ;;  %v942_v8 = vor.u32 %v941_v61, %v938_v58  ;;  %v192_v58 = vld [vmem:[%s2313_s21 + $0x5c] sm:$0x1] }
  0x7b   : > { %v2042_v10 = vcombine.low %v762_v51, %v765_v5  ;;  %v914_v11 = vrot.slane %v912_v2, 4  ;;  %v917_v12 = vrot.slane %v915_v4, 5  ;;  %v945_v14 = vshll.u32 %v2717_v48, 16 }
  0x7c   : > { %v943_v1 = vrot.slane %v942_v8, 4  ;;  %v951_v3 = vrot.slane %v949_v63, 4  ;;  %v955_v18 = vshll.u32 %v2734_v54, 16  ;;  %v921_v16 = vshll.u32 %v2727_v53, 16 }
  0x7d   : > { %1329 = vrot.lane.b32.xlu1 %v2043_v59, %s2253_s24  ;;  %v947_v20 = vrot.slane %v945_v14, 5  ;;  %v918_v27 = vor.u32 %v917_v12, %v914_v11  ;;  %v927_v13 = vrot.slane %v925_v6, 4  ;;  %v931_v7 = vshll.u32 %v2742_v41, 16 }
  0x7e   : > { %1327 = vrot.lane.b32.xlu0 %v2042_v10, %s2253_s24  ;;  %v957_v32 = vrot.slane %v955_v18, 5  ;;  %v923_v40 = vrot.slane %v921_v16, 5  ;;  %v341_v23 = vshrl.u32 %v2746_v15, 16  ;;  %v344_v24 = vshll.u32 %v2746_v15, 16  ;;  %v395_v18 = vld [vmem:[%s2313_s21 + $0x54] sm:$0xe] }
  0x7f   : > { %v948_v29 = vsel %vm2404_vm5, %v943_v1, %v947_v20  ;;  %v952_v30 = vor.u32 %v951_v3, %v947_v20  ;;  %v919_v26 = vrot.slane %v918_v27, 4  ;;  %v933_v28 = vrot.slane %v931_v7, 5  ;;  %v394_v7 = vld [vmem:[%s2313_s21 + $0x48] sm:$0xe] }
  0x80   : > { %v928_v19 = vor.u32 %v927_v13, %v923_v40  ;;  %v343_v33 = vrot.slane %v341_v23, 4  ;;  %v346_v34 = vrot.slane %v344_v24, 5  ;;  %v350_v25 = vshll.u32 %v2753_v9, 16 }
  0x81   : > { %1377 = vrot.lane.b32.xlu1 %v2051_v0, %s2252_s23  ;;  %v953_v36 = vrot.slane %v952_v30, 4  ;;  %v924_v57 = vsel %vm2404_vm5, %v919_v26, %v923_v40  ;;  %v354_v56 = vshrl.u32 %v2753_v9, 16  ;;  %v360_v38 = vshll.u32 %v2757_v22, 16 }
  0x82   : > { %1375 = vrot.lane.b32.xlu0 %v2050_v35, %s2252_s23  ;;  %v929_v42 = vrot.slane %v928_v19, 4  ;;  %v347_v46 = vor.u32 %v346_v34, %v343_v33  ;;  %v352_v60 = vrot.slane %v350_v25, 5  ;;  %v1994_v43 = vrot.slane %v1986_v31, 9  ;;  %v1987_v35 = vld [vmem:[%s2313_s21 + $0x54] sm:$0xe] }
  0x83   : > { %v958_v44 = vsel %vm2404_vm5, %v953_v36, %v957_v32  ;;  %v356_v49 = vrot.slane %v354_v56, 4  ;;  %v362_v50 = vrot.slane %v360_v38, 5  ;;  %v1069_v17 = vrot.slane %v2727_v53, 5  ;;  %v2806_v31 = vld [vmem:[%s2313_s21 + $0x60] sm:$0xf] }
  0x84   : > { %v2059_v59 = vcombine.low %v948_v29, %v958_v44  ;;  %v934_v51 = vsel %vm2404_vm5, %v929_v42, %v933_v28  ;;  %v348_v55 = vrot.slane %v347_v46, 4  ;;  %v1072_v45 = vrot.slane %v2742_v41, 5  ;;  %v1928_v44 = vld [vmem:[%s2313_s21 + $0x54] sm:$0xf] }
  0x85   : > { %v2058_v61 = vcombine.low %v924_v57, %v934_v51  ;;  %v357_v63 = vor.u32 %v356_v49, %v352_v60  ;;  %v1070_v0 = vsel %vm2357_vm2, %v1994_v43, %v1069_v17  ;;  %v1071_v2 = vrot.slane %v1069_v17, 4  ;;  %v2831_v51 = vld [vmem:[%s2313_s21 + $0x58] sm:$0xf] }
  0x86   : > { %1417 = vrot.lane.b32.xlu1 %v2059_v59, %s2257_s4  ;;  %v353_v53 = vsel %vm2404_vm5, %v348_v55, %v352_v60  ;;  %v365_v4 = vshrl.u32 %v2772_v47, 16  ;;  %v368_v5 = vshll.u32 %v2772_v47, 16  ;;  %v374_v6 = vshll.u32 %v2778_v21, 16  ;;  %v1931_v60 = vld [vmem:[%s2313_s21 + $0x64] sm:$0xf] }
  0x87   : > { %1415 = vrot.lane.b32.xlu0 %v2058_v61, %s2257_s4  ;;  %v358_v8 = vrot.slane %v357_v63, 4  ;;  %v1073_v41 = vsel %vm2357_vm2, %v1071_v2, %v1072_v45  ;;  %v378_v10 = vshrl.u32 %v2778_v21, 16  ;;  %v384_v11 = vshll.u32 %v192_v58, 16 }
  0x88   : > { %v2066_v12 = vcombine.low %v1070_v0, %v1073_v41  ;;  %v367_v14 = vrot.slane %v365_v4, 4  ;;  %v370_v1 = vrot.slane %v368_v5, 5  ;;  %v376_v3 = vrot.slane %v374_v6, 5  ;;  %v1939_v4 = vld [vmem:[%s2313_s21 + $0x68] sm:$0x1] }
  0x89   : > { %v363_v16 = vsel %vm2404_vm5, %v358_v8, %v362_v50  ;;  %v380_v20 = vrot.slane %v378_v10, 4  ;;  %v386_v27 = vrot.slane %v384_v11, 5  ;;  %v1995_v13 = vrot.slane %v1987_v35, 9  ;;  %v2847_v10 = vld [vmem:[%s2313_s21 + $0x5c] sm:$0x1] }
  0x8a   : > { %v2012_v32 = vcombine.low %v353_v53, %v363_v16  ;;  %v371_v40 = vor.u32 %v370_v1, %v367_v14  ;;  %v1076_v23 = vrot.slane %v2717_v48, 5  ;;  %v1079_v24 = vrot.slane %v2734_v54, 5  ;;  %v2808_v19 = vpop.permute.xlu1 %1241 }
  0x8b   : > { %1455 = vrot.lane.b32.xlu0 %v2066_v12, %s2258_s5  ;;  %v381_v29 = vor.u32 %v380_v20, %v376_v3  ;;  %v1913_v30 = vrot.slane %v395_v18, 9  ;;  %v474_v26 = vrot.slane %v2778_v21, 5  ;;  %v477_v28 = vrot.slane %v192_v58, 5  ;;  %v2833_v55 = vpop.permute.xlu0 %1239 }
  0x8c   : > { %1163 = vrot.lane.b32.xlu1 %v2012_v32, %s2255_s26  ;;  %v372_v33 = vrot.slane %v371_v40, 4  ;;  %v1077_v48 = vsel %vm2357_vm2, %v1995_v13, %v1076_v23  ;;  %v1078_v54 = vrot.slane %v1076_v23, 4  ;;  %v1912_v34 = vrot.slane %v394_v7, 9  ;;  %v1946_v23 = vld [vmem:[%s2313_s21 + $0x54] sm:$0xe] }
  0x8d   : > { %v382_v25 = vrot.slane %v381_v29, 4  ;;  %v475_v36 = vsel %vm2357_vm2, %v1913_v30, %v474_v26  ;;  %v476_v57 = vrot.slane %v474_v26, 4  ;;  %v467_v56 = vrot.slane %v2753_v9, 5 }
  0x8e   : > { %v377_v38 = vsel %vm2404_vm5, %v372_v33, %v376_v3  ;;  %v1080_v42 = vsel %vm2357_vm2, %v1078_v54, %v1079_v24  ;;  %v470_v46 = vrot.slane %v2757_v22, 5  ;;  %v676_v43 = vshrl.u32 %v2806_v31, 16  ;;  %v2839_v5 = vpop.permute.xlu1 %1369  ;;  %v1947_v3 = vld [vmem:[%s2313_s21 + $0x60] sm:$0xe] }
  0x8f   : > { %v387_v49 = vsel %vm2404_vm5, %v382_v25, %v386_v27  ;;  %v2067_v50 = vcombine.low %v1077_v48, %v1080_v42  ;;  %v478_v17 = vsel %vm2357_vm2, %v476_v57, %v477_v28  ;;  %v468_v59 = vsel %vm2357_vm2, %v1912_v34, %v467_v56 }
  0x90   : > { %v2013_v22 = vcombine.low %v377_v38, %v387_v49  ;;  %v2021_v45 = vcombine.low %v475_v36, %v478_v17  ;;  %v469_v58 = vrot.slane %v467_v56, 4  ;;  %v678_v61 = vrot.slane %v676_v43, 4  ;;  %v2854_v24 = vpop.permute.xlu0 %1367  ;;  %v2860_v38 = vld [vmem:[%s2313_s21 + $0x6c] sm:$0xf] }
  0x91   : > { %1457 = vrot.lane.b32.xlu0 %v2067_v50, %s2258_s5  ;;  %v679_v63 = vshll.u32 %v2806_v31, 16  ;;  %v689_v0 = vshrl.u32 %v1931_v60, 16  ;;  %v2029_v2 = vcombine.low %v2806_v31, %v1931_v60  ;;  %v652_v53 = vshrl.u32 %v1928_v44, 16 }
  0x92   : > { %1165 = vrot.lane.b32.xlu1 %v2013_v22, %s2255_s26  ;;  %v471_v6 = vsel %vm2357_vm2, %v469_v58, %v470_v46  ;;  %v655_v35 = vshll.u32 %v1928_v44, 16  ;;  %v665_v8 = vshrl.u32 %v2831_v51, 16  ;;  %v2028_v41 = vcombine.low %v1928_v44, %v2831_v51 }
  0x93   : > { %v2020_v11 = vcombine.low %v468_v59, %v471_v6  ;;  %v681_v12 = vrot.slane %v679_v63, 5  ;;  %v654_v14 = vrot.slane %v652_v53, 4  ;;  %v685_v1 = vshll.u32 %v1931_v60, 16  ;;  %v1970_v63 = vld [vmem:[%s2313_s21 + $0x60] sm:$0xf] }
  0x94   : > { %v657_v18 = vrot.slane %v655_v35, 5  ;;  %v691_v16 = vrot.slane %v689_v0, 4  ;;  %v695_v20 = vshll.u32 %v1939_v4, 16  ;;  %v661_v27 = vshll.u32 %v2831_v51, 16 }
  0x95   : > { %1203 = vrot.lane.b32.xlu0 %v2020_v11, %s2254_s25  ;;  %v682_v13 = vor.u32 %v681_v12, %v678_v61  ;;  %v687_v7 = vrot.slane %v685_v1, 5  ;;  %v667_v32 = vrot.slane %v665_v8, 4  ;;  %v671_v40 = vshll.u32 %v2847_v10, 16 }
  0x96   : > { %1205 = vrot.lane.b32.xlu1 %v2021_v45, %s2254_s25  ;;  %v697_v29 = vrot.slane %v695_v20, 5  ;;  %v658_v30 = vor.u32 %v657_v18, %v654_v14  ;;  %v663_v26 = vrot.slane %v661_v27, 5  ;;  %v1955_v28 = vrot.slane %v1947_v3, 9  ;;  %v1973_v45 = vld [vmem:[%s2313_s21 + $0x70] sm:$0xf]  ;;  %v2880_v0 = vpop.permute.xlu0 %1319 }
  0x97   : > { %v683_v31 = vrot.slane %v682_v13, 4  ;;  %v692_v33 = vor.u32 %v691_v16, %v687_v7  ;;  %v673_v48 = vrot.slane %v671_v40, 5  ;;  %v782_v54 = vrot.slane %v1931_v60, 5  ;;  %v2857_v34 = vpop.permute.xlu1 %1191  ;;  %v1981_v3 = vld [vmem:[%s2313_s21 + $0x74] sm:$0x1] }
  0x98   : > { %v659_v25 = vrot.slane %v658_v30, 4  ;;  %v668_v36 = vor.u32 %v667_v32, %v663_v26  ;;  %v785_v57 = vrot.slane %v1939_v4, 5  ;;  %v1954_v56 = vrot.slane %v1946_v23, 9  ;;  %v2887_v4 = vld [vmem:[%s2313_s21 + $0x64] sm:$0xf] }
  0x99   : > { %1251 = vrot.lane.b32.xlu0 %v2028_v41, %s2251_s22  ;;  %v688_v42 = vsel %vm2404_vm5, %v683_v31, %v687_v7  ;;  %v693_v46 = vrot.slane %v692_v33, 4  ;;  %v783_v43 = vsel %vm2357_vm2, %v1955_v28, %v782_v54  ;;  %v784_v60 = vrot.slane %v782_v54, 4  ;;  %v1980_v13 = vld [vmem:[%s2313_s21 + $0x68] sm:$0x1] }
  0x9a   : > { %1253 = vrot.lane.b32.xlu1 %v2029_v2, %s2251_s22  ;;  %v664_v44 = vsel %vm2404_vm5, %v659_v25, %v663_v26  ;;  %v669_v49 = vrot.slane %v668_v36, 4  ;;  %v775_v50 = vrot.slane %v2831_v51, 5  ;;  %v778_v17 = vrot.slane %v2847_v10, 5 }
  0x9b   : > { %v698_v59 = vsel %vm2404_vm5, %v693_v46, %v697_v29  ;;  %v786_v22 = vsel %vm2357_vm2, %v784_v60, %v785_v57  ;;  %v984_v58 = vshrl.u32 %v2860_v38, 16  ;;  %v987_v61 = vshll.u32 %v2860_v38, 16  ;;  %v2889_v6 = vpop.permute.xlu1 %1193  ;;  %v1989_v29 = vld [vmem:[%s2313_s21 + $0x6c] sm:$0xe] }
  0x9c   : > { %v2037_v2 = vcombine.low %v688_v42, %v698_v59  ;;  %v674_v51 = vsel %vm2404_vm5, %v669_v49, %v673_v48  ;;  %v776_v53 = vsel %vm2357_vm2, %v1954_v56, %v775_v50  ;;  %v777_v8 = vrot.slane %v775_v50, 4 }
  0x9d   : > { %v2036_v35 = vcombine.low %v664_v44, %v674_v51  ;;  %v986_v41 = vrot.slane %v984_v58, 4  ;;  %v989_v10 = vrot.slane %v987_v61, 5  ;;  %v2045_v11 = vcombine.low %v783_v43, %v786_v22  ;;  %v1988_v43 = vld [vmem:[%s2313_s21 + $0x60] sm:$0xe] }
  0x9e   : > { %1293 = vrot.lane.b32.xlu1 %v2037_v2, %s2256_s3  ;;  %v997_v12 = vshrl.u32 %v1973_v45, 16  ;;  %v960_v14 = vshrl.u32 %v1970_v63, 16  ;;  %v963_v1 = vshll.u32 %v1970_v63, 16  ;;  %v779_v18 = vsel %vm2357_vm2, %v777_v8, %v778_v17 }
  0x9f   : > { %1291 = vrot.lane.b32.xlu0 %v2036_v35, %s2256_s3  ;;  %v2053_v16 = vcombine.low %v2860_v38, %v1973_v45  ;;  %v973_v20 = vshrl.u32 %v2887_v4, 16  ;;  %v990_v27 = vor.u32 %v989_v10, %v986_v41  ;;  %v2044_v7 = vcombine.low %v776_v53, %v779_v18  ;;  %v2902_v57 = vpop.permute.xlu1 %1321  ;;  %v2201_v41 = vld [vmem:[%s2313_s21 + $0x4] sm:$0xf]  ;;  %v2202_v10 = vld [vmem:[%s2313_s21] sm:$0xf] }
  0xa0   : > { %v962_v32 = vrot.slane %v960_v14, 4  ;;  %v965_v40 = vrot.slane %v963_v1, 5  ;;  %v993_v23 = vshll.u32 %v1973_v45, 16  ;;  %v999_v26 = vrot.slane %v997_v12, 4 }
  0xa1   : > { %v991_v30 = vrot.slane %v990_v27, 4  ;;  %v1003_v28 = vshll.u32 %v1981_v3, 16  ;;  %v969_v31 = vshll.u32 %v2887_v4, 16  ;;  %v1152_v33 = vpop.permute.xlu0 %1151  ;;  %v975_v25 = vrot.slane %v973_v20, 4 }
  0xa2   : > { %1333 = vrot.lane.b32.xlu1 %v2045_v11, %s2253_s24  ;;  %v995_v48 = vrot.slane %v993_v23, 5  ;;  %v966_v54 = vor.u32 %v965_v40, %v962_v32  ;;  %v979_v36 = vshll.u32 %v1980_v13, 16  ;;  %v2052_v56 = vcombine.low %v1970_v63, %v2887_v4  ;;  %v2204_v32 = vld [vmem:[%s2313_s21 + $0xc] sm:$0xf] }
  0xa3   : > { %1331 = vrot.lane.b32.xlu0 %v2044_v7, %s2253_s24  ;;  %v971_v38 = vrot.slane %v969_v31, 5  ;;  %v1997_v42 = vrot.slane %v1989_v29, 9  ;;  %v1090_v46 = vrot.slane %v1973_v45, 5  ;;  %v1005_v49 = vrot.slane %v1003_v28, 5  ;;  %v2203_v7 = vld [vmem:[%s2313_s21 + $0x10] sm:$0xf] }
  0xa4   : > { %v996_v60 = vsel %vm2404_vm5, %v991_v30, %v995_v48  ;;  %v1000_v44 = vor.u32 %v999_v26, %v995_v48  ;;  %v967_v50 = vrot.slane %v966_v54, 4  ;;  %v981_v59 = vrot.slane %v979_v36, 5 }
  0xa5   : > { %v976_v17 = vor.u32 %v975_v25, %v971_v38  ;;  %v1092_v22 = vrot.slane %v1090_v46, 4  ;;  %v1093_v58 = vrot.slane %v1981_v3, 5  ;;  %v1154_v61 = vpop.permute.xlu0 %1153  ;;  %v1091_v45 = vsel %vm2357_vm2, %v1997_v42, %v1090_v46 }
  0xa6   : > { %1381 = vrot.lane.b32.xlu1 %v2053_v16, %s2252_s23  ;;  %v1001_v63 = vrot.slane %v1000_v44, 4  ;;  %v1996_v2 = vrot.slane %v1988_v43, 9  ;;  %v1083_v51 = vrot.slane %v2887_v4, 5  ;;  %v972_v53 = vsel %vm2404_vm5, %v967_v50, %v971_v38  ;;  %v1282_v3 = vpop.permute.xlu1 %1281 }
  0xa7   : > { %1379 = vrot.lane.b32.xlu0 %v2052_v56, %s2252_s23  ;;  %v977_v35 = vrot.slane %v976_v17, 4  ;;  %v1086_v8 = vrot.slane %v1980_v13, 5  ;;  %v1998_v11 = vcombine.low %v2202_v10, %v2201_v41  ;;  %v1094_v14 = vsel %vm2357_vm2, %v1092_v22, %v1093_v58 }
  0xa8   : > { %v1006_v12 = vsel %vm2404_vm5, %v1001_v63, %v1005_v49  ;;  %v1084_v4 = vsel %vm2357_vm2, %v1996_v2, %v1083_v51  ;;  %v1085_v1 = vrot.slane %v1083_v51, 4  ;;  %v1999_v40 = vcombine.low %v2204_v32, %v2203_v7  ;;  %v2206_v2 = vld [vmem:[%s2313_s21 + $0x1c] sm:$0xf] }
  0xa9   : > { %v2061_v18 = vcombine.low %v996_v60, %v1006_v12  ;;  %v982_v16 = vsel %vm2404_vm5, %v977_v35, %v981_v59  ;;  %v1466_v13 = vsel %vm1463_vm6, %v1998_v11, %v1152_v33  ;;  %v1280_v23 = vpop.permute.xlu0 %1279  ;;  %v2069_v29 = vcombine.low %v1091_v45, %v1094_v14  ;;  %v2205_v45 = vld [vmem:[%s2313_s21 + $0x18] sm:$0xf]  ;;  %v2207_v11 = vld [vmem:[%s2313_s21 + $0x24] sm:$0xf]  ;;  %v2208_v12 = vld [vmem:[%s2313_s21 + $0x28] sm:$0xf] }
  0xaa   : > { %v2060_v20 = vcombine.low %v972_v53, %v982_v16  ;;  %v1087_v27 = vsel %vm2357_vm2, %v1085_v1, %v1086_v8  ;;  %v1490_v30 = vsel %vm1488_vm7, %v1466_v13, %v2857_v34  ;;  %v1469_v26 = vsel %vm1463_vm6, %v1999_v40, %v1154_v61 }
  0xab   : > { %1421 = vrot.lane.b32.xlu1 %v2061_v18, %s2257_s4  ;;  %v2068_v37 = vcombine.low %v1084_v4, %v1087_v27  ;;  %v1507_v28 = vsel %vm1505_vm8, %v1490_v30, %v2833_v55  ;;  %v1492_v31 = vsel %vm1488_vm7, %v1469_v26, %v2889_v6  ;;  %v1646_v25 = vsel %vm1644_vm12, %v2195_v39, 0 }
  0xac   : > { %1419 = vrot.lane.b32.xlu0 %v2060_v20, %s2257_s4  ;;  %v1524_v34 = vsel %vm1522_vm9, %v1507_v28, %v1280_v23  ;;  %v1509_v33 = vsel %vm1505_vm8, %v1492_v31, %v2808_v19  ;;  %v1410_v54 = vpop.permute.xlu1 %1409  ;;  %2100 = vmatpush3.bf16.msra.mxu0 %v1646_v25  ;;  %v2005_v36 = vcombine.low %v2772_v47, %v2778_v21 }
  0xad   : > { %v1541_v48 = vsel %vm1539_vm10, %v1524_v34, %v2880_v0  ;;  %v1526_v55 = vsel %vm1522_vm9, %v1509_v33, %v1282_v3  ;;  %v2004_v0 = vcombine.low %v2746_v15, %v2753_v9  ;;  %2122 = vmatpush3.bf16.msra.mxu1 %v1646_v25  ;;  %v2000_v51 = vcombine.low %v2205_v45, %v2206_v2 }
  0xae   : > { %v1558_v19 = vsel %vm1556_vm11, %v1541_v48, %v2854_v24  ;;  %v1543_v56 = vsel %vm1539_vm10, %v1526_v55, %v2902_v57  ;;  %v2001_v14 = vcombine.low %v2207_v11, %v2208_v12 }
  0xaf   : > { %1461 = vrot.lane.b32.xlu1 %v2069_v29, %s2258_s5  ;;  %v1560_v24 = vsel %vm1556_vm11, %v1543_v56, %v2839_v5  ;;  %v2209_v56 = vld [vmem:[%s2313_s21 + $0x30] sm:$0xf] }
  0xb0   : > { %1459 = vrot.lane.b32.xlu0 %v2068_v37, %s2258_s5  ;;  %v1408_v6 = vpop.permute.xlu0 %1407  ;;  %v1577_v60 = vsel %vm1573_vm13, %v1560_v24, %v1410_v54 }
  0xb1   : > { %v1575_v38 = vsel %vm1573_vm13, %v1558_v19, %v1408_v6 }
  0xb3   : > { %v1156_v42 = vpop.permute.xlu1 %1155 }
  0xb4   : > { %v1448_v46 = vpop.permute.xlu0 %1447  ;;  %v1472_v8 = vsel %vm1463_vm6, %v2000_v51, %v1156_v42 }
  0xb5   : > { %v1592_v43 = vsel %vm1590_vm14, %v1575_v38, %v1448_v46  ;;  %v2210_v38 = vld [vmem:[%s2313_s21 + $0x34] sm:$0xf] }
  0xb6   : > { %2101 = vmatprep.mubr.msk.bf16.mxu0 %vm1627_vm15, %v1592_v43  ;;  %v2002_v42 = vcombine.low %v2209_v56, %v2210_v38 }
  0xb9   : > { %v1450_v44 = vpop.permute.xlu0 %1449 }
  0xba   : > { %v1158_v49 = vpop.permute.xlu1 %1157  ;;  %v1594_v57 = vsel %vm1590_vm14, %v1577_v60, %v1450_v44 }
  0xbb   : > { %2102 = vmatmul.mubr.msk.bf16.vlgmr.msra.gmra.mrb[0].mxu0 %vm1627_vm15, %v1594_v57  ;;  %v1475_v20 = vsel %vm1463_vm6, %v2001_v14, %v1158_v49  ;;  %v2003_v49 = vcombine.low %v2622_v52, %v2628_v62 }
  0xbd   : > { %v1196_v50 = vpop.permute.xlu0 %1195 }
  0xbe   : > { %v1198_v17 = vpop.permute.xlu1 %1197  ;;  %v1494_v41 = vsel %vm1488_vm7, %v1472_v8, %v1196_v50 }
  0xbf   : > { %v1496_v7 = vsel %vm1488_vm7, %v1475_v20, %v1198_v17 }
  0xc1   : > { %v1244_v59 = vpop.permute.xlu0 %1243 }
  0xc2   : > { %v1246_v22 = vpop.permute.xlu1 %1245  ;;  %v1511_v4 = vsel %vm1505_vm8, %v1494_v41, %v1244_v59 }
  0xc3   : > { %v1513_v23 = vsel %vm1505_vm8, %v1496_v7, %v1246_v22 }
  0xc6   : > { %v1286_v58 = vpop.permute.xlu1 %1285 }
  0xc7   : > { %v1284_v61 = vpop.permute.xlu0 %1283  ;;  %v1530_v29 = vsel %vm1522_vm9, %v1513_v23, %v1286_v58 }
  0xc8   : > { %v1528_v3 = vsel %vm1522_vm9, %v1511_v4, %v1284_v61 }
  0xca   : > { %v1326_v5 = vpop.permute.xlu1 %1325 }
  0xcb   : > { %v1324_v63 = vpop.permute.xlu0 %1323  ;;  %v1547_v30 = vsel %vm1539_vm10, %v1530_v29, %v1326_v5 }
  0xcc   : > { %v1545_v18 = vsel %vm1539_vm10, %v1528_v3, %v1324_v63 }
  0xce   : > { %v1374_v53 = vpop.permute.xlu1 %1373 }
  0xcf   : > { %v1372_v35 = vpop.permute.xlu0 %1371  ;;  %v1564_v39 = vsel %vm1556_vm11, %v1547_v30, %v1374_v53 }
  0xd0   : > { %v1562_v16 = vsel %vm1556_vm11, %v1545_v18, %v1372_v35 }
  0xd3   : > { %v1414_v10 = vpop.permute.xlu1 %1413 }
  0xd4   : > { %v1412_v1 = vpop.permute.xlu0 %1411  ;;  %v1581_v37 = vsel %vm1573_vm13, %v1564_v39, %v1414_v10 }
  0xd5   : > { %v1579_v27 = vsel %vm1573_vm13, %v1562_v16, %v1412_v1 }
  0xd8   : > { %v1452_v13 = vpop.permute.xlu0 %1451 }
  0xd9   : > { %v1160_v32 = vpop.permute.xlu1 %1159  ;;  %v1596_v40 = vsel %vm1590_vm14, %v1579_v27, %v1452_v13 }
  0xda   : > { %2105 = vmatprep.mubr.msk.bf16.mxu0 %vm1627_vm15, %v1596_v40  ;;  %v1478_v24 = vsel %vm1463_vm6, %v2002_v42, %v1160_v32 }
  0xde   : > { %v1454_v26 = vpop.permute.xlu0 %1453 }
  0xdf   : > { %v1162_v28 = vpop.permute.xlu1 %1161  ;;  %v1598_v31 = vsel %vm1590_vm14, %v1581_v37, %v1454_v26 }
  0xe0   : > { %2106 = vmatmul.mubr.msk.bf16.gmra.mrb[4].mxu0 %vm1627_vm15, %v1598_v31  ;;  %v1481_v58 = vsel %vm1463_vm6, %v2003_v49, %v1162_v28 }
  0xe2   : > { %v1200_v34 = vpop.permute.xlu0 %1199 }
  0xe3   : > { %v1202_v33 = vpop.permute.xlu1 %1201  ;;  %v1498_v60 = vsel %vm1488_vm7, %v1478_v24, %v1200_v34 }
  0xe4   : > { %v1500_v63 = vsel %vm1488_vm7, %v1481_v58, %v1202_v33 }
  0xe6   : > { %v1248_v48 = vpop.permute.xlu0 %1247 }
  0xe7   : > { %v1250_v54 = vpop.permute.xlu1 %1249  ;;  %v1515_v57 = vsel %vm1505_vm8, %v1498_v60, %v1248_v48 }
  0xe8   : > { %v1517_v52 = vsel %vm1505_vm8, %v1500_v63, %v1250_v54 }
  0xeb   : > { %v1290_v25 = vpop.permute.xlu1 %1289 }
  0xec   : > { %v1288_v55 = vpop.permute.xlu0 %1287  ;;  %v1534_v62 = vsel %vm1522_vm9, %v1517_v52, %v1290_v25 }
  0xed   : > { %v1532_v17 = vsel %vm1522_vm9, %v1515_v57, %v1288_v55 }
  0xef   : > { %v1330_v6 = vpop.permute.xlu1 %1329 }
  0xf0   : > { %v1328_v19 = vpop.permute.xlu0 %1327  ;;  %v1551_v51 = vsel %vm1539_vm10, %v1534_v62, %v1330_v6 }
  0xf1   : > { %v1549_v59 = vsel %vm1539_vm10, %v1532_v17, %v1328_v19 }
  0xf3   : > { %v1378_v46 = vpop.permute.xlu1 %1377 }
  0xf4   : > { %v1376_v43 = vpop.permute.xlu0 %1375  ;;  %v1568_v53 = vsel %vm1556_vm11, %v1551_v51, %v1378_v46 }
  0xf5   : > { %v1566_v22 = vsel %vm1556_vm11, %v1549_v59, %v1376_v43 }
  0xf8   : > { %v1418_v44 = vpop.permute.xlu1 %1417 }
  0xf9   : > { %v1416_v50 = vpop.permute.xlu0 %1415  ;;  %v1585_v35 = vsel %vm1573_vm13, %v1568_v53, %v1418_v44 }
  0xfa   : > { %v1583_v61 = vsel %vm1573_vm13, %v1566_v22, %v1416_v50 }
  0xfd   : > { %v1456_v5 = vpop.permute.xlu0 %1455 }
  0xfe   : > { %v1164_v45 = vpop.permute.xlu1 %1163  ;;  %v1600_v2 = vsel %vm1590_vm14, %v1583_v61, %v1456_v5 }
  0xff   : > { %2109 = vmatprep.mubr.msk.bf16.mxu1 %vm1627_vm15, %v1600_v2  ;;  %v1484_v7 = vsel %vm1463_vm6, %v2004_v0, %v1164_v45 }
 0x103   : > { %v1458_v8 = vpop.permute.xlu0 %1457 }
 0x104   : > { %v1166_v41 = vpop.permute.xlu1 %1165  ;;  %v1602_v10 = vsel %vm1590_vm14, %v1585_v35, %v1458_v8 }
 0x105   : > { %2110 = vmatmul.mubr.msk.bf16.vlgmr.msra.gmra.mrb[0].mxu1 %vm1627_vm15, %v1602_v10  ;;  %v1487_v13 = vsel %vm1463_vm6, %v2005_v36, %v1166_v41 }
 0x107   : > { %v1204_v11 = vpop.permute.xlu0 %1203 }
 0x108   : > { %v1206_v12 = vpop.permute.xlu1 %1205  ;;  %v1502_v40 = vsel %vm1488_vm7, %v1484_v7, %v1204_v11 }
 0x109   : > { %v1504_v32 = vsel %vm1488_vm7, %v1487_v13, %v1206_v12 }
 0x10b   : > { %v1252_v14 = vpop.permute.xlu0 %1251 }
 0x10c   : > { %v1254_v4 = vpop.permute.xlu1 %1253  ;;  %v1519_v30 = vsel %vm1505_vm8, %v1502_v40, %v1252_v14 }
 0x10d   : > { %v1521_v23 = vsel %vm1505_vm8, %v1504_v32, %v1254_v4 }
 0x110   : > { %v1294_v1 = vpop.permute.xlu1 %1293 }
 0x111   : > { %v1292_v3 = vpop.permute.xlu0 %1291  ;;  %v1538_v39 = vsel %vm1522_vm9, %v1521_v23, %v1294_v1 }
 0x112   : > { %v1536_v47 = vsel %vm1522_vm9, %v1519_v30, %v1292_v3 }
 0x114   : > { %v1334_v18 = vpop.permute.xlu1 %1333 }
 0x115   : > { %v1332_v16 = vpop.permute.xlu0 %1331  ;;  %v1555_v21 = vsel %vm1539_vm10, %v1538_v39, %v1334_v18 }
 0x116   : > { %v1553_v15 = vsel %vm1539_vm10, %v1536_v47, %v1332_v16 }
 0x118   : > { %v1382_v20 = vpop.permute.xlu1 %1381 }
 0x119   : > { %v1380_v27 = vpop.permute.xlu0 %1379  ;;  %v1572_v9 = vsel %vm1556_vm11, %v1555_v21, %v1382_v20 }
 0x11a   : > { %v1570_v0 = vsel %vm1556_vm11, %v1553_v15, %v1380_v27 }
 0x11d   : > { %v1422_v29 = vpop.permute.xlu1 %1421 }
 0x11e   : > { %v1420_v37 = vpop.permute.xlu0 %1419  ;;  %v1589_v36 = vsel %vm1573_vm13, %v1572_v9, %v1422_v29 }
 0x11f   : > { %v1587_v28 = vsel %vm1573_vm13, %v1570_v0, %v1420_v37 }
 0x121   : > { %v1462_v26 = vpop.permute.xlu1 %1461 }
 0x122   : > { %v1606_v31 = vsel %vm1590_vm14, %v1589_v36, %v1462_v26  ;;  %v1460_v34 = vpop.permute.xlu0 %1459 }
 0x123   : > { %v1604_v33 = vsel %vm1590_vm14, %v1587_v28, %v1460_v34 }
 0x124   : > { %2113 = vmatprep.mubr.msk.bf16.mxu1 %vm1627_vm15, %v1604_v33 }
 0x125   : > { %2114 = vmatmul.mubr.msk.bf16.gmra.mrb[4].mxu1 %vm1627_vm15, %v1606_v31 }
 0x18e   : > { %v2103_v48 = vpop.f32.mrb[0].mxu0 }
 0x18f   : > { %v1682_v54 = vpop.f32.mrb[1].mxu0  ;;  %v1769_v38 = vmul.f32 %v2103_v48, %v2103_v48 }
 0x190   : > { %v2104_v25 = vpop.f32.mrb[2].mxu0  ;;  %v1767_v6 = vmul.f32 %v1682_v54, %v1682_v54 }
 0x191   : > { %v1685_v55 = vpop.f32.mrb[3].mxu0  ;;  %v1770_v43 = vmul.f32 %v2104_v25, %v2104_v25 }
 0x192   : > { %v1745_v19 = vadd.f32 %v1685_v55, %v1682_v54  ;;  %v1768_v56 = vmul.f32 %v1685_v55, %v1685_v55 }
 0x194   : > { %v1746_v42 = vadd.f32 %v2103_v48, %v1745_v19  ;;  %v1783_v46 = vadd.f32 %v1768_v56, %v1767_v6 }
 0x196   : > { %v1784_v24 = vadd.f32 %v1783_v46, %v1769_v38  ;;  %v1747_v60 = vadd.f32 %v2104_v25, %v1746_v42 }
 0x198   : > { %v1785_v44 = vadd.f32 %v1784_v24, %v1770_v43 }
 0x1b3   : > { %v2107_v49 = vpop.f32.mrb[4].mxu0 }
 0x1b4   : > { %v1698_v57 = vpop.f32.mrb[5].mxu0  ;;  %v1773_v63 = vmul.f32 %v2107_v49, %v2107_v49 }
 0x1b5   : > { %v1748_v50 = vadd.f32 %v1747_v60, %v1698_v57  ;;  %v1771_v17 = vmul.f32 %v1698_v57, %v1698_v57  ;;  %v2108_v59 = vpop.f32.mrb[6].mxu0 }
 0x1b6   : > { %v1701_v22 = vpop.f32.mrb[7].mxu0  ;;  %v1774_v52 = vmul.f32 %v2108_v59, %v2108_v59 }
 0x1b7   : > { %v1786_v58 = vadd.f32 %v1785_v44, %v1771_v17  ;;  %v1749_v61 = vadd.f32 %v1748_v50, %v1701_v22  ;;  %v1772_v5 = vmul.f32 %v1701_v22, %v1701_v22 }
 0x1b9   : > { %v1750_v45 = vadd.f32 %v2107_v49, %v1749_v61  ;;  %v1787_v2 = vadd.f32 %v1786_v58, %v1772_v5 }
 0x1bb   : > { %v1788_v62 = vadd.f32 %v1787_v2, %v1773_v63  ;;  %v1751_v51 = vadd.f32 %v2108_v59, %v1750_v45 }
 0x1bd   : > { %v1789_v53 = vadd.f32 %v1788_v62, %v1774_v52 }
 0x1d8   : > { %v2111_v35 = vpop.f32.mrb[0].mxu1 }
 0x1d9   : > { %v1714_v8 = vpop.f32.mrb[1].mxu1  ;;  %v1777_v3 = vmul.f32 %v2111_v35, %v2111_v35 }
 0x1da   : > { %v1752_v41 = vadd.f32 %v1751_v51, %v1714_v8  ;;  %v1775_v10 = vmul.f32 %v1714_v8, %v1714_v8  ;;  %v2112_v11 = vpop.f32.mrb[2].mxu1 }
 0x1db   : > { %v1717_v12 = vpop.f32.mrb[3].mxu1  ;;  %v1778_v20 = vmul.f32 %v2112_v11, %v2112_v11 }
 0x1dc   : > { %v1790_v14 = vadd.f32 %v1789_v53, %v1775_v10  ;;  %v1753_v4 = vadd.f32 %v1752_v41, %v1717_v12  ;;  %v1776_v1 = vmul.f32 %v1717_v12, %v1717_v12 }
 0x1de   : > { %v1754_v18 = vadd.f32 %v2111_v35, %v1753_v4  ;;  %v1791_v16 = vadd.f32 %v1790_v14, %v1776_v1 }
 0x1e0   : > { %v1792_v27 = vadd.f32 %v1791_v16, %v1777_v3  ;;  %v1755_v13 = vadd.f32 %v2112_v11, %v1754_v18 }
 0x1e2   : > { %v1793_v7 = vadd.f32 %v1792_v27, %v1778_v20 }
 0x1f8   : > { %v2115_v32 = vpop.f32.mrb[4].mxu1 }
 0x1f9   : > { %v1730_v40 = vpop.f32.mrb[5].mxu1  ;;  %v1781_v15 = vmul.f32 %v2115_v32, %v2115_v32 }
 0x1fa   : > { %v1756_v23 = vadd.f32 %v1755_v13, %v1730_v40  ;;  %v1779_v29 = vmul.f32 %v1730_v40, %v1730_v40  ;;  %v2116_v30 = vpop.f32.mrb[6].mxu1 }
 0x1fb   : > { %v1733_v39 = vpop.f32.mrb[7].mxu1  ;;  %v1782_v36 = vmul.f32 %v2116_v30, %v2116_v30 }
 0x1fc   : > { %v1794_v37 = vadd.f32 %v1793_v7, %v1779_v29  ;;  %v1757_v47 = vadd.f32 %v1756_v23, %v1733_v39  ;;  %v1780_v21 = vmul.f32 %v1733_v39, %v1733_v39 }
 0x1fe   : > { %v1758_v9 = vadd.f32 %v2115_v32, %v1757_v47  ;;  %v1795_v0 = vadd.f32 %v1794_v37, %v1780_v21 }
 0x200   : > { %v1759_v26 = vadd.f32 %v2116_v30, %v1758_v9  ;;  %v1796_v28 = vadd.f32 %v1795_v0, %v1781_v15 }
 0x202   : > { %v1760_v31 = vrot.slane %v1759_v26, 4  ;;  %v1797_v34 = vadd.f32 %v1796_v28, %v1782_v36 }
 0x204   : > { %v1761_v33 = vadd.f32 %v1760_v31, %v1759_v26  ;;  %v1798_v48 = vrot.slane %v1797_v34, 4 }
 0x206   : > { %v1762_v54 = vrot.slane %v1761_v33, 2  ;;  %v1799_v25 = vadd.f32 %v1798_v48, %v1797_v34 }
 0x208   : > { %v1763_v55 = vadd.f32 %v1762_v54, %v1761_v33  ;;  %v1800_v6 = vrot.slane %v1799_v25, 2 }
 0x20a   : > { %v1764_v19 = vrot.slane %v1763_v55, 1  ;;  %v1801_v56 = vadd.f32 %v1800_v6, %v1799_v25 }
 0x20c   : > { %v1765_v38 = vadd.f32 %v1764_v19, %v1763_v55  ;;  %v1802_v42 = vrot.slane %v1801_v56, 1 }
 0x20e   : > { %1766 = vst [vmem:[%s163_s20] sm:$0x1] %v1765_v38  ;;  %v1803_v46 = vadd.f32 %v1802_v42, %v1801_v56 }
 0x210   : > { %1804 = vst [vmem:[%s163_s20 + $0x1] sm:$0x1] %v1803_v46 }
 0x211 PF: > { %s12_s13 = sadd.s32 1, %s2249_s13   ;;  %s3063_s9 = smov %s2241_s11 }
 0x212   : > { %p9_p7 = scmp.ge.s32.totalorder %s12_s13, 6   ;;  %s3064_s10 = smov %s2245_s12 }
 0x213   : > { %s3065_s11 = smov %s3068_s14  ;;  %s3066_s12 = smov %s3072_s15 }
 0x214   :  { %11 = sbr.rel (!%p9_p7) target bundleno = 3 (0x3), region = 61 }

</bundles_post_ra>
